<compile_context>
chip_gen: v5e
topology: v5e:2x2
jax: 0.10.0
libtpu: 0.0.40
codegen_flags: <defaults>
</compile_context>

<pallas_src>
import functools
import math

import jax
import jax.numpy as jnp
from jax.experimental import pallas as pl
from jax.experimental.pallas import tpu as pltpu


_NUM_W = 20  # number of weight operands shipped to every kernel (fixed order)

# Row indices into the stacked (21, C) per-channel vector table (LayerNorm
# gammas / betas and the width-C biases).
(_LN_IG_G, _LN_IG_B, _LN_UG_G, _LN_UG_B,
 _LN_PO_G, _LN_PO_B, _LN_IO_G, _LN_IO_B,
 _FC_B, _LN_FC_G, _LN_FC_B,
 _ATTN_BO, _ATTN_LN_G, _ATTN_LN_B,
 _FFN_B2, _FFN_LN_G, _FFN_LN_B,
 _FCM_LN_G, _FCM_LN_B, _FCC_LN_G, _FCC_LN_B) = range(21)
_NUM_VEC_ROWS = 21


# ----------------------------------------------------------------------------
# Small in-kernel helpers
# ----------------------------------------------------------------------------

def _recip(x):
    if hasattr(pl, "reciprocal"):
        return pl.reciprocal(x, approx=True)   # EUP op, off the VPU
    return 1.0 / x


def _ln(x, g, b):
    mu = jnp.mean(x, axis=-1, keepdims=True)
    var = jnp.mean(jnp.square(x - mu), axis=-1, keepdims=True)
    return (x - mu) * jax.lax.rsqrt(var + 1e-5) * g + b


def _lin(x, w_ref, b=None):
    # bf16 MXU operands, f32 accumulation.
    y = jnp.dot(x.astype(jnp.bfloat16), w_ref[...],
                preferred_element_type=jnp.float32)
    if b is not None:
        y = y + b
    return y


def _small_section(gf, kin, wts, *, num_heads):
    """Adaptive kernel update + kernel interaction + fc_mask / fc_cls.

    Works entirely on (N, C)-sized tensors held in VMEM/vregs.  Returns
    (refined kernels x, dynamic mask weights m, lane-padded class scores).
    """
    (dyn_w, inp_w, gate_w, fc_w, qkv_w, out_w, ffn_w1, ffn_w2,
     fcm_w1, fcm_w2, fcc_w1, fcc_w2, vecs_ref,
     dyn_b, inp_b, gate_b, qkv_b, ffn_b1, fcm_b2, fcc_b2) = wts
    f32, bf16 = jnp.float32, jnp.bfloat16
    C = kin.shape[-1]
    V = vecs_ref[...]                          # (21, C) f32, loaded once
    row = lambda i: V[i:i + 1, :]

    # ---- adaptive kernel update (K-Net KernelUpdator, kernel extent K == 1) --
    pp = _lin(gf, dyn_w, dyn_b[...])           # (N, 2C) = [param_in | param_out]
    ii = _lin(kin, inp_w, inp_b[...])          # (N, 2C) = [input_in | input_out]
    param_in, param_out = pp[:, :C], pp[:, C:]
    input_in, input_out = ii[:, :C], ii[:, C:]
    gate_f = input_in * param_in
    gg = _lin(gate_f, gate_w, gate_b[...])     # (N, 2C) = [in_gate | up_gate]
    in_gate = jax.nn.sigmoid(_ln(gg[:, :C], row(_LN_IG_G), row(_LN_IG_B)))
    up_gate = jax.nn.sigmoid(_ln(gg[:, C:], row(_LN_UG_G), row(_LN_UG_B)))
    param_out = _ln(param_out, row(_LN_PO_G), row(_LN_PO_B))
    input_out = _ln(input_out, row(_LN_IO_G), row(_LN_IO_B))
    feats = up_gate * param_out + in_gate * input_out
    feats = jnp.maximum(
        _ln(_lin(feats, fc_w, row(_FC_B)), row(_LN_FC_G), row(_LN_FC_B)), 0.0)

    # ---- kernel interaction: MHA over the N proposals + FFN (post-norm) ----
    x = feats
    qkv = _lin(x, qkv_w, qkv_b[...])           # one packed (C, 3C) projection
    q, k, v = qkv[:, :C], qkv[:, C:2 * C], qkv[:, 2 * C:]
    d = C // num_heads
    scale = 1.0 / math.sqrt(d)
    heads = []
    for h in range(num_heads):                 # static lane slices: per-head
        lo = h * d                             # contraction depth d, not C
        qh = q[:, lo:lo + d].astype(bf16)
        kh = k[:, lo:lo + d].astype(bf16)
        vh = v[:, lo:lo + d].astype(bf16)
        sc = jax.lax.dot_general(qh, kh, (((1,), (1,)), ((), ())),
                                 preferred_element_type=f32) * scale
        sc = sc - jnp.max(sc, axis=-1, keepdims=True)
        p = jnp.exp(sc)
        p = p * _recip(jnp.sum(p, axis=-1, keepdims=True))
        heads.append(jnp.dot(p.astype(bf16), vh, preferred_element_type=f32))
    attn = jnp.concatenate(heads, axis=-1)     # (N, C)
    attn = _lin(attn, out_w, row(_ATTN_BO))
    x = _ln(x + attn, row(_ATTN_LN_G), row(_ATTN_LN_B))
    hid = jnp.maximum(_lin(x, ffn_w1, ffn_b1[...]), 0.0)
    x = _ln(x + _lin(hid, ffn_w2, row(_FFN_B2)), row(_FFN_LN_G), row(_FFN_LN_B))

    # ---- fc_mask (dynamic 1x1 conv weights) and fc_cls ----
    m = jnp.maximum(_ln(_lin(x, fcm_w1), row(_FCM_LN_G), row(_FCM_LN_B)), 0.0)
    m = _lin(m, fcm_w2, fcm_b2[...])           # (N, Cout)
    c = jnp.maximum(_ln(_lin(x, fcc_w1), row(_FCC_LN_G), row(_FCC_LN_B)), 0.0)
    cls = _lin(c, fcc_w2, fcc_b2[...])         # (N, pad_nc), lane dense
    return x, m, cls


# ----------------------------------------------------------------------------
# Kernel bodies
# ----------------------------------------------------------------------------

def _fused_kernel(mask_ref, feat_ref, kern_ref, *rest, num_heads, normalize):
    """Resident path: one grid step == one batch element; feature read once."""
    f32, bf16 = jnp.float32, jnp.bfloat16
    wts = rest[:_NUM_W]
    mask_out_ref, cls_out_ref, kern_out_ref = rest[_NUM_W:]

    feat = feat_ref[...]                       # (HW, C) bf16, VMEM resident
    kin = kern_ref[...]                        # (N, C) f32
    logits = mask_ref[...].astype(f32)         # (N, HW)

    # Group feature assembling; the sigmoid-mask normalization is factored out
    # of the contraction (divide an (N, C) result instead of an (N, HW) mask).
    if normalize:
        s = jax.nn.sigmoid(logits)
        gf = jnp.dot(s.astype(bf16), feat, preferred_element_type=f32)
        gf = gf * _recip(jnp.sum(s, axis=-1, keepdims=True) + 1e-8)
    else:
        # TODO(synk): verify hard-threshold path against the reference
        # group_feature_assembling (K-Net binarizes sigmoid masks at 0.5).
        gf = jnp.dot((logits > 0.0).astype(bf16), feat,
                     preferred_element_type=f32)

    x, m, cls = _small_section(gf, kin, wts, num_heads=num_heads)

    # Dynamic 1x1 mask prediction: contract m with feat over C (q @ k^T form).
    mask_out_ref[...] = jax.lax.dot_general(
        m.astype(bf16), feat, (((1,), (1,)), ((), ())),
        preferred_element_type=f32)
    cls_out_ref[...] = cls
    kern_out_ref[...] = x


def _gfa_update_kernel(mask_ref, feat_ref, kern_ref, *rest, num_heads, normalize):
    """Tiled pass 1: stream HW tiles through the GFA contraction into (N, C)
    accumulators; run the kernel-update / interaction section on the last tile."""
    f32, bf16 = jnp.float32, jnp.bfloat16
    wts = rest[:_NUM_W]
    m_out_ref, cls_out_ref, kern_out_ref, gf_acc, ssum_acc = rest[_NUM_W:]
    t = pl.program_id(1)

    @pl.when(t == 0)
    def _init():
        gf_acc[...] = jnp.zeros_like(gf_acc)
        ssum_acc[...] = jnp.zeros_like(ssum_acc)

    logits = mask_ref[...].astype(f32)         # (N, thw)
    if normalize:
        s = jax.nn.sigmoid(logits)
        ssum_acc[...] += jnp.sum(s, axis=-1, keepdims=True)
        sb = s.astype(bf16)
    else:
        sb = (logits > 0.0).astype(bf16)
    gf_acc[...] += jnp.dot(sb, feat_ref[...], preferred_element_type=f32)

    @pl.when(t == pl.num_programs(1) - 1)
    def _finish():
        gf = gf_acc[...]
        if normalize:
            gf = gf * _recip(ssum_acc[...] + 1e-8)
        x, m, cls = _small_section(gf, kern_ref[...], wts, num_heads=num_heads)
        m_out_ref[...] = m
        cls_out_ref[...] = cls
        kern_out_ref[...] = x


def _mask_pred_kernel(m_ref, feat_ref, out_ref):
    """Tiled pass 2: refined mask logits for one (batch, HW-tile) block."""
    out_ref[...] = jax.lax.dot_general(
        m_ref[...], feat_ref[...], (((1,), (1,)), ((), ())),
        preferred_element_type=jnp.float32)


# ----------------------------------------------------------------------------
# Wrapper helpers
# ----------------------------------------------------------------------------

def _block_spec(block_shape, index_map, buffer_count=None):
    """BlockSpec, optionally with an explicit buffer count (falls back cleanly
    if pipeline_mode / pl.Buffered is unavailable)."""
    if buffer_count is not None and hasattr(pl, "Buffered"):
        try:
            return pl.BlockSpec(block_shape, index_map,
                                pipeline_mode=pl.Buffered(buffer_count))
        except TypeError:
            pass
    return pl.BlockSpec(block_shape, index_map)


def _weight_specs(weights, grid_rank):
    specs = []
    for w in weights:
        shape = tuple(int(s) for s in w.shape)
        nd = len(shape)
        if grid_rank == 1:
            imap = lambda b, _nd=nd: (0,) * _nd
        else:
            imap = lambda b, t, _nd=nd: (0,) * _nd
        # Grid-invariant: never re-DMA'd -> single buffer halves weight VMEM.
        specs.append(_block_spec(shape, imap, buffer_count=1))
    return specs


def _batch_spec(tail_shape, grid_rank, buffer_count=None):
    tail = tuple(int(s) for s in tail_shape)
    nt = len(tail)
    if grid_rank == 1:
        imap = lambda b, _nt=nt: (b,) + (0,) * _nt
    else:
        imap = lambda b, t, _nt=nt: (b,) + (0,) * _nt
    return _block_spec((None,) + tail, imap, buffer_count)


def _vmem_capacity():
    try:
        info = pltpu.get_tpu_info()
        cap = getattr(info, "vmem_capacity_bytes", None)
        if cap:
            return int(cap)
    except Exception:
        pass
    return 64 * 1024 * 1024   # conservative default (v7x per-TC VMEM)


def _vmem_limit(est_bytes, cap):
    return int(min(cap - (2 << 20), max(32 << 20, int(est_bytes * 1.5))))


def _pack_weights(params, C, num_classes, pad_nc):
    """Fixed-order weight operand list (bf16 matmul weights, f32 vectors)."""
    aku, ki = params['aku'], params['ki']
    f32, bf16 = jnp.float32, jnp.bfloat16

    gate_w = jnp.concatenate([aku['ig_w'], aku['ug_w']], axis=1)   # (C, 2C)
    gate_b = jnp.concatenate([aku['ig_b'], aku['ug_b']], axis=1)   # (1, 2C)
    fcc_w2 = jnp.zeros((C, pad_nc), f32).at[:, :num_classes].set(
        params['fc_cls_w2'].astype(f32))
    fcc_b2 = jnp.zeros((1, pad_nc), f32).at[:, :num_classes].set(
        params['fc_cls_b2'].astype(f32))

    vec_rows = [aku['ln_ig_g'], aku['ln_ig_b'], aku['ln_ug_g'], aku['ln_ug_b'],
                aku['ln_po_g'], aku['ln_po_b'], aku['ln_io_g'], aku['ln_io_b'],
                aku['fc_b'], aku['ln_fc_g'], aku['ln_fc_b'],
                ki['attn_out_b'], ki['attn_ln_g'], ki['attn_ln_b'],
                ki['ffn_b2'], ki['ffn_ln_g'], ki['ffn_ln_b'],
                params['fc_mask_ln_g'], params['fc_mask_ln_b'],
                params['fc_cls_ln_g'], params['fc_cls_ln_b']]
    assert len(vec_rows) == _NUM_VEC_ROWS
    vecs = jnp.concatenate(
        [jnp.asarray(v, f32).reshape(1, C) for v in vec_rows], axis=0)

    mm = lambda w: jnp.asarray(w, bf16)   # MXU operands
    fv = lambda w: jnp.asarray(w, f32)    # biases added in f32
    weights = [
        mm(aku['dyn_w']), mm(aku['inp_w']), mm(gate_w), mm(aku['fc_w']),
        mm(ki['attn_in_w']), mm(ki['attn_out_w']),
        mm(ki['ffn_w1']), mm(ki['ffn_w2']),
        mm(params['fc_mask_w1']), mm(params['fc_mask_w2']),
        mm(params['fc_cls_w1']), mm(fcc_w2),
        vecs,
        fv(aku['dyn_b']), fv(aku['inp_b']), fv(gate_b), fv(ki['attn_in_b']),
        fv(ki['ffn_b1']), fv(params['fc_mask_b2']), fv(fcc_b2),
    ]
    assert len(weights) == _NUM_W
    return weights


# ----------------------------------------------------------------------------
# Head forward wrapper
# ----------------------------------------------------------------------------

def panoptic_kernel_update_head(params, feature_map, kernels, mask_pred, *,
                                num_heads, normalize_sigmoid_masks,
                                hw_tile=2048, force_tiled=False):
    f32, bf16 = jnp.float32, jnp.bfloat16
    aku = params['aku']

    C = int(aku['dyn_w'].shape[0])              # static in_channels
    B, N = int(kernels.shape[0]), int(kernels.shape[1])
    Cf, H, W = (int(s) for s in feature_map.shape[-3:])
    HW = H * W
    num_classes = int(params['fc_cls_w2'].shape[1])
    Cout = int(params['fc_mask_w2'].shape[1])
    if Cf != C or Cout != Cf:
        raise NotImplementedError("fused head assumes in/out/feature channels match")
    if C % num_heads != 0:
        raise ValueError("in_channels must be divisible by num_heads")
    K = kernels.reshape(B, N, C, -1).shape[-1]
    if K != 1:
        raise NotImplementedError("fused head supports 1x1 dynamic kernels only")

    pad_nc = max(128, ((num_classes + 127) // 128) * 128)
    weights = _pack_weights(params, C, num_classes, pad_nc)

    # Feature map shipped as (B, HW, C) bf16: GFA is the canonical MXU form and
    # the mask matmul contracts C (q@k^T form) -- no transpose of the big block.
    # TODO(synk): have the producer emit NHWC bf16 features so this fused
    # transpose+cast pass over the feature map disappears.
    feat_hwc = jnp.transpose(feature_map.reshape(B, Cf, HW), (0, 2, 1)).astype(bf16)
    mask_flat = mask_pred.reshape(B, N, HW).astype(bf16)     # halve mask stream
    kern_in = kernels.reshape(B, N, C).astype(f32)

    vmem_cap = _vmem_capacity()
    weight_bytes = sum(int(w.size) * w.dtype.itemsize for w in weights)

    def nbytes(shape, dt):
        return int(math.prod(shape)) * jnp.dtype(dt).itemsize

    resident_need = (weight_bytes
                     + nbytes((HW, C), bf16)            # feat, single-buffered
                     + 2 * nbytes((N, HW), bf16)        # mask logits in
                     + 2 * nbytes((N, C), f32)          # kernels in
                     + 2 * nbytes((N, HW), f32)         # refined mask out
                     + 2 * nbytes((N, pad_nc), f32)     # cls out
                     + 2 * nbytes((N, C), f32))         # refined kernels out
    use_resident = (not force_tiled) and resident_need <= int(0.70 * vmem_cap)

    if use_resident:
        # --- single fused call; feature map read from HBM exactly once ---
        in_specs = ([_batch_spec((N, HW), 1),
                     _batch_spec((HW, C), 1, buffer_count=1),
                     _batch_spec((N, C), 1)]
                    + _weight_specs(weights, 1))
        out_specs = (_batch_spec((N, HW), 1), _batch_spec((N, pad_nc), 1),
                     _batch_spec((N, C), 1))
        out_shape = (jax.ShapeDtypeStruct((B, N, HW), f32),
                     jax.ShapeDtypeStruct((B, N, pad_nc), f32),
                     jax.ShapeDtypeStruct((B, N, C), f32))
        mask_full, cls_pad, refined = pl.pallas_call(
            functools.partial(_fused_kernel, num_heads=num_heads,
                              normalize=normalize_sigmoid_masks),
            grid=(B,),
            in_specs=in_specs, out_specs=out_specs, out_shape=out_shape,
            compiler_params=pltpu.CompilerParams(
                dimension_semantics=("parallel",),
                vmem_limit_bytes=_vmem_limit(resident_need, vmem_cap)),
        )(mask_flat, feat_hwc, kern_in, *weights)
    else:
        # --- 2-pass HW-tiled path: VMEM bounded independent of resolution ---
        thw = max(128, (min(hw_tile, max(HW, 128)) // 128) * 128)
        T = -(-HW // thw)
        HWp = T * thw
        if HWp != HW:
            # pad mask logits with a large negative so sigmoid(pad) == 0 and the
            # padded pixels contribute nothing to the GFA sums.
            mask_t = jnp.pad(mask_flat, ((0, 0), (0, 0), (0, HWp - HW)),
                             constant_values=-30000.0)
            feat_t = jnp.pad(feat_hwc, ((0, 0), (0, HWp - HW), (0, 0)))
        else:
            mask_t, feat_t = mask_flat, feat_hwc

        pass1_need = (weight_bytes
                      + 2 * nbytes((N, thw), bf16) + 2 * nbytes((thw, C), bf16)
                      + 2 * nbytes((N, C), f32)
                      + 2 * (2 * nbytes((N, C), f32) + nbytes((N, pad_nc), f32))
                      + nbytes((N, C), f32) + nbytes((N, 1), f32))
        in_specs = ([_block_spec((None, N, thw), lambda b, t: (b, 0, t)),
                     _block_spec((None, thw, C), lambda b, t: (b, t, 0)),
                     _block_spec((None, N, C), lambda b, t: (b, 0, 0))]
                    + _weight_specs(weights, 2))
        out_specs = (_block_spec((None, N, C), lambda b, t: (b, 0, 0)),
                     _block_spec((None, N, pad_nc), lambda b, t: (b, 0, 0)),
                     _block_spec((None, N, C), lambda b, t: (b, 0, 0)))
        out_shape = (jax.ShapeDtypeStruct((B, N, C), f32),
                     jax.ShapeDtypeStruct((B, N, pad_nc), f32),
                     jax.ShapeDtypeStruct((B, N, C), f32))
        m_dyn, cls_pad, refined = pl.pallas_call(
            functools.partial(_gfa_update_kernel, num_heads=num_heads,
                              normalize=normalize_sigmoid_masks),
            grid=(B, T),
            in_specs=in_specs, out_specs=out_specs, out_shape=out_shape,
            scratch_shapes=[pltpu.VMEM((N, C), f32), pltpu.VMEM((N, 1), f32)],
            compiler_params=pltpu.CompilerParams(
                dimension_semantics=("parallel", "arbitrary"),
                vmem_limit_bytes=_vmem_limit(pass1_need, vmem_cap)),
        )(mask_t, feat_t, kern_in, *weights)

        pass2_need = (2 * nbytes((N, C), bf16) + 2 * nbytes((thw, C), bf16)
                      + 2 * nbytes((N, thw), f32))
        mask_pad_out = pl.pallas_call(
            _mask_pred_kernel,
            grid=(B, T),
            in_specs=[_block_spec((None, N, C), lambda b, t: (b, 0, 0)),
                      _block_spec((None, thw, C), lambda b, t: (b, t, 0))],
            out_specs=_block_spec((None, N, thw), lambda b, t: (b, 0, t)),
            out_shape=jax.ShapeDtypeStruct((B, N, HWp), f32),
            compiler_params=pltpu.CompilerParams(
                dimension_semantics=("parallel", "parallel"),
                vmem_limit_bytes=_vmem_limit(pass2_need, vmem_cap)),
        )(m_dyn.astype(bf16), feat_t)
        mask_full = mask_pad_out[:, :, :HW]

    refined_mask_pred = mask_full.reshape(B, N, H, W)
    cls_score = cls_pad[:, :, :num_classes]
    refined_kernels = refined.reshape(B, N, C, 1, 1)
    return refined_kernels, refined_mask_pred, cls_score


# ----------------------------------------------------------------------------
# Deterministic synthetic parameter init
# ----------------------------------------------------------------------------

def _xavier_uniform(key, fan_in, fan_out):
    bound = math.sqrt(6.0 / (fan_in + fan_out))
    return jax.random.uniform(key, (fan_in, fan_out), jnp.float32, -bound, bound)


def init_params(key, in_channels, out_channels, num_classes, ffn_dim):
    C = in_channels
    keys = iter(jax.random.split(key, 16))
    xu = lambda fi, fo: _xavier_uniform(next(keys), fi, fo)
    zeros = lambda n: jnp.zeros((1, n), jnp.float32)
    ones = lambda n: jnp.ones((1, n), jnp.float32)

    aku = dict(
        dyn_w=xu(C, 2 * C), dyn_b=zeros(2 * C),
        inp_w=xu(C, 2 * C), inp_b=zeros(2 * C),
        ig_w=xu(C, C), ig_b=zeros(C), ln_ig_g=ones(C), ln_ig_b=zeros(C),
        ug_w=xu(C, C), ug_b=zeros(C), ln_ug_g=ones(C), ln_ug_b=zeros(C),
        ln_po_g=ones(C), ln_po_b=zeros(C),
        ln_io_g=ones(C), ln_io_b=zeros(C),
        fc_w=xu(C, C), fc_b=zeros(C), ln_fc_g=ones(C), ln_fc_b=zeros(C),
    )
    ki = dict(
        attn_in_w=xu(C, 3 * C), attn_in_b=zeros(3 * C),
        attn_out_w=xu(C, C), attn_out_b=zeros(C),
        attn_ln_g=ones(C), attn_ln_b=zeros(C),
        ffn_w1=xu(C, ffn_dim), ffn_b1=zeros(ffn_dim),
        ffn_w2=xu(ffn_dim, C), ffn_b2=zeros(C),
        ffn_ln_g=ones(C), ffn_ln_b=zeros(C),
    )
    bias_cls = -math.log((1.0 - 0.01) / 0.01)   # bias_init_with_prob(0.01)
    return dict(
        aku=aku, ki=ki,
        fc_mask_w1=xu(C, C), fc_mask_ln_g=ones(C), fc_mask_ln_b=zeros(C),
        fc_mask_w2=xu(C, out_channels), fc_mask_b2=zeros(out_channels),
        fc_cls_w1=xu(C, C), fc_cls_ln_g=ones(C), fc_cls_ln_b=zeros(C),
        fc_cls_w2=xu(C, num_classes),
        fc_cls_b2=jnp.full((1, num_classes), bias_cls, jnp.float32),
    )


# ----------------------------------------------------------------------------
# Main
# ----------------------------------------------------------------------------

if __name__ == "__main__":
    B, N = 2, 8              # batch, number of proposals / dynamic kernels
    C = 32                   # in_channels == out_channels (1x1 dynamic kernels)
    H = W = 16
    num_classes = 16
    num_heads = 8
    ffn_dim = 2 * C

    key = jax.random.PRNGKey(0)
    k_param, k_feat, k_kern, k_mask = jax.random.split(key, 4)

    params = init_params(k_param, C, C, num_classes, ffn_dim)

    feature_map = jax.random.normal(k_feat, (B, C, H, W), jnp.float32)   # NCHW
    kernels = jax.random.normal(k_kern, (B, N, C, 1, 1), jnp.float32)
    mask_pred = jax.random.normal(k_mask, (B, N, H, W), jnp.float32)

    # Resident (fully fused) path -- auto-selected at these tiny shapes.
    fwd = jax.jit(functools.partial(
        panoptic_kernel_update_head, num_heads=num_heads,
        normalize_sigmoid_masks=True))
    rk, rm, cs = fwd(params, feature_map, kernels, mask_pred)
    jax.block_until_ready((rk, rm, cs))

    # Production 2-pass HW-tiled path (forced with a small tile) -- validates
    # the resolution-bounded streaming code path on the same inputs.
    fwd_tiled = jax.jit(functools.partial(
        panoptic_kernel_update_head, num_heads=num_heads,
        normalize_sigmoid_masks=True, force_tiled=True, hw_tile=128))
    rk2, rm2, cs2 = fwd_tiled(params, feature_map, kernels, mask_pred)
    jax.block_until_ready((rk2, rm2, cs2))

    assert rk.shape == (B, N, C, 1, 1)
    assert rm.shape == (B, N, H, W)
    assert cs.shape == (B, N, num_classes)
    assert rk2.shape == rk.shape and rm2.shape == rm.shape and cs2.shape == cs.shape
    for t in (rk, rm, cs, rk2, rm2, cs2):
        assert bool(jnp.all(jnp.isfinite(t)))
    # Both paths compute the same math (only f32 accumulation order differs).
    for a, b in ((rk, rk2), (rm, rm2), (cs, cs2)):
        assert bool(jnp.all(jnp.abs(a - b) <= 5e-2 + 5e-2 * jnp.abs(b)))
    print("KERNEL_OK")
</pallas_src>

<mosaic_0001>
module attributes {stable_mosaic.version = 11 : i64} {
  func.func @_fused_kernel(%arg0: i32, %arg1: memref<1x8x256xbf16, #tpu.memory_space<vmem>>, %arg2: memref<1x256x32xbf16, #tpu.memory_space<vmem>>, %arg3: memref<1x8x32xf32, #tpu.memory_space<vmem>>, %arg4: memref<32x64xbf16, #tpu.memory_space<vmem>>, %arg5: memref<32x64xbf16, #tpu.memory_space<vmem>>, %arg6: memref<32x64xbf16, #tpu.memory_space<vmem>>, %arg7: memref<32x32xbf16, #tpu.memory_space<vmem>>, %arg8: memref<32x96xbf16, #tpu.memory_space<vmem>>, %arg9: memref<32x32xbf16, #tpu.memory_space<vmem>>, %arg10: memref<32x64xbf16, #tpu.memory_space<vmem>>, %arg11: memref<64x32xbf16, #tpu.memory_space<vmem>>, %arg12: memref<32x32xbf16, #tpu.memory_space<vmem>>, %arg13: memref<32x32xbf16, #tpu.memory_space<vmem>>, %arg14: memref<32x32xbf16, #tpu.memory_space<vmem>>, %arg15: memref<32x128xbf16, #tpu.memory_space<vmem>>, %arg16: memref<21x32xf32, #tpu.memory_space<vmem>>, %arg17: memref<1x64xf32, #tpu.memory_space<vmem>>, %arg18: memref<1x64xf32, #tpu.memory_space<vmem>>, %arg19: memref<1x64xf32, #tpu.memory_space<vmem>>, %arg20: memref<1x96xf32, #tpu.memory_space<vmem>>, %arg21: memref<1x64xf32, #tpu.memory_space<vmem>>, %arg22: memref<1x32xf32, #tpu.memory_space<vmem>>, %arg23: memref<1x128xf32, #tpu.memory_space<vmem>>, %arg24: memref<1x8x256xf32, #tpu.memory_space<vmem>>, %arg25: memref<1x8x128xf32, #tpu.memory_space<vmem>>, %arg26: memref<1x8x32xf32, #tpu.memory_space<vmem>>) attributes {dimension_semantics = [#tpu.dimension_semantics<parallel>], iteration_bounds = array<i64: 2>, scalar_prefetch = 0 : i64, scratch_operands = 0 : i64, tpu.core_type = #tpu.core_type<tc>, window_params = [{transform_indices = @transform_0, window_bounds = array<i64: 1, 8, 256>}, {pipeline_mode = #tpu.pipeline_mode<synchronous>, transform_indices = @transform_1, window_bounds = array<i64: 1, 256, 32>}, {transform_indices = @transform_2, window_bounds = array<i64: 1, 8, 32>}, {pipeline_mode = #tpu.pipeline_mode<synchronous>, transform_indices = @transform_3, window_bounds = array<i64: 32, 64>}, {pipeline_mode = #tpu.pipeline_mode<synchronous>, transform_indices = @transform_4, window_bounds = array<i64: 32, 64>}, {pipeline_mode = #tpu.pipeline_mode<synchronous>, transform_indices = @transform_5, window_bounds = array<i64: 32, 64>}, {pipeline_mode = #tpu.pipeline_mode<synchronous>, transform_indices = @transform_6, window_bounds = array<i64: 32, 32>}, {pipeline_mode = #tpu.pipeline_mode<synchronous>, transform_indices = @transform_7, window_bounds = array<i64: 32, 96>}, {pipeline_mode = #tpu.pipeline_mode<synchronous>, transform_indices = @transform_8, window_bounds = array<i64: 32, 32>}, {pipeline_mode = #tpu.pipeline_mode<synchronous>, transform_indices = @transform_9, window_bounds = array<i64: 32, 64>}, {pipeline_mode = #tpu.pipeline_mode<synchronous>, transform_indices = @transform_10, window_bounds = array<i64: 64, 32>}, {pipeline_mode = #tpu.pipeline_mode<synchronous>, transform_indices = @transform_11, window_bounds = array<i64: 32, 32>}, {pipeline_mode = #tpu.pipeline_mode<synchronous>, transform_indices = @transform_12, window_bounds = array<i64: 32, 32>}, {pipeline_mode = #tpu.pipeline_mode<synchronous>, transform_indices = @transform_13, window_bounds = array<i64: 32, 32>}, {pipeline_mode = #tpu.pipeline_mode<synchronous>, transform_indices = @transform_14, window_bounds = array<i64: 32, 128>}, {pipeline_mode = #tpu.pipeline_mode<synchronous>, transform_indices = @transform_15, window_bounds = array<i64: 21, 32>}, {pipeline_mode = #tpu.pipeline_mode<synchronous>, transform_indices = @transform_16, window_bounds = array<i64: 1, 64>}, {pipeline_mode = #tpu.pipeline_mode<synchronous>, transform_indices = @transform_17, window_bounds = array<i64: 1, 64>}, {pipeline_mode = #tpu.pipeline_mode<synchronous>, transform_indices = @transform_18, window_bounds = array<i64: 1, 64>}, {pipeline_mode = #tpu.pipeline_mode<synchronous>, transform_indices = @transform_19, window_bounds = array<i64: 1, 96>}, {pipeline_mode = #tpu.pipeline_mode<synchronous>, transform_indices = @transform_20, window_bounds = array<i64: 1, 64>}, {pipeline_mode = #tpu.pipeline_mode<synchronous>, transform_indices = @transform_21, window_bounds = array<i64: 1, 32>}, {pipeline_mode = #tpu.pipeline_mode<synchronous>, transform_indices = @transform_22, window_bounds = array<i64: 1, 128>}, {transform_indices = @transform_23, window_bounds = array<i64: 1, 8, 256>}, {transform_indices = @transform_24, window_bounds = array<i64: 1, 8, 128>}, {transform_indices = @transform_25, window_bounds = array<i64: 1, 8, 32>}]} {
    %c0 = arith.constant 0 : index
    %c0_0 = arith.constant 0 : index
    %c0_1 = arith.constant 0 : index
    %0 = vector.load %arg2[%c0, %c0_0, %c0_1] : memref<1x256x32xbf16, #tpu.memory_space<vmem>>, vector<1x256x32xbf16>
    %1 = vector.shape_cast %0 : vector<1x256x32xbf16> to vector<256x32xbf16>
    %c0_2 = arith.constant 0 : index
    %c0_3 = arith.constant 0 : index
    %c0_4 = arith.constant 0 : index
    %2 = vector.load %arg3[%c0_2, %c0_3, %c0_4] : memref<1x8x32xf32, #tpu.memory_space<vmem>>, vector<1x8x32xf32>
    %3 = vector.shape_cast %2 : vector<1x8x32xf32> to vector<8x32xf32>
    %c0_5 = arith.constant 0 : index
    %c0_6 = arith.constant 0 : index
    %c0_7 = arith.constant 0 : index
    %4 = vector.load %arg1[%c0_5, %c0_6, %c0_7] : memref<1x8x256xbf16, #tpu.memory_space<vmem>>, vector<1x8x256xbf16>
    %5 = vector.shape_cast %4 : vector<1x8x256xbf16> to vector<8x256xbf16>
    %6 = arith.extf %5 : vector<8x256xbf16> to vector<8x256xf32>
    %7 = arith.negf %6 : vector<8x256xf32>
    %8 = math.exp %7 : vector<8x256xf32>
    %cst = arith.constant 1.000000e+00 : f32
    %9 = vector.broadcast %cst : f32 to vector<8x256xf32>
    %10 = arith.addf %9, %8 : vector<8x256xf32>
    %11 = arith.divf %9, %10 : vector<8x256xf32>
    %12 = arith.truncf %11 : vector<8x256xf32> to vector<8x256xbf16>
    %cst_8 = arith.constant dense<0.000000e+00> : vector<8x32xf32>
    %13 = tpu.matmul %12, %1, %cst_8 {dimension_numbers = #tpu.dot_dimension_numbers<[1], [0], [0], [1], [0, 0, 1, 1], [], []>} : vector<8x256xbf16>, vector<256x32xbf16>, vector<8x32xf32> -> vector<8x32xf32>
    %cst_9 = arith.constant dense<0.000000e+00> : vector<8xf32>
    %14 = vector.multi_reduction <add>, %11, %cst_9 [1] : vector<8x256xf32> to vector<8xf32>
    %15 = vector.shape_cast %14 : vector<8xf32> to vector<8x1xf32>
    %cst_10 = arith.constant 9.99999993E-9 : f32
    %16 = vector.broadcast %cst_10 : f32 to vector<8x1xf32>
    %17 = arith.addf %15, %16 : vector<8x1xf32>
    %18 = tpu.reciprocal %17 {approx = true} : vector<8x1xf32> -> vector<8x1xf32>
    %19 = vector.broadcast %18 : vector<8x1xf32> to vector<8x32xf32>
    %20 = arith.mulf %13, %19 : vector<8x32xf32>
    %c0_11 = arith.constant 0 : index
    %c0_12 = arith.constant 0 : index
    %21 = vector.load %arg16[%c0_11, %c0_12] : memref<21x32xf32, #tpu.memory_space<vmem>>, vector<21x32xf32>
    %c0_13 = arith.constant 0 : index
    %c0_14 = arith.constant 0 : index
    %22 = vector.load %arg17[%c0_13, %c0_14] : memref<1x64xf32, #tpu.memory_space<vmem>>, vector<1x64xf32>
    %23 = arith.truncf %20 : vector<8x32xf32> to vector<8x32xbf16>
    %c0_15 = arith.constant 0 : index
    %c0_16 = arith.constant 0 : index
    %24 = vector.load %arg4[%c0_15, %c0_16] : memref<32x64xbf16, #tpu.memory_space<vmem>>, vector<32x64xbf16>
    %cst_17 = arith.constant dense<0.000000e+00> : vector<8x64xf32>
    %25 = tpu.matmul %23, %24, %cst_17 {dimension_numbers = #tpu.dot_dimension_numbers<[1], [0], [0], [1], [0, 0, 1, 1], [], []>} : vector<8x32xbf16>, vector<32x64xbf16>, vector<8x64xf32> -> vector<8x64xf32>
    %26 = vector.broadcast %22 : vector<1x64xf32> to vector<8x64xf32>
    %27 = arith.addf %25, %26 : vector<8x64xf32>
    %c0_18 = arith.constant 0 : index
    %c0_19 = arith.constant 0 : index
    %28 = vector.load %arg18[%c0_18, %c0_19] : memref<1x64xf32, #tpu.memory_space<vmem>>, vector<1x64xf32>
    %29 = arith.truncf %3 : vector<8x32xf32> to vector<8x32xbf16>
    %c0_20 = arith.constant 0 : index
    %c0_21 = arith.constant 0 : index
    %30 = vector.load %arg5[%c0_20, %c0_21] : memref<32x64xbf16, #tpu.memory_space<vmem>>, vector<32x64xbf16>
    %cst_22 = arith.constant dense<0.000000e+00> : vector<8x64xf32>
    %31 = tpu.matmul %29, %30, %cst_22 {dimension_numbers = #tpu.dot_dimension_numbers<[1], [0], [0], [1], [0, 0, 1, 1], [], []>} : vector<8x32xbf16>, vector<32x64xbf16>, vector<8x64xf32> -> vector<8x64xf32>
    %32 = vector.broadcast %28 : vector<1x64xf32> to vector<8x64xf32>
    %33 = arith.addf %31, %32 : vector<8x64xf32>
    %34 = vector.extract_strided_slice %27 {offsets = [0, 0], sizes = [8, 32], strides = [1, 1]} : vector<8x64xf32> to vector<8x32xf32>
    %35 = vector.extract_strided_slice %27 {offsets = [0, 32], sizes = [8, 32], strides = [1, 1]} : vector<8x64xf32> to vector<8x32xf32>
    %36 = vector.extract_strided_slice %33 {offsets = [0, 0], sizes = [8, 32], strides = [1, 1]} : vector<8x64xf32> to vector<8x32xf32>
    %37 = vector.extract_strided_slice %33 {offsets = [0, 32], sizes = [8, 32], strides = [1, 1]} : vector<8x64xf32> to vector<8x32xf32>
    %38 = arith.mulf %36, %34 : vector<8x32xf32>
    %c0_23 = arith.constant 0 : index
    %c0_24 = arith.constant 0 : index
    %39 = vector.load %arg19[%c0_23, %c0_24] : memref<1x64xf32, #tpu.memory_space<vmem>>, vector<1x64xf32>
    %40 = arith.truncf %38 : vector<8x32xf32> to vector<8x32xbf16>
    %c0_25 = arith.constant 0 : index
    %c0_26 = arith.constant 0 : index
    %41 = vector.load %arg6[%c0_25, %c0_26] : memref<32x64xbf16, #tpu.memory_space<vmem>>, vector<32x64xbf16>
    %cst_27 = arith.constant dense<0.000000e+00> : vector<8x64xf32>
    %42 = tpu.matmul %40, %41, %cst_27 {dimension_numbers = #tpu.dot_dimension_numbers<[1], [0], [0], [1], [0, 0, 1, 1], [], []>} : vector<8x32xbf16>, vector<32x64xbf16>, vector<8x64xf32> -> vector<8x64xf32>
    %43 = vector.broadcast %39 : vector<1x64xf32> to vector<8x64xf32>
    %44 = arith.addf %42, %43 : vector<8x64xf32>
    %45 = vector.extract_strided_slice %44 {offsets = [0, 0], sizes = [8, 32], strides = [1, 1]} : vector<8x64xf32> to vector<8x32xf32>
    %46 = vector.extract_strided_slice %21 {offsets = [0, 0], sizes = [1, 32], strides = [1, 1]} : vector<21x32xf32> to vector<1x32xf32>
    %47 = vector.extract_strided_slice %21 {offsets = [1, 0], sizes = [1, 32], strides = [1, 1]} : vector<21x32xf32> to vector<1x32xf32>
    %cst_28 = arith.constant dense<0.000000e+00> : vector<8xf32>
    %48 = vector.multi_reduction <add>, %45, %cst_28 [1] : vector<8x32xf32> to vector<8xf32>
    %49 = vector.shape_cast %48 : vector<8xf32> to vector<8x1xf32>
    %cst_29 = arith.constant 3.200000e+01 : f32
    %50 = vector.broadcast %cst_29 : f32 to vector<8x1xf32>
    %51 = arith.divf %49, %50 : vector<8x1xf32>
    %52 = vector.broadcast %51 : vector<8x1xf32> to vector<8x32xf32>
    %53 = arith.subf %45, %52 : vector<8x32xf32>
    %54 = arith.mulf %53, %53 : vector<8x32xf32>
    %cst_30 = arith.constant dense<0.000000e+00> : vector<8xf32>
    %55 = vector.multi_reduction <add>, %54, %cst_30 [1] : vector<8x32xf32> to vector<8xf32>
    %56 = vector.shape_cast %55 : vector<8xf32> to vector<8x1xf32>
    %cst_31 = arith.constant 3.200000e+01 : f32
    %57 = vector.broadcast %cst_31 : f32 to vector<8x1xf32>
    %58 = arith.divf %56, %57 : vector<8x1xf32>
    %59 = vector.broadcast %51 : vector<8x1xf32> to vector<8x32xf32>
    %60 = arith.subf %45, %59 : vector<8x32xf32>
    %cst_32 = arith.constant 9.99999974E-6 : f32
    %61 = vector.broadcast %cst_32 : f32 to vector<8x1xf32>
    %62 = arith.addf %58, %61 : vector<8x1xf32>
    %63 = math.rsqrt %62 : vector<8x1xf32>
    %64 = vector.broadcast %63 : vector<8x1xf32> to vector<8x32xf32>
    %65 = arith.mulf %60, %64 : vector<8x32xf32>
    %66 = vector.broadcast %46 : vector<1x32xf32> to vector<8x32xf32>
    %67 = arith.mulf %65, %66 : vector<8x32xf32>
    %68 = vector.broadcast %47 : vector<1x32xf32> to vector<8x32xf32>
    %69 = arith.addf %67, %68 : vector<8x32xf32>
    %70 = arith.negf %69 : vector<8x32xf32>
    %71 = math.exp %70 : vector<8x32xf32>
    %cst_33 = arith.constant 1.000000e+00 : f32
    %72 = vector.broadcast %cst_33 : f32 to vector<8x32xf32>
    %73 = arith.addf %72, %71 : vector<8x32xf32>
    %74 = arith.divf %72, %73 : vector<8x32xf32>
    %75 = vector.extract_strided_slice %44 {offsets = [0, 32], sizes = [8, 32], strides = [1, 1]} : vector<8x64xf32> to vector<8x32xf32>
    %76 = vector.extract_strided_slice %21 {offsets = [2, 0], sizes = [1, 32], strides = [1, 1]} : vector<21x32xf32> to vector<1x32xf32>
    %77 = vector.extract_strided_slice %21 {offsets = [3, 0], sizes = [1, 32], strides = [1, 1]} : vector<21x32xf32> to vector<1x32xf32>
    %cst_34 = arith.constant dense<0.000000e+00> : vector<8xf32>
    %78 = vector.multi_reduction <add>, %75, %cst_34 [1] : vector<8x32xf32> to vector<8xf32>
    %79 = vector.shape_cast %78 : vector<8xf32> to vector<8x1xf32>
    %cst_35 = arith.constant 3.200000e+01 : f32
    %80 = vector.broadcast %cst_35 : f32 to vector<8x1xf32>
    %81 = arith.divf %79, %80 : vector<8x1xf32>
    %82 = vector.broadcast %81 : vector<8x1xf32> to vector<8x32xf32>
    %83 = arith.subf %75, %82 : vector<8x32xf32>
    %84 = arith.mulf %83, %83 : vector<8x32xf32>
    %cst_36 = arith.constant dense<0.000000e+00> : vector<8xf32>
    %85 = vector.multi_reduction <add>, %84, %cst_36 [1] : vector<8x32xf32> to vector<8xf32>
    %86 = vector.shape_cast %85 : vector<8xf32> to vector<8x1xf32>
    %cst_37 = arith.constant 3.200000e+01 : f32
    %87 = vector.broadcast %cst_37 : f32 to vector<8x1xf32>
    %88 = arith.divf %86, %87 : vector<8x1xf32>
    %89 = vector.broadcast %81 : vector<8x1xf32> to vector<8x32xf32>
    %90 = arith.subf %75, %89 : vector<8x32xf32>
    %cst_38 = arith.constant 9.99999974E-6 : f32
    %91 = vector.broadcast %cst_38 : f32 to vector<8x1xf32>
    %92 = arith.addf %88, %91 : vector<8x1xf32>
    %93 = math.rsqrt %92 : vector<8x1xf32>
    %94 = vector.broadcast %93 : vector<8x1xf32> to vector<8x32xf32>
    %95 = arith.mulf %90, %94 : vector<8x32xf32>
    %96 = vector.broadcast %76 : vector<1x32xf32> to vector<8x32xf32>
    %97 = arith.mulf %95, %96 : vector<8x32xf32>
    %98 = vector.broadcast %77 : vector<1x32xf32> to vector<8x32xf32>
    %99 = arith.addf %97, %98 : vector<8x32xf32>
    %100 = arith.negf %99 : vector<8x32xf32>
    %101 = math.exp %100 : vector<8x32xf32>
    %cst_39 = arith.constant 1.000000e+00 : f32
    %102 = vector.broadcast %cst_39 : f32 to vector<8x32xf32>
    %103 = arith.addf %102, %101 : vector<8x32xf32>
    %104 = arith.divf %102, %103 : vector<8x32xf32>
    %105 = vector.extract_strided_slice %21 {offsets = [4, 0], sizes = [1, 32], strides = [1, 1]} : vector<21x32xf32> to vector<1x32xf32>
    %106 = vector.extract_strided_slice %21 {offsets = [5, 0], sizes = [1, 32], strides = [1, 1]} : vector<21x32xf32> to vector<1x32xf32>
    %cst_40 = arith.constant dense<0.000000e+00> : vector<8xf32>
    %107 = vector.multi_reduction <add>, %35, %cst_40 [1] : vector<8x32xf32> to vector<8xf32>
    %108 = vector.shape_cast %107 : vector<8xf32> to vector<8x1xf32>
    %cst_41 = arith.constant 3.200000e+01 : f32
    %109 = vector.broadcast %cst_41 : f32 to vector<8x1xf32>
    %110 = arith.divf %108, %109 : vector<8x1xf32>
    %111 = vector.broadcast %110 : vector<8x1xf32> to vector<8x32xf32>
    %112 = arith.subf %35, %111 : vector<8x32xf32>
    %113 = arith.mulf %112, %112 : vector<8x32xf32>
    %cst_42 = arith.constant dense<0.000000e+00> : vector<8xf32>
    %114 = vector.multi_reduction <add>, %113, %cst_42 [1] : vector<8x32xf32> to vector<8xf32>
    %115 = vector.shape_cast %114 : vector<8xf32> to vector<8x1xf32>
    %cst_43 = arith.constant 3.200000e+01 : f32
    %116 = vector.broadcast %cst_43 : f32 to vector<8x1xf32>
    %117 = arith.divf %115, %116 : vector<8x1xf32>
    %118 = vector.broadcast %110 : vector<8x1xf32> to vector<8x32xf32>
    %119 = arith.subf %35, %118 : vector<8x32xf32>
    %cst_44 = arith.constant 9.99999974E-6 : f32
    %120 = vector.broadcast %cst_44 : f32 to vector<8x1xf32>
    %121 = arith.addf %117, %120 : vector<8x1xf32>
    %122 = math.rsqrt %121 : vector<8x1xf32>
    %123 = vector.broadcast %122 : vector<8x1xf32> to vector<8x32xf32>
    %124 = arith.mulf %119, %123 : vector<8x32xf32>
    %125 = vector.broadcast %105 : vector<1x32xf32> to vector<8x32xf32>
    %126 = arith.mulf %124, %125 : vector<8x32xf32>
    %127 = vector.broadcast %106 : vector<1x32xf32> to vector<8x32xf32>
    %128 = arith.addf %126, %127 : vector<8x32xf32>
    %129 = vector.extract_strided_slice %21 {offsets = [6, 0], sizes = [1, 32], strides = [1, 1]} : vector<21x32xf32> to vector<1x32xf32>
    %130 = vector.extract_strided_slice %21 {offsets = [7, 0], sizes = [1, 32], strides = [1, 1]} : vector<21x32xf32> to vector<1x32xf32>
    %cst_45 = arith.constant dense<0.000000e+00> : vector<8xf32>
    %131 = vector.multi_reduction <add>, %37, %cst_45 [1] : vector<8x32xf32> to vector<8xf32>
    %132 = vector.shape_cast %131 : vector<8xf32> to vector<8x1xf32>
    %cst_46 = arith.constant 3.200000e+01 : f32
    %133 = vector.broadcast %cst_46 : f32 to vector<8x1xf32>
    %134 = arith.divf %132, %133 : vector<8x1xf32>
    %135 = vector.broadcast %134 : vector<8x1xf32> to vector<8x32xf32>
    %136 = arith.subf %37, %135 : vector<8x32xf32>
    %137 = arith.mulf %136, %136 : vector<8x32xf32>
    %cst_47 = arith.constant dense<0.000000e+00> : vector<8xf32>
    %138 = vector.multi_reduction <add>, %137, %cst_47 [1] : vector<8x32xf32> to vector<8xf32>
    %139 = vector.shape_cast %138 : vector<8xf32> to vector<8x1xf32>
    %cst_48 = arith.constant 3.200000e+01 : f32
    %140 = vector.broadcast %cst_48 : f32 to vector<8x1xf32>
    %141 = arith.divf %139, %140 : vector<8x1xf32>
    %142 = vector.broadcast %134 : vector<8x1xf32> to vector<8x32xf32>
    %143 = arith.subf %37, %142 : vector<8x32xf32>
    %cst_49 = arith.constant 9.99999974E-6 : f32
    %144 = vector.broadcast %cst_49 : f32 to vector<8x1xf32>
    %145 = arith.addf %141, %144 : vector<8x1xf32>
    %146 = math.rsqrt %145 : vector<8x1xf32>
    %147 = vector.broadcast %146 : vector<8x1xf32> to vector<8x32xf32>
    %148 = arith.mulf %143, %147 : vector<8x32xf32>
    %149 = vector.broadcast %129 : vector<1x32xf32> to vector<8x32xf32>
    %150 = arith.mulf %148, %149 : vector<8x32xf32>
    %151 = vector.broadcast %130 : vector<1x32xf32> to vector<8x32xf32>
    %152 = arith.addf %150, %151 : vector<8x32xf32>
    %153 = arith.mulf %104, %128 : vector<8x32xf32>
    %154 = arith.mulf %74, %152 : vector<8x32xf32>
    %155 = arith.addf %153, %154 : vector<8x32xf32>
    %156 = vector.extract_strided_slice %21 {offsets = [8, 0], sizes = [1, 32], strides = [1, 1]} : vector<21x32xf32> to vector<1x32xf32>
    %157 = arith.truncf %155 : vector<8x32xf32> to vector<8x32xbf16>
    %c0_50 = arith.constant 0 : index
    %c0_51 = arith.constant 0 : index
    %158 = vector.load %arg7[%c0_50, %c0_51] : memref<32x32xbf16, #tpu.memory_space<vmem>>, vector<32x32xbf16>
    %cst_52 = arith.constant dense<0.000000e+00> : vector<8x32xf32>
    %159 = tpu.matmul %157, %158, %cst_52 {dimension_numbers = #tpu.dot_dimension_numbers<[1], [0], [0], [1], [0, 0, 1, 1], [], []>} : vector<8x32xbf16>, vector<32x32xbf16>, vector<8x32xf32> -> vector<8x32xf32>
    %160 = vector.broadcast %156 : vector<1x32xf32> to vector<8x32xf32>
    %161 = arith.addf %159, %160 : vector<8x32xf32>
    %162 = vector.extract_strided_slice %21 {offsets = [9, 0], sizes = [1, 32], strides = [1, 1]} : vector<21x32xf32> to vector<1x32xf32>
    %163 = vector.extract_strided_slice %21 {offsets = [10, 0], sizes = [1, 32], strides = [1, 1]} : vector<21x32xf32> to vector<1x32xf32>
    %cst_53 = arith.constant dense<0.000000e+00> : vector<8xf32>
    %164 = vector.multi_reduction <add>, %161, %cst_53 [1] : vector<8x32xf32> to vector<8xf32>
    %165 = vector.shape_cast %164 : vector<8xf32> to vector<8x1xf32>
    %cst_54 = arith.constant 3.200000e+01 : f32
    %166 = vector.broadcast %cst_54 : f32 to vector<8x1xf32>
    %167 = arith.divf %165, %166 : vector<8x1xf32>
    %168 = vector.broadcast %167 : vector<8x1xf32> to vector<8x32xf32>
    %169 = arith.subf %161, %168 : vector<8x32xf32>
    %170 = arith.mulf %169, %169 : vector<8x32xf32>
    %cst_55 = arith.constant dense<0.000000e+00> : vector<8xf32>
    %171 = vector.multi_reduction <add>, %170, %cst_55 [1] : vector<8x32xf32> to vector<8xf32>
    %172 = vector.shape_cast %171 : vector<8xf32> to vector<8x1xf32>
    %cst_56 = arith.constant 3.200000e+01 : f32
    %173 = vector.broadcast %cst_56 : f32 to vector<8x1xf32>
    %174 = arith.divf %172, %173 : vector<8x1xf32>
    %175 = vector.broadcast %167 : vector<8x1xf32> to vector<8x32xf32>
    %176 = arith.subf %161, %175 : vector<8x32xf32>
    %cst_57 = arith.constant 9.99999974E-6 : f32
    %177 = vector.broadcast %cst_57 : f32 to vector<8x1xf32>
    %178 = arith.addf %174, %177 : vector<8x1xf32>
    %179 = math.rsqrt %178 : vector<8x1xf32>
    %180 = vector.broadcast %179 : vector<8x1xf32> to vector<8x32xf32>
    %181 = arith.mulf %176, %180 : vector<8x32xf32>
    %182 = vector.broadcast %162 : vector<1x32xf32> to vector<8x32xf32>
    %183 = arith.mulf %181, %182 : vector<8x32xf32>
    %184 = vector.broadcast %163 : vector<1x32xf32> to vector<8x32xf32>
    %185 = arith.addf %183, %184 : vector<8x32xf32>
    %cst_58 = arith.constant 0.000000e+00 : f32
    %186 = vector.broadcast %cst_58 : f32 to vector<8x32xf32>
    %187 = arith.maximumf %185, %186 : vector<8x32xf32>
    %c0_59 = arith.constant 0 : index
    %c0_60 = arith.constant 0 : index
    %188 = vector.load %arg20[%c0_59, %c0_60] : memref<1x96xf32, #tpu.memory_space<vmem>>, vector<1x96xf32>
    %189 = arith.truncf %187 : vector<8x32xf32> to vector<8x32xbf16>
    %c0_61 = arith.constant 0 : index
    %c0_62 = arith.constant 0 : index
    %190 = vector.load %arg8[%c0_61, %c0_62] : memref<32x96xbf16, #tpu.memory_space<vmem>>, vector<32x96xbf16>
    %cst_63 = arith.constant dense<0.000000e+00> : vector<8x96xf32>
    %191 = tpu.matmul %189, %190, %cst_63 {dimension_numbers = #tpu.dot_dimension_numbers<[1], [0], [0], [1], [0, 0, 1, 1], [], []>} : vector<8x32xbf16>, vector<32x96xbf16>, vector<8x96xf32> -> vector<8x96xf32>
    %192 = vector.broadcast %188 : vector<1x96xf32> to vector<8x96xf32>
    %193 = arith.addf %191, %192 : vector<8x96xf32>
    %194 = vector.extract_strided_slice %193 {offsets = [0, 0], sizes = [8, 32], strides = [1, 1]} : vector<8x96xf32> to vector<8x32xf32>
    %195 = vector.extract_strided_slice %193 {offsets = [0, 32], sizes = [8, 32], strides = [1, 1]} : vector<8x96xf32> to vector<8x32xf32>
    %196 = vector.extract_strided_slice %193 {offsets = [0, 64], sizes = [8, 32], strides = [1, 1]} : vector<8x96xf32> to vector<8x32xf32>
    %197 = vector.extract_strided_slice %194 {offsets = [0, 0], sizes = [8, 4], strides = [1, 1]} : vector<8x32xf32> to vector<8x4xf32>
    %198 = arith.truncf %197 : vector<8x4xf32> to vector<8x4xbf16>
    %199 = vector.extract_strided_slice %195 {offsets = [0, 0], sizes = [8, 4], strides = [1, 1]} : vector<8x32xf32> to vector<8x4xf32>
    %200 = arith.truncf %199 : vector<8x4xf32> to vector<8x4xbf16>
    %201 = vector.extract_strided_slice %196 {offsets = [0, 0], sizes = [8, 4], strides = [1, 1]} : vector<8x32xf32> to vector<8x4xf32>
    %202 = arith.truncf %201 : vector<8x4xf32> to vector<8x4xbf16>
    %cst_64 = arith.constant dense<0.000000e+00> : vector<8x8xf32>
    %203 = tpu.matmul %198, %200, %cst_64 {dimension_numbers = #tpu.dot_dimension_numbers<[1], [1], [0], [0], [0, 0, 1, 0], [], []>} : vector<8x4xbf16>, vector<8x4xbf16>, vector<8x8xf32> -> vector<8x8xf32>
    %cst_65 = arith.constant 5.000000e-01 : f32
    %204 = vector.broadcast %cst_65 : f32 to vector<8x8xf32>
    %205 = arith.mulf %203, %204 : vector<8x8xf32>
    %cst_66 = arith.constant dense<0xFF800000> : vector<8xf32>
    %206 = vector.multi_reduction <maximumf>, %205, %cst_66 [1] : vector<8x8xf32> to vector<8xf32>
    %207 = vector.shape_cast %206 : vector<8xf32> to vector<8x1xf32>
    %208 = vector.broadcast %207 : vector<8x1xf32> to vector<8x8xf32>
    %209 = arith.subf %205, %208 : vector<8x8xf32>
    %210 = math.exp %209 : vector<8x8xf32>
    %cst_67 = arith.constant dense<0.000000e+00> : vector<8xf32>
    %211 = vector.multi_reduction <add>, %210, %cst_67 [1] : vector<8x8xf32> to vector<8xf32>
    %212 = vector.shape_cast %211 : vector<8xf32> to vector<8x1xf32>
    %213 = tpu.reciprocal %212 {approx = true} : vector<8x1xf32> -> vector<8x1xf32>
    %214 = vector.broadcast %213 : vector<8x1xf32> to vector<8x8xf32>
    %215 = arith.mulf %210, %214 : vector<8x8xf32>
    %216 = arith.truncf %215 : vector<8x8xf32> to vector<8x8xbf16>
    %cst_68 = arith.constant dense<0.000000e+00> : vector<8x4xf32>
    %217 = tpu.matmul %216, %202, %cst_68 {dimension_numbers = #tpu.dot_dimension_numbers<[1], [0], [0], [1], [0, 0, 1, 1], [], []>} : vector<8x8xbf16>, vector<8x4xbf16>, vector<8x4xf32> -> vector<8x4xf32>
    %218 = vector.extract_strided_slice %194 {offsets = [0, 4], sizes = [8, 4], strides = [1, 1]} : vector<8x32xf32> to vector<8x4xf32>
    %219 = arith.truncf %218 : vector<8x4xf32> to vector<8x4xbf16>
    %220 = vector.extract_strided_slice %195 {offsets = [0, 4], sizes = [8, 4], strides = [1, 1]} : vector<8x32xf32> to vector<8x4xf32>
    %221 = arith.truncf %220 : vector<8x4xf32> to vector<8x4xbf16>
    %222 = vector.extract_strided_slice %196 {offsets = [0, 4], sizes = [8, 4], strides = [1, 1]} : vector<8x32xf32> to vector<8x4xf32>
    %223 = arith.truncf %222 : vector<8x4xf32> to vector<8x4xbf16>
    %cst_69 = arith.constant dense<0.000000e+00> : vector<8x8xf32>
    %224 = tpu.matmul %219, %221, %cst_69 {dimension_numbers = #tpu.dot_dimension_numbers<[1], [1], [0], [0], [0, 0, 1, 0], [], []>} : vector<8x4xbf16>, vector<8x4xbf16>, vector<8x8xf32> -> vector<8x8xf32>
    %cst_70 = arith.constant 5.000000e-01 : f32
    %225 = vector.broadcast %cst_70 : f32 to vector<8x8xf32>
    %226 = arith.mulf %224, %225 : vector<8x8xf32>
    %cst_71 = arith.constant dense<0xFF800000> : vector<8xf32>
    %227 = vector.multi_reduction <maximumf>, %226, %cst_71 [1] : vector<8x8xf32> to vector<8xf32>
    %228 = vector.shape_cast %227 : vector<8xf32> to vector<8x1xf32>
    %229 = vector.broadcast %228 : vector<8x1xf32> to vector<8x8xf32>
    %230 = arith.subf %226, %229 : vector<8x8xf32>
    %231 = math.exp %230 : vector<8x8xf32>
    %cst_72 = arith.constant dense<0.000000e+00> : vector<8xf32>
    %232 = vector.multi_reduction <add>, %231, %cst_72 [1] : vector<8x8xf32> to vector<8xf32>
    %233 = vector.shape_cast %232 : vector<8xf32> to vector<8x1xf32>
    %234 = tpu.reciprocal %233 {approx = true} : vector<8x1xf32> -> vector<8x1xf32>
    %235 = vector.broadcast %234 : vector<8x1xf32> to vector<8x8xf32>
    %236 = arith.mulf %231, %235 : vector<8x8xf32>
    %237 = arith.truncf %236 : vector<8x8xf32> to vector<8x8xbf16>
    %cst_73 = arith.constant dense<0.000000e+00> : vector<8x4xf32>
    %238 = tpu.matmul %237, %223, %cst_73 {dimension_numbers = #tpu.dot_dimension_numbers<[1], [0], [0], [1], [0, 0, 1, 1], [], []>} : vector<8x8xbf16>, vector<8x4xbf16>, vector<8x4xf32> -> vector<8x4xf32>
    %239 = vector.extract_strided_slice %194 {offsets = [0, 8], sizes = [8, 4], strides = [1, 1]} : vector<8x32xf32> to vector<8x4xf32>
    %240 = arith.truncf %239 : vector<8x4xf32> to vector<8x4xbf16>
    %241 = vector.extract_strided_slice %195 {offsets = [0, 8], sizes = [8, 4], strides = [1, 1]} : vector<8x32xf32> to vector<8x4xf32>
    %242 = arith.truncf %241 : vector<8x4xf32> to vector<8x4xbf16>
    %243 = vector.extract_strided_slice %196 {offsets = [0, 8], sizes = [8, 4], strides = [1, 1]} : vector<8x32xf32> to vector<8x4xf32>
    %244 = arith.truncf %243 : vector<8x4xf32> to vector<8x4xbf16>
    %cst_74 = arith.constant dense<0.000000e+00> : vector<8x8xf32>
    %245 = tpu.matmul %240, %242, %cst_74 {dimension_numbers = #tpu.dot_dimension_numbers<[1], [1], [0], [0], [0, 0, 1, 0], [], []>} : vector<8x4xbf16>, vector<8x4xbf16>, vector<8x8xf32> -> vector<8x8xf32>
    %cst_75 = arith.constant 5.000000e-01 : f32
    %246 = vector.broadcast %cst_75 : f32 to vector<8x8xf32>
    %247 = arith.mulf %245, %246 : vector<8x8xf32>
    %cst_76 = arith.constant dense<0xFF800000> : vector<8xf32>
    %248 = vector.multi_reduction <maximumf>, %247, %cst_76 [1] : vector<8x8xf32> to vector<8xf32>
    %249 = vector.shape_cast %248 : vector<8xf32> to vector<8x1xf32>
    %250 = vector.broadcast %249 : vector<8x1xf32> to vector<8x8xf32>
    %251 = arith.subf %247, %250 : vector<8x8xf32>
    %252 = math.exp %251 : vector<8x8xf32>
    %cst_77 = arith.constant dense<0.000000e+00> : vector<8xf32>
    %253 = vector.multi_reduction <add>, %252, %cst_77 [1] : vector<8x8xf32> to vector<8xf32>
    %254 = vector.shape_cast %253 : vector<8xf32> to vector<8x1xf32>
    %255 = tpu.reciprocal %254 {approx = true} : vector<8x1xf32> -> vector<8x1xf32>
    %256 = vector.broadcast %255 : vector<8x1xf32> to vector<8x8xf32>
    %257 = arith.mulf %252, %256 : vector<8x8xf32>
    %258 = arith.truncf %257 : vector<8x8xf32> to vector<8x8xbf16>
    %cst_78 = arith.constant dense<0.000000e+00> : vector<8x4xf32>
    %259 = tpu.matmul %258, %244, %cst_78 {dimension_numbers = #tpu.dot_dimension_numbers<[1], [0], [0], [1], [0, 0, 1, 1], [], []>} : vector<8x8xbf16>, vector<8x4xbf16>, vector<8x4xf32> -> vector<8x4xf32>
    %260 = vector.extract_strided_slice %194 {offsets = [0, 12], sizes = [8, 4], strides = [1, 1]} : vector<8x32xf32> to vector<8x4xf32>
    %261 = arith.truncf %260 : vector<8x4xf32> to vector<8x4xbf16>
    %262 = vector.extract_strided_slice %195 {offsets = [0, 12], sizes = [8, 4], strides = [1, 1]} : vector<8x32xf32> to vector<8x4xf32>
    %263 = arith.truncf %262 : vector<8x4xf32> to vector<8x4xbf16>
    %264 = vector.extract_strided_slice %196 {offsets = [0, 12], sizes = [8, 4], strides = [1, 1]} : vector<8x32xf32> to vector<8x4xf32>
    %265 = arith.truncf %264 : vector<8x4xf32> to vector<8x4xbf16>
    %cst_79 = arith.constant dense<0.000000e+00> : vector<8x8xf32>
    %266 = tpu.matmul %261, %263, %cst_79 {dimension_numbers = #tpu.dot_dimension_numbers<[1], [1], [0], [0], [0, 0, 1, 0], [], []>} : vector<8x4xbf16>, vector<8x4xbf16>, vector<8x8xf32> -> vector<8x8xf32>
    %cst_80 = arith.constant 5.000000e-01 : f32
    %267 = vector.broadcast %cst_80 : f32 to vector<8x8xf32>
    %268 = arith.mulf %266, %267 : vector<8x8xf32>
    %cst_81 = arith.constant dense<0xFF800000> : vector<8xf32>
    %269 = vector.multi_reduction <maximumf>, %268, %cst_81 [1] : vector<8x8xf32> to vector<8xf32>
    %270 = vector.shape_cast %269 : vector<8xf32> to vector<8x1xf32>
    %271 = vector.broadcast %270 : vector<8x1xf32> to vector<8x8xf32>
    %272 = arith.subf %268, %271 : vector<8x8xf32>
    %273 = math.exp %272 : vector<8x8xf32>
    %cst_82 = arith.constant dense<0.000000e+00> : vector<8xf32>
    %274 = vector.multi_reduction <add>, %273, %cst_82 [1] : vector<8x8xf32> to vector<8xf32>
    %275 = vector.shape_cast %274 : vector<8xf32> to vector<8x1xf32>
    %276 = tpu.reciprocal %275 {approx = true} : vector<8x1xf32> -> vector<8x1xf32>
    %277 = vector.broadcast %276 : vector<8x1xf32> to vector<8x8xf32>
    %278 = arith.mulf %273, %277 : vector<8x8xf32>
    %279 = arith.truncf %278 : vector<8x8xf32> to vector<8x8xbf16>
    %cst_83 = arith.constant dense<0.000000e+00> : vector<8x4xf32>
    %280 = tpu.matmul %279, %265, %cst_83 {dimension_numbers = #tpu.dot_dimension_numbers<[1], [0], [0], [1], [0, 0, 1, 1], [], []>} : vector<8x8xbf16>, vector<8x4xbf16>, vector<8x4xf32> -> vector<8x4xf32>
    %281 = vector.extract_strided_slice %194 {offsets = [0, 16], sizes = [8, 4], strides = [1, 1]} : vector<8x32xf32> to vector<8x4xf32>
    %282 = arith.truncf %281 : vector<8x4xf32> to vector<8x4xbf16>
    %283 = vector.extract_strided_slice %195 {offsets = [0, 16], sizes = [8, 4], strides = [1, 1]} : vector<8x32xf32> to vector<8x4xf32>
    %284 = arith.truncf %283 : vector<8x4xf32> to vector<8x4xbf16>
    %285 = vector.extract_strided_slice %196 {offsets = [0, 16], sizes = [8, 4], strides = [1, 1]} : vector<8x32xf32> to vector<8x4xf32>
    %286 = arith.truncf %285 : vector<8x4xf32> to vector<8x4xbf16>
    %cst_84 = arith.constant dense<0.000000e+00> : vector<8x8xf32>
    %287 = tpu.matmul %282, %284, %cst_84 {dimension_numbers = #tpu.dot_dimension_numbers<[1], [1], [0], [0], [0, 0, 1, 0], [], []>} : vector<8x4xbf16>, vector<8x4xbf16>, vector<8x8xf32> -> vector<8x8xf32>
    %cst_85 = arith.constant 5.000000e-01 : f32
    %288 = vector.broadcast %cst_85 : f32 to vector<8x8xf32>
    %289 = arith.mulf %287, %288 : vector<8x8xf32>
    %cst_86 = arith.constant dense<0xFF800000> : vector<8xf32>
    %290 = vector.multi_reduction <maximumf>, %289, %cst_86 [1] : vector<8x8xf32> to vector<8xf32>
    %291 = vector.shape_cast %290 : vector<8xf32> to vector<8x1xf32>
    %292 = vector.broadcast %291 : vector<8x1xf32> to vector<8x8xf32>
    %293 = arith.subf %289, %292 : vector<8x8xf32>
    %294 = math.exp %293 : vector<8x8xf32>
    %cst_87 = arith.constant dense<0.000000e+00> : vector<8xf32>
    %295 = vector.multi_reduction <add>, %294, %cst_87 [1] : vector<8x8xf32> to vector<8xf32>
    %296 = vector.shape_cast %295 : vector<8xf32> to vector<8x1xf32>
    %297 = tpu.reciprocal %296 {approx = true} : vector<8x1xf32> -> vector<8x1xf32>
    %298 = vector.broadcast %297 : vector<8x1xf32> to vector<8x8xf32>
    %299 = arith.mulf %294, %298 : vector<8x8xf32>
    %300 = arith.truncf %299 : vector<8x8xf32> to vector<8x8xbf16>
    %cst_88 = arith.constant dense<0.000000e+00> : vector<8x4xf32>
    %301 = tpu.matmul %300, %286, %cst_88 {dimension_numbers = #tpu.dot_dimension_numbers<[1], [0], [0], [1], [0, 0, 1, 1], [], []>} : vector<8x8xbf16>, vector<8x4xbf16>, vector<8x4xf32> -> vector<8x4xf32>
    %302 = vector.extract_strided_slice %194 {offsets = [0, 20], sizes = [8, 4], strides = [1, 1]} : vector<8x32xf32> to vector<8x4xf32>
    %303 = arith.truncf %302 : vector<8x4xf32> to vector<8x4xbf16>
    %304 = vector.extract_strided_slice %195 {offsets = [0, 20], sizes = [8, 4], strides = [1, 1]} : vector<8x32xf32> to vector<8x4xf32>
    %305 = arith.truncf %304 : vector<8x4xf32> to vector<8x4xbf16>
    %306 = vector.extract_strided_slice %196 {offsets = [0, 20], sizes = [8, 4], strides = [1, 1]} : vector<8x32xf32> to vector<8x4xf32>
    %307 = arith.truncf %306 : vector<8x4xf32> to vector<8x4xbf16>
    %cst_89 = arith.constant dense<0.000000e+00> : vector<8x8xf32>
    %308 = tpu.matmul %303, %305, %cst_89 {dimension_numbers = #tpu.dot_dimension_numbers<[1], [1], [0], [0], [0, 0, 1, 0], [], []>} : vector<8x4xbf16>, vector<8x4xbf16>, vector<8x8xf32> -> vector<8x8xf32>
    %cst_90 = arith.constant 5.000000e-01 : f32
    %309 = vector.broadcast %cst_90 : f32 to vector<8x8xf32>
    %310 = arith.mulf %308, %309 : vector<8x8xf32>
    %cst_91 = arith.constant dense<0xFF800000> : vector<8xf32>
    %311 = vector.multi_reduction <maximumf>, %310, %cst_91 [1] : vector<8x8xf32> to vector<8xf32>
    %312 = vector.shape_cast %311 : vector<8xf32> to vector<8x1xf32>
    %313 = vector.broadcast %312 : vector<8x1xf32> to vector<8x8xf32>
    %314 = arith.subf %310, %313 : vector<8x8xf32>
    %315 = math.exp %314 : vector<8x8xf32>
    %cst_92 = arith.constant dense<0.000000e+00> : vector<8xf32>
    %316 = vector.multi_reduction <add>, %315, %cst_92 [1] : vector<8x8xf32> to vector<8xf32>
    %317 = vector.shape_cast %316 : vector<8xf32> to vector<8x1xf32>
    %318 = tpu.reciprocal %317 {approx = true} : vector<8x1xf32> -> vector<8x1xf32>
    %319 = vector.broadcast %318 : vector<8x1xf32> to vector<8x8xf32>
    %320 = arith.mulf %315, %319 : vector<8x8xf32>
    %321 = arith.truncf %320 : vector<8x8xf32> to vector<8x8xbf16>
    %cst_93 = arith.constant dense<0.000000e+00> : vector<8x4xf32>
    %322 = tpu.matmul %321, %307, %cst_93 {dimension_numbers = #tpu.dot_dimension_numbers<[1], [0], [0], [1], [0, 0, 1, 1], [], []>} : vector<8x8xbf16>, vector<8x4xbf16>, vector<8x4xf32> -> vector<8x4xf32>
    %323 = vector.extract_strided_slice %194 {offsets = [0, 24], sizes = [8, 4], strides = [1, 1]} : vector<8x32xf32> to vector<8x4xf32>
    %324 = arith.truncf %323 : vector<8x4xf32> to vector<8x4xbf16>
    %325 = vector.extract_strided_slice %195 {offsets = [0, 24], sizes = [8, 4], strides = [1, 1]} : vector<8x32xf32> to vector<8x4xf32>
    %326 = arith.truncf %325 : vector<8x4xf32> to vector<8x4xbf16>
    %327 = vector.extract_strided_slice %196 {offsets = [0, 24], sizes = [8, 4], strides = [1, 1]} : vector<8x32xf32> to vector<8x4xf32>
    %328 = arith.truncf %327 : vector<8x4xf32> to vector<8x4xbf16>
    %cst_94 = arith.constant dense<0.000000e+00> : vector<8x8xf32>
    %329 = tpu.matmul %324, %326, %cst_94 {dimension_numbers = #tpu.dot_dimension_numbers<[1], [1], [0], [0], [0, 0, 1, 0], [], []>} : vector<8x4xbf16>, vector<8x4xbf16>, vector<8x8xf32> -> vector<8x8xf32>
    %cst_95 = arith.constant 5.000000e-01 : f32
    %330 = vector.broadcast %cst_95 : f32 to vector<8x8xf32>
    %331 = arith.mulf %329, %330 : vector<8x8xf32>
    %cst_96 = arith.constant dense<0xFF800000> : vector<8xf32>
    %332 = vector.multi_reduction <maximumf>, %331, %cst_96 [1] : vector<8x8xf32> to vector<8xf32>
    %333 = vector.shape_cast %332 : vector<8xf32> to vector<8x1xf32>
    %334 = vector.broadcast %333 : vector<8x1xf32> to vector<8x8xf32>
    %335 = arith.subf %331, %334 : vector<8x8xf32>
    %336 = math.exp %335 : vector<8x8xf32>
    %cst_97 = arith.constant dense<0.000000e+00> : vector<8xf32>
    %337 = vector.multi_reduction <add>, %336, %cst_97 [1] : vector<8x8xf32> to vector<8xf32>
    %338 = vector.shape_cast %337 : vector<8xf32> to vector<8x1xf32>
    %339 = tpu.reciprocal %338 {approx = true} : vector<8x1xf32> -> vector<8x1xf32>
    %340 = vector.broadcast %339 : vector<8x1xf32> to vector<8x8xf32>
    %341 = arith.mulf %336, %340 : vector<8x8xf32>
    %342 = arith.truncf %341 : vector<8x8xf32> to vector<8x8xbf16>
    %cst_98 = arith.constant dense<0.000000e+00> : vector<8x4xf32>
    %343 = tpu.matmul %342, %328, %cst_98 {dimension_numbers = #tpu.dot_dimension_numbers<[1], [0], [0], [1], [0, 0, 1, 1], [], []>} : vector<8x8xbf16>, vector<8x4xbf16>, vector<8x4xf32> -> vector<8x4xf32>
    %344 = vector.extract_strided_slice %194 {offsets = [0, 28], sizes = [8, 4], strides = [1, 1]} : vector<8x32xf32> to vector<8x4xf32>
    %345 = arith.truncf %344 : vector<8x4xf32> to vector<8x4xbf16>
    %346 = vector.extract_strided_slice %195 {offsets = [0, 28], sizes = [8, 4], strides = [1, 1]} : vector<8x32xf32> to vector<8x4xf32>
    %347 = arith.truncf %346 : vector<8x4xf32> to vector<8x4xbf16>
    %348 = vector.extract_strided_slice %196 {offsets = [0, 28], sizes = [8, 4], strides = [1, 1]} : vector<8x32xf32> to vector<8x4xf32>
    %349 = arith.truncf %348 : vector<8x4xf32> to vector<8x4xbf16>
    %cst_99 = arith.constant dense<0.000000e+00> : vector<8x8xf32>
    %350 = tpu.matmul %345, %347, %cst_99 {dimension_numbers = #tpu.dot_dimension_numbers<[1], [1], [0], [0], [0, 0, 1, 0], [], []>} : vector<8x4xbf16>, vector<8x4xbf16>, vector<8x8xf32> -> vector<8x8xf32>
    %cst_100 = arith.constant 5.000000e-01 : f32
    %351 = vector.broadcast %cst_100 : f32 to vector<8x8xf32>
    %352 = arith.mulf %350, %351 : vector<8x8xf32>
    %cst_101 = arith.constant dense<0xFF800000> : vector<8xf32>
    %353 = vector.multi_reduction <maximumf>, %352, %cst_101 [1] : vector<8x8xf32> to vector<8xf32>
    %354 = vector.shape_cast %353 : vector<8xf32> to vector<8x1xf32>
    %355 = vector.broadcast %354 : vector<8x1xf32> to vector<8x8xf32>
    %356 = arith.subf %352, %355 : vector<8x8xf32>
    %357 = math.exp %356 : vector<8x8xf32>
    %cst_102 = arith.constant dense<0.000000e+00> : vector<8xf32>
    %358 = vector.multi_reduction <add>, %357, %cst_102 [1] : vector<8x8xf32> to vector<8xf32>
    %359 = vector.shape_cast %358 : vector<8xf32> to vector<8x1xf32>
    %360 = tpu.reciprocal %359 {approx = true} : vector<8x1xf32> -> vector<8x1xf32>
    %361 = vector.broadcast %360 : vector<8x1xf32> to vector<8x8xf32>
    %362 = arith.mulf %357, %361 : vector<8x8xf32>
    %363 = arith.truncf %362 : vector<8x8xf32> to vector<8x8xbf16>
    %cst_103 = arith.constant dense<0.000000e+00> : vector<8x4xf32>
    %364 = tpu.matmul %363, %349, %cst_103 {dimension_numbers = #tpu.dot_dimension_numbers<[1], [0], [0], [1], [0, 0, 1, 1], [], []>} : vector<8x8xbf16>, vector<8x4xbf16>, vector<8x4xf32> -> vector<8x4xf32>
    %365 = tpu.concatenate %217, %238, %259, %280, %301, %322, %343, %364 in 1 : vector<8x4xf32>, vector<8x4xf32>, vector<8x4xf32>, vector<8x4xf32>, vector<8x4xf32>, vector<8x4xf32>, vector<8x4xf32>, vector<8x4xf32> -> vector<8x32xf32>
    %366 = vector.extract_strided_slice %21 {offsets = [11, 0], sizes = [1, 32], strides = [1, 1]} : vector<21x32xf32> to vector<1x32xf32>
    %367 = arith.truncf %365 : vector<8x32xf32> to vector<8x32xbf16>
    %c0_104 = arith.constant 0 : index
    %c0_105 = arith.constant 0 : index
    %368 = vector.load %arg9[%c0_104, %c0_105] : memref<32x32xbf16, #tpu.memory_space<vmem>>, vector<32x32xbf16>
    %cst_106 = arith.constant dense<0.000000e+00> : vector<8x32xf32>
    %369 = tpu.matmul %367, %368, %cst_106 {dimension_numbers = #tpu.dot_dimension_numbers<[1], [0], [0], [1], [0, 0, 1, 1], [], []>} : vector<8x32xbf16>, vector<32x32xbf16>, vector<8x32xf32> -> vector<8x32xf32>
    %370 = vector.broadcast %366 : vector<1x32xf32> to vector<8x32xf32>
    %371 = arith.addf %369, %370 : vector<8x32xf32>
    %372 = arith.addf %187, %371 : vector<8x32xf32>
    %373 = vector.extract_strided_slice %21 {offsets = [12, 0], sizes = [1, 32], strides = [1, 1]} : vector<21x32xf32> to vector<1x32xf32>
    %374 = vector.extract_strided_slice %21 {offsets = [13, 0], sizes = [1, 32], strides = [1, 1]} : vector<21x32xf32> to vector<1x32xf32>
    %cst_107 = arith.constant dense<0.000000e+00> : vector<8xf32>
    %375 = vector.multi_reduction <add>, %372, %cst_107 [1] : vector<8x32xf32> to vector<8xf32>
    %376 = vector.shape_cast %375 : vector<8xf32> to vector<8x1xf32>
    %cst_108 = arith.constant 3.200000e+01 : f32
    %377 = vector.broadcast %cst_108 : f32 to vector<8x1xf32>
    %378 = arith.divf %376, %377 : vector<8x1xf32>
    %379 = vector.broadcast %378 : vector<8x1xf32> to vector<8x32xf32>
    %380 = arith.subf %372, %379 : vector<8x32xf32>
    %381 = arith.mulf %380, %380 : vector<8x32xf32>
    %cst_109 = arith.constant dense<0.000000e+00> : vector<8xf32>
    %382 = vector.multi_reduction <add>, %381, %cst_109 [1] : vector<8x32xf32> to vector<8xf32>
    %383 = vector.shape_cast %382 : vector<8xf32> to vector<8x1xf32>
    %cst_110 = arith.constant 3.200000e+01 : f32
    %384 = vector.broadcast %cst_110 : f32 to vector<8x1xf32>
    %385 = arith.divf %383, %384 : vector<8x1xf32>
    %386 = vector.broadcast %378 : vector<8x1xf32> to vector<8x32xf32>
    %387 = arith.subf %372, %386 : vector<8x32xf32>
    %cst_111 = arith.constant 9.99999974E-6 : f32
    %388 = vector.broadcast %cst_111 : f32 to vector<8x1xf32>
    %389 = arith.addf %385, %388 : vector<8x1xf32>
    %390 = math.rsqrt %389 : vector<8x1xf32>
    %391 = vector.broadcast %390 : vector<8x1xf32> to vector<8x32xf32>
    %392 = arith.mulf %387, %391 : vector<8x32xf32>
    %393 = vector.broadcast %373 : vector<1x32xf32> to vector<8x32xf32>
    %394 = arith.mulf %392, %393 : vector<8x32xf32>
    %395 = vector.broadcast %374 : vector<1x32xf32> to vector<8x32xf32>
    %396 = arith.addf %394, %395 : vector<8x32xf32>
    %c0_112 = arith.constant 0 : index
    %c0_113 = arith.constant 0 : index
    %397 = vector.load %arg21[%c0_112, %c0_113] : memref<1x64xf32, #tpu.memory_space<vmem>>, vector<1x64xf32>
    %398 = arith.truncf %396 : vector<8x32xf32> to vector<8x32xbf16>
    %c0_114 = arith.constant 0 : index
    %c0_115 = arith.constant 0 : index
    %399 = vector.load %arg10[%c0_114, %c0_115] : memref<32x64xbf16, #tpu.memory_space<vmem>>, vector<32x64xbf16>
    %cst_116 = arith.constant dense<0.000000e+00> : vector<8x64xf32>
    %400 = tpu.matmul %398, %399, %cst_116 {dimension_numbers = #tpu.dot_dimension_numbers<[1], [0], [0], [1], [0, 0, 1, 1], [], []>} : vector<8x32xbf16>, vector<32x64xbf16>, vector<8x64xf32> -> vector<8x64xf32>
    %401 = vector.broadcast %397 : vector<1x64xf32> to vector<8x64xf32>
    %402 = arith.addf %400, %401 : vector<8x64xf32>
    %cst_117 = arith.constant 0.000000e+00 : f32
    %403 = vector.broadcast %cst_117 : f32 to vector<8x64xf32>
    %404 = arith.maximumf %402, %403 : vector<8x64xf32>
    %405 = vector.extract_strided_slice %21 {offsets = [14, 0], sizes = [1, 32], strides = [1, 1]} : vector<21x32xf32> to vector<1x32xf32>
    %406 = arith.truncf %404 : vector<8x64xf32> to vector<8x64xbf16>
    %c0_118 = arith.constant 0 : index
    %c0_119 = arith.constant 0 : index
    %407 = vector.load %arg11[%c0_118, %c0_119] : memref<64x32xbf16, #tpu.memory_space<vmem>>, vector<64x32xbf16>
    %cst_120 = arith.constant dense<0.000000e+00> : vector<8x32xf32>
    %408 = tpu.matmul %406, %407, %cst_120 {dimension_numbers = #tpu.dot_dimension_numbers<[1], [0], [0], [1], [0, 0, 1, 1], [], []>} : vector<8x64xbf16>, vector<64x32xbf16>, vector<8x32xf32> -> vector<8x32xf32>
    %409 = vector.broadcast %405 : vector<1x32xf32> to vector<8x32xf32>
    %410 = arith.addf %408, %409 : vector<8x32xf32>
    %411 = arith.addf %396, %410 : vector<8x32xf32>
    %412 = vector.extract_strided_slice %21 {offsets = [15, 0], sizes = [1, 32], strides = [1, 1]} : vector<21x32xf32> to vector<1x32xf32>
    %413 = vector.extract_strided_slice %21 {offsets = [16, 0], sizes = [1, 32], strides = [1, 1]} : vector<21x32xf32> to vector<1x32xf32>
    %cst_121 = arith.constant dense<0.000000e+00> : vector<8xf32>
    %414 = vector.multi_reduction <add>, %411, %cst_121 [1] : vector<8x32xf32> to vector<8xf32>
    %415 = vector.shape_cast %414 : vector<8xf32> to vector<8x1xf32>
    %cst_122 = arith.constant 3.200000e+01 : f32
    %416 = vector.broadcast %cst_122 : f32 to vector<8x1xf32>
    %417 = arith.divf %415, %416 : vector<8x1xf32>
    %418 = vector.broadcast %417 : vector<8x1xf32> to vector<8x32xf32>
    %419 = arith.subf %411, %418 : vector<8x32xf32>
    %420 = arith.mulf %419, %419 : vector<8x32xf32>
    %cst_123 = arith.constant dense<0.000000e+00> : vector<8xf32>
    %421 = vector.multi_reduction <add>, %420, %cst_123 [1] : vector<8x32xf32> to vector<8xf32>
    %422 = vector.shape_cast %421 : vector<8xf32> to vector<8x1xf32>
    %cst_124 = arith.constant 3.200000e+01 : f32
    %423 = vector.broadcast %cst_124 : f32 to vector<8x1xf32>
    %424 = arith.divf %422, %423 : vector<8x1xf32>
    %425 = vector.broadcast %417 : vector<8x1xf32> to vector<8x32xf32>
    %426 = arith.subf %411, %425 : vector<8x32xf32>
    %cst_125 = arith.constant 9.99999974E-6 : f32
    %427 = vector.broadcast %cst_125 : f32 to vector<8x1xf32>
    %428 = arith.addf %424, %427 : vector<8x1xf32>
    %429 = math.rsqrt %428 : vector<8x1xf32>
    %430 = vector.broadcast %429 : vector<8x1xf32> to vector<8x32xf32>
    %431 = arith.mulf %426, %430 : vector<8x32xf32>
    %432 = vector.broadcast %412 : vector<1x32xf32> to vector<8x32xf32>
    %433 = arith.mulf %431, %432 : vector<8x32xf32>
    %434 = vector.broadcast %413 : vector<1x32xf32> to vector<8x32xf32>
    %435 = arith.addf %433, %434 : vector<8x32xf32>
    %436 = arith.truncf %435 : vector<8x32xf32> to vector<8x32xbf16>
    %c0_126 = arith.constant 0 : index
    %c0_127 = arith.constant 0 : index
    %437 = vector.load %arg12[%c0_126, %c0_127] : memref<32x32xbf16, #tpu.memory_space<vmem>>, vector<32x32xbf16>
    %cst_128 = arith.constant dense<0.000000e+00> : vector<8x32xf32>
    %438 = tpu.matmul %436, %437, %cst_128 {dimension_numbers = #tpu.dot_dimension_numbers<[1], [0], [0], [1], [0, 0, 1, 1], [], []>} : vector<8x32xbf16>, vector<32x32xbf16>, vector<8x32xf32> -> vector<8x32xf32>
    %439 = vector.extract_strided_slice %21 {offsets = [17, 0], sizes = [1, 32], strides = [1, 1]} : vector<21x32xf32> to vector<1x32xf32>
    %440 = vector.extract_strided_slice %21 {offsets = [18, 0], sizes = [1, 32], strides = [1, 1]} : vector<21x32xf32> to vector<1x32xf32>
    %cst_129 = arith.constant dense<0.000000e+00> : vector<8xf32>
    %441 = vector.multi_reduction <add>, %438, %cst_129 [1] : vector<8x32xf32> to vector<8xf32>
    %442 = vector.shape_cast %441 : vector<8xf32> to vector<8x1xf32>
    %cst_130 = arith.constant 3.200000e+01 : f32
    %443 = vector.broadcast %cst_130 : f32 to vector<8x1xf32>
    %444 = arith.divf %442, %443 : vector<8x1xf32>
    %445 = vector.broadcast %444 : vector<8x1xf32> to vector<8x32xf32>
    %446 = arith.subf %438, %445 : vector<8x32xf32>
    %447 = arith.mulf %446, %446 : vector<8x32xf32>
    %cst_131 = arith.constant dense<0.000000e+00> : vector<8xf32>
    %448 = vector.multi_reduction <add>, %447, %cst_131 [1] : vector<8x32xf32> to vector<8xf32>
    %449 = vector.shape_cast %448 : vector<8xf32> to vector<8x1xf32>
    %cst_132 = arith.constant 3.200000e+01 : f32
    %450 = vector.broadcast %cst_132 : f32 to vector<8x1xf32>
    %451 = arith.divf %449, %450 : vector<8x1xf32>
    %452 = vector.broadcast %444 : vector<8x1xf32> to vector<8x32xf32>
    %453 = arith.subf %438, %452 : vector<8x32xf32>
    %cst_133 = arith.constant 9.99999974E-6 : f32
    %454 = vector.broadcast %cst_133 : f32 to vector<8x1xf32>
    %455 = arith.addf %451, %454 : vector<8x1xf32>
    %456 = math.rsqrt %455 : vector<8x1xf32>
    %457 = vector.broadcast %456 : vector<8x1xf32> to vector<8x32xf32>
    %458 = arith.mulf %453, %457 : vector<8x32xf32>
    %459 = vector.broadcast %439 : vector<1x32xf32> to vector<8x32xf32>
    %460 = arith.mulf %458, %459 : vector<8x32xf32>
    %461 = vector.broadcast %440 : vector<1x32xf32> to vector<8x32xf32>
    %462 = arith.addf %460, %461 : vector<8x32xf32>
    %cst_134 = arith.constant 0.000000e+00 : f32
    %463 = vector.broadcast %cst_134 : f32 to vector<8x32xf32>
    %464 = arith.maximumf %462, %463 : vector<8x32xf32>
    %c0_135 = arith.constant 0 : index
    %c0_136 = arith.constant 0 : index
    %465 = vector.load %arg22[%c0_135, %c0_136] : memref<1x32xf32, #tpu.memory_space<vmem>>, vector<1x32xf32>
    %466 = arith.truncf %464 : vector<8x32xf32> to vector<8x32xbf16>
    %c0_137 = arith.constant 0 : index
    %c0_138 = arith.constant 0 : index
    %467 = vector.load %arg13[%c0_137, %c0_138] : memref<32x32xbf16, #tpu.memory_space<vmem>>, vector<32x32xbf16>
    %cst_139 = arith.constant dense<0.000000e+00> : vector<8x32xf32>
    %468 = tpu.matmul %466, %467, %cst_139 {dimension_numbers = #tpu.dot_dimension_numbers<[1], [0], [0], [1], [0, 0, 1, 1], [], []>} : vector<8x32xbf16>, vector<32x32xbf16>, vector<8x32xf32> -> vector<8x32xf32>
    %469 = vector.broadcast %465 : vector<1x32xf32> to vector<8x32xf32>
    %470 = arith.addf %468, %469 : vector<8x32xf32>
    %471 = arith.truncf %435 : vector<8x32xf32> to vector<8x32xbf16>
    %c0_140 = arith.constant 0 : index
    %c0_141 = arith.constant 0 : index
    %472 = vector.load %arg14[%c0_140, %c0_141] : memref<32x32xbf16, #tpu.memory_space<vmem>>, vector<32x32xbf16>
    %cst_142 = arith.constant dense<0.000000e+00> : vector<8x32xf32>
    %473 = tpu.matmul %471, %472, %cst_142 {dimension_numbers = #tpu.dot_dimension_numbers<[1], [0], [0], [1], [0, 0, 1, 1], [], []>} : vector<8x32xbf16>, vector<32x32xbf16>, vector<8x32xf32> -> vector<8x32xf32>
    %474 = vector.extract_strided_slice %21 {offsets = [19, 0], sizes = [1, 32], strides = [1, 1]} : vector<21x32xf32> to vector<1x32xf32>
    %475 = vector.extract_strided_slice %21 {offsets = [20, 0], sizes = [1, 32], strides = [1, 1]} : vector<21x32xf32> to vector<1x32xf32>
    %cst_143 = arith.constant dense<0.000000e+00> : vector<8xf32>
    %476 = vector.multi_reduction <add>, %473, %cst_143 [1] : vector<8x32xf32> to vector<8xf32>
    %477 = vector.shape_cast %476 : vector<8xf32> to vector<8x1xf32>
    %cst_144 = arith.constant 3.200000e+01 : f32
    %478 = vector.broadcast %cst_144 : f32 to vector<8x1xf32>
    %479 = arith.divf %477, %478 : vector<8x1xf32>
    %480 = vector.broadcast %479 : vector<8x1xf32> to vector<8x32xf32>
    %481 = arith.subf %473, %480 : vector<8x32xf32>
    %482 = arith.mulf %481, %481 : vector<8x32xf32>
    %cst_145 = arith.constant dense<0.000000e+00> : vector<8xf32>
    %483 = vector.multi_reduction <add>, %482, %cst_145 [1] : vector<8x32xf32> to vector<8xf32>
    %484 = vector.shape_cast %483 : vector<8xf32> to vector<8x1xf32>
    %cst_146 = arith.constant 3.200000e+01 : f32
    %485 = vector.broadcast %cst_146 : f32 to vector<8x1xf32>
    %486 = arith.divf %484, %485 : vector<8x1xf32>
    %487 = vector.broadcast %479 : vector<8x1xf32> to vector<8x32xf32>
    %488 = arith.subf %473, %487 : vector<8x32xf32>
    %cst_147 = arith.constant 9.99999974E-6 : f32
    %489 = vector.broadcast %cst_147 : f32 to vector<8x1xf32>
    %490 = arith.addf %486, %489 : vector<8x1xf32>
    %491 = math.rsqrt %490 : vector<8x1xf32>
    %492 = vector.broadcast %491 : vector<8x1xf32> to vector<8x32xf32>
    %493 = arith.mulf %488, %492 : vector<8x32xf32>
    %494 = vector.broadcast %474 : vector<1x32xf32> to vector<8x32xf32>
    %495 = arith.mulf %493, %494 : vector<8x32xf32>
    %496 = vector.broadcast %475 : vector<1x32xf32> to vector<8x32xf32>
    %497 = arith.addf %495, %496 : vector<8x32xf32>
    %cst_148 = arith.constant 0.000000e+00 : f32
    %498 = vector.broadcast %cst_148 : f32 to vector<8x32xf32>
    %499 = arith.maximumf %497, %498 : vector<8x32xf32>
    %c0_149 = arith.constant 0 : index
    %c0_150 = arith.constant 0 : index
    %500 = vector.load %arg23[%c0_149, %c0_150] : memref<1x128xf32, #tpu.memory_space<vmem>>, vector<1x128xf32>
    %501 = arith.truncf %499 : vector<8x32xf32> to vector<8x32xbf16>
    %c0_151 = arith.constant 0 : index
    %c0_152 = arith.constant 0 : index
    %502 = vector.load %arg15[%c0_151, %c0_152] : memref<32x128xbf16, #tpu.memory_space<vmem>>, vector<32x128xbf16>
    %cst_153 = arith.constant dense<0.000000e+00> : vector<8x128xf32>
    %503 = tpu.matmul %501, %502, %cst_153 {dimension_numbers = #tpu.dot_dimension_numbers<[1], [0], [0], [1], [0, 0, 1, 1], [], []>} : vector<8x32xbf16>, vector<32x128xbf16>, vector<8x128xf32> -> vector<8x128xf32>
    %504 = vector.broadcast %500 : vector<1x128xf32> to vector<8x128xf32>
    %505 = arith.addf %503, %504 : vector<8x128xf32>
    %506 = arith.truncf %470 : vector<8x32xf32> to vector<8x32xbf16>
    %cst_154 = arith.constant dense<0.000000e+00> : vector<8x256xf32>
    %507 = tpu.matmul %506, %1, %cst_154 {dimension_numbers = #tpu.dot_dimension_numbers<[1], [1], [0], [0], [0, 0, 1, 0], [], []>} : vector<8x32xbf16>, vector<256x32xbf16>, vector<8x256xf32> -> vector<8x256xf32>
    %c0_155 = arith.constant 0 : index
    %c0_156 = arith.constant 0 : index
    %c0_157 = arith.constant 0 : index
    %508 = vector.load %arg24[%c0_155, %c0_156, %c0_157] : memref<1x8x256xf32, #tpu.memory_space<vmem>>, vector<1x8x256xf32>
    %509 = vector.shape_cast %508 : vector<1x8x256xf32> to vector<8x256xf32>
    %510 = vector.shape_cast %507 : vector<8x256xf32> to vector<1x8x256xf32>
    tpu.vector_store %arg24[%c0_155, %c0_156, %c0_157], %510 {strides = array<i32>} : memref<1x8x256xf32, #tpu.memory_space<vmem>>, vector<1x8x256xf32>,
    %c0_158 = arith.constant 0 : index
    %c0_159 = arith.constant 0 : index
    %c0_160 = arith.constant 0 : index
    %511 = vector.load %arg25[%c0_158, %c0_159, %c0_160] : memref<1x8x128xf32, #tpu.memory_space<vmem>>, vector<1x8x128xf32>
    %512 = vector.shape_cast %511 : vector<1x8x128xf32> to vector<8x128xf32>
    %513 = vector.shape_cast %505 : vector<8x128xf32> to vector<1x8x128xf32>
    tpu.vector_store %arg25[%c0_158, %c0_159, %c0_160], %513 {strides = array<i32>} : memref<1x8x128xf32, #tpu.memory_space<vmem>>, vector<1x8x128xf32>,
    %c0_161 = arith.constant 0 : index
    %c0_162 = arith.constant 0 : index
    %c0_163 = arith.constant 0 : index
    %514 = vector.load %arg26[%c0_161, %c0_162, %c0_163] : memref<1x8x32xf32, #tpu.memory_space<vmem>>, vector<1x8x32xf32>
    %515 = vector.shape_cast %514 : vector<1x8x32xf32> to vector<8x32xf32>
    %516 = vector.shape_cast %435 : vector<8x32xf32> to vector<1x8x32xf32>
    tpu.vector_store %arg26[%c0_161, %c0_162, %c0_163], %516 {strides = array<i32>} : memref<1x8x32xf32, #tpu.memory_space<vmem>>, vector<1x8x32xf32>,
    return
  }
  func.func @transform_0(%arg0: i32) -> (i32, i32, i32) {
    %c0_i32 = arith.constant 0 : i32
    %c0_i32_0 = arith.constant 0 : i32
    %c0_i32_1 = arith.constant 0 : i32
    return %arg0, %c0_i32, %c0_i32_0 : i32, i32, i32
  }
  func.func @transform_1(%arg0: i32) -> (i32, i32, i32) {
    %c0_i32 = arith.constant 0 : i32
    %c0_i32_0 = arith.constant 0 : i32
    %c0_i32_1 = arith.constant 0 : i32
    return %arg0, %c0_i32, %c0_i32_0 : i32, i32, i32
  }
  func.func @transform_2(%arg0: i32) -> (i32, i32, i32) {
    %c0_i32 = arith.constant 0 : i32
    %c0_i32_0 = arith.constant 0 : i32
    %c0_i32_1 = arith.constant 0 : i32
    return %arg0, %c0_i32, %c0_i32_0 : i32, i32, i32
  }
  func.func @transform_3(%arg0: i32) -> (i32, i32) {
    %c0_i32 = arith.constant 0 : i32
    %c0_i32_0 = arith.constant 0 : i32
    %c0_i32_1 = arith.constant 0 : i32
    return %c0_i32, %c0_i32_0 : i32, i32
  }
  func.func @transform_4(%arg0: i32) -> (i32, i32) {
    %c0_i32 = arith.constant 0 : i32
    %c0_i32_0 = arith.constant 0 : i32
    %c0_i32_1 = arith.constant 0 : i32
    return %c0_i32, %c0_i32_0 : i32, i32
  }
  func.func @transform_5(%arg0: i32) -> (i32, i32) {
    %c0_i32 = arith.constant 0 : i32
    %c0_i32_0 = arith.constant 0 : i32
    %c0_i32_1 = arith.constant 0 : i32
    return %c0_i32, %c0_i32_0 : i32, i32
  }
  func.func @transform_6(%arg0: i32) -> (i32, i32) {
    %c0_i32 = arith.constant 0 : i32
    %c0_i32_0 = arith.constant 0 : i32
    %c0_i32_1 = arith.constant 0 : i32
    return %c0_i32, %c0_i32_0 : i32, i32
  }
  func.func @transform_7(%arg0: i32) -> (i32, i32) {
    %c0_i32 = arith.constant 0 : i32
    %c0_i32_0 = arith.constant 0 : i32
    %c0_i32_1 = arith.constant 0 : i32
    return %c0_i32, %c0_i32_0 : i32, i32
  }
  func.func @transform_8(%arg0: i32) -> (i32, i32) {
    %c0_i32 = arith.constant 0 : i32
    %c0_i32_0 = arith.constant 0 : i32
    %c0_i32_1 = arith.constant 0 : i32
    return %c0_i32, %c0_i32_0 : i32, i32
  }
  func.func @transform_9(%arg0: i32) -> (i32, i32) {
    %c0_i32 = arith.constant 0 : i32
    %c0_i32_0 = arith.constant 0 : i32
    %c0_i32_1 = arith.constant 0 : i32
    return %c0_i32, %c0_i32_0 : i32, i32
  }
  func.func @transform_10(%arg0: i32) -> (i32, i32) {
    %c0_i32 = arith.constant 0 : i32
    %c0_i32_0 = arith.constant 0 : i32
    %c0_i32_1 = arith.constant 0 : i32
    return %c0_i32, %c0_i32_0 : i32, i32
  }
  func.func @transform_11(%arg0: i32) -> (i32, i32) {
    %c0_i32 = arith.constant 0 : i32
    %c0_i32_0 = arith.constant 0 : i32
    %c0_i32_1 = arith.constant 0 : i32
    return %c0_i32, %c0_i32_0 : i32, i32
  }
  func.func @transform_12(%arg0: i32) -> (i32, i32) {
    %c0_i32 = arith.constant 0 : i32
    %c0_i32_0 = arith.constant 0 : i32
    %c0_i32_1 = arith.constant 0 : i32
    return %c0_i32, %c0_i32_0 : i32, i32
  }
  func.func @transform_13(%arg0: i32) -> (i32, i32) {
    %c0_i32 = arith.constant 0 : i32
    %c0_i32_0 = arith.constant 0 : i32
    %c0_i32_1 = arith.constant 0 : i32
    return %c0_i32, %c0_i32_0 : i32, i32
  }
  func.func @transform_14(%arg0: i32) -> (i32, i32) {
    %c0_i32 = arith.constant 0 : i32
    %c0_i32_0 = arith.constant 0 : i32
    %c0_i32_1 = arith.constant 0 : i32
    return %c0_i32, %c0_i32_0 : i32, i32
  }
  func.func @transform_15(%arg0: i32) -> (i32, i32) {
    %c0_i32 = arith.constant 0 : i32
    %c0_i32_0 = arith.constant 0 : i32
    %c0_i32_1 = arith.constant 0 : i32
    return %c0_i32, %c0_i32_0 : i32, i32
  }
  func.func @transform_16(%arg0: i32) -> (i32, i32) {
    %c0_i32 = arith.constant 0 : i32
    %c0_i32_0 = arith.constant 0 : i32
    %c0_i32_1 = arith.constant 0 : i32
    return %c0_i32, %c0_i32_0 : i32, i32
  }
  func.func @transform_17(%arg0: i32) -> (i32, i32) {
    %c0_i32 = arith.constant 0 : i32
    %c0_i32_0 = arith.constant 0 : i32
    %c0_i32_1 = arith.constant 0 : i32
    return %c0_i32, %c0_i32_0 : i32, i32
  }
  func.func @transform_18(%arg0: i32) -> (i32, i32) {
    %c0_i32 = arith.constant 0 : i32
    %c0_i32_0 = arith.constant 0 : i32
    %c0_i32_1 = arith.constant 0 : i32
    return %c0_i32, %c0_i32_0 : i32, i32
  }
  func.func @transform_19(%arg0: i32) -> (i32, i32) {
    %c0_i32 = arith.constant 0 : i32
    %c0_i32_0 = arith.constant 0 : i32
    %c0_i32_1 = arith.constant 0 : i32
    return %c0_i32, %c0_i32_0 : i32, i32
  }
  func.func @transform_20(%arg0: i32) -> (i32, i32) {
    %c0_i32 = arith.constant 0 : i32
    %c0_i32_0 = arith.constant 0 : i32
    %c0_i32_1 = arith.constant 0 : i32
    return %c0_i32, %c0_i32_0 : i32, i32
  }
  func.func @transform_21(%arg0: i32) -> (i32, i32) {
    %c0_i32 = arith.constant 0 : i32
    %c0_i32_0 = arith.constant 0 : i32
    %c0_i32_1 = arith.constant 0 : i32
    return %c0_i32, %c0_i32_0 : i32, i32
  }
  func.func @transform_22(%arg0: i32) -> (i32, i32) {
    %c0_i32 = arith.constant 0 : i32
    %c0_i32_0 = arith.constant 0 : i32
    %c0_i32_1 = arith.constant 0 : i32
    return %c0_i32, %c0_i32_0 : i32, i32
  }
  func.func @transform_23(%arg0: i32) -> (i32, i32, i32) {
    %c0_i32 = arith.constant 0 : i32
    %c0_i32_0 = arith.constant 0 : i32
    %c0_i32_1 = arith.constant 0 : i32
    return %arg0, %c0_i32, %c0_i32_0 : i32, i32, i32
  }
  func.func @transform_24(%arg0: i32) -> (i32, i32, i32) {
    %c0_i32 = arith.constant 0 : i32
    %c0_i32_0 = arith.constant 0 : i32
    %c0_i32_1 = arith.constant 0 : i32
    return %arg0, %c0_i32, %c0_i32_0 : i32, i32, i32
  }
  func.func @transform_25(%arg0: i32) -> (i32, i32, i32) {
    %c0_i32 = arith.constant 0 : i32
    %c0_i32_0 = arith.constant 0 : i32
    %c0_i32_1 = arith.constant 0 : i32
    return %arg0, %c0_i32, %c0_i32_0 : i32, i32, i32
  }
}

</mosaic_0001>

<bundles_post_ra>
// kernel: panoptic_kernel_update_head.1
= control target key start
LH: loop header
LB: loop body
LE: loop exit
PB: predicated region body
PF: predicated region fallthrough
CT: control target
= control target key end

     0   :  { %s3801_s0 = inlined_call_operand.vmem [shape: bf16[2,8,256], index: 0, kind: input, shape index: {}]   ;;  %s3802_s1 = inlined_call_operand.vmem [shape: bf16[2,256,32], index: 1, kind: input, shape index: {}]   ;;  %s3803_s2 = inlined_call_operand.vmem [shape: f32[2,8,32], index: 2, kind: input, shape index: {}]   ;;  %s3804_s3 = inlined_call_operand.vmem [shape: bf16[32,64], index: 3, kind: input, shape index: {}]   ;;  %s3805_s4 = inlined_call_operand.vmem [shape: bf16[32,64], index: 4, kind: input, shape index: {}]   ;;  %s3806_s5 = inlined_call_operand.vmem [shape: bf16[32,64], index: 5, kind: input, shape index: {}]   ;;  %s3807_s6 = inlined_call_operand.vmem [shape: bf16[32,32], index: 6, kind: input, shape index: {}]   ;;  %s3808_s7 = inlined_call_operand.vmem [shape: bf16[32,96], index: 7, kind: input, shape index: {}]   ;;  %s3809_s8 = inlined_call_operand.vmem [shape: bf16[32,32], index: 8, kind: input, shape index: {}]   ;;  %s3810_s9 = inlined_call_operand.vmem [shape: bf16[32,64], index: 9, kind: input, shape index: {}]   ;;  %s3811_s10 = inlined_call_operand.vmem [shape: bf16[64,32], index: 10, kind: input, shape index: {}]   ;;  %s3812_s11 = inlined_call_operand.vmem [shape: bf16[32,32], index: 11, kind: input, shape index: {}]   ;;  %s3813_s12 = inlined_call_operand.vmem [shape: bf16[32,32], index: 12, kind: input, shape index: {}]   ;;  %s3814_s13 = inlined_call_operand.vmem [shape: bf16[32,32], index: 13, kind: input, shape index: {}]   ;;  %s3815_s14 = inlined_call_operand.vmem [shape: bf16[32,128], index: 14, kind: input, shape index: {}]   ;;  %s3816_s15 = inlined_call_operand.vmem [shape: f32[21,32], index: 15, kind: input, shape index: {}]   ;;  %s3817_s16 = inlined_call_operand.vmem [shape: f32[1,64], index: 16, kind: input, shape index: {}]   ;;  %s3818_s17 = inlined_call_operand.vmem [shape: f32[1,64], index: 17, kind: input, shape index: {}]   ;;  %s3819_s18 = inlined_call_operand.vmem [shape: f32[1,64], index: 18, kind: input, shape index: {}]   ;;  %s3820_s19 = inlined_call_operand.vmem [shape: f32[1,96], index: 19, kind: input, shape index: {}]   ;;  %s3821_s20 = inlined_call_operand.vmem [shape: f32[1,64], index: 20, kind: input, shape index: {}]   ;;  %s3822_s21 = inlined_call_operand.vmem [shape: f32[1,32], index: 21, kind: input, shape index: {}]   ;;  %s3823_s22 = inlined_call_operand.vmem [shape: f32[1,128], index: 22, kind: input, shape index: {}]   ;;  %s3824_s23 = inlined_call_operand.vmem [shape: f32[2,8,256], index: 23, kind: output, shape index: {0}]   ;;  %s3825_s24 = inlined_call_operand.hbm [shape: f32[2,8,128], index: 24, kind: output, shape index: {1}]   ;;  %s3826_s25 = inlined_call_operand.hbm [shape: f32[2,8,32], index: 25, kind: output, shape index: {2}]  }
   0x1   :  { %3847 = sst [smem:[#allocation14_spill]] %s3801_s0 }
   0x2   :  { %3848 = sst [smem:[#allocation15_spill]] %s3802_s1 }
   0x3   :  { %3849 = sst [smem:[#allocation16_spill]] %s3803_s2 }
   0x4   :  { %3850 = sst [smem:[#allocation17_spill]] %s3804_s3 }
   0x5   :  { %3851 = sst [smem:[#allocation18_spill]] %s3805_s4 }
   0x6   :  { %3852 = sst [smem:[#allocation19_spill]] %s3806_s5 }
   0x7   :  { %3853 = sst [smem:[#allocation20_spill]] %s3807_s6 }
   0x8   :  { %3854 = sst [smem:[#allocation21_spill]] %s3808_s7 }
   0x9   :  { %3855 = sst [smem:[#allocation22_spill]] %s3809_s8 }
   0xa   :  { %3856 = sst [smem:[#allocation23_spill]] %s3810_s9 }
   0xb   :  { %3857 = sst [smem:[#allocation24_spill]] %s3811_s10 }
   0xc   :  { %3858 = sst [smem:[#allocation25_spill]] %s3812_s11 }
   0xd   :  { %3859 = sst [smem:[#allocation26_spill]] %s3813_s12 }
   0xe   :  { %3860 = sst [smem:[#allocation27_spill]] %s3814_s13 }
   0xf   :  { %3861 = sst [smem:[#allocation28_spill]] %s3815_s14 }
  0x10   :  { %3862 = sst [smem:[#allocation29_spill]] %s3816_s15 }
  0x11   :  { %3863 = sst [smem:[#allocation30_spill]] %s3824_s23 }
  0x12   :  { %31 = vsyncpa [#allocation3], 0 }
  0x13   :  { %33 = vsyncpa [#allocation3 + $0x1], 0 }
  0x14   :  { %34 = vsyncpa [#allocation5], 0 }
  0x15   :  { %36 = vsyncpa [#allocation5 + $0x1], 0  ;;  %s3281_s29 = smov 0   ;;  %s3283_s2 = smov 0  }
  0x16   :  { %s3285_s6 = smov 0   ;;  %s3287_s30 = smov 0  }
  0x17 LB: > { %3864 = sst [smem:[#allocation8_spill]] %s3105_s29  ;;  %s3302_s7 = sadd.s32 4294967295, %s3117_s30   ;;  %s3117_s30 = sphi %s3287_s30, %s3894_s30   ;;  %s3113_s6 = sphi %s3285_s6, %s3896_s6   ;;  %s3109_s2 = sphi %s3283_s2, %s3898_s2   ;;  %s3105_s29 = sphi %s3281_s29, %s3897_s29  }
  0x18   : > { %3865 = sst [smem:[#allocation9_spill]] %s3113_s6  ;;  %s2588_s3 = sadd.s32 4294967294, %s3117_s30  }
  0x19   : > { %3866 = sst [smem:[#allocation10_spill]] %s3117_s30  ;;  %s3306_s26 = sadd.s32 1, %s3117_s30  }
  0x1a   : > { %3867 = sst [smem:[#allocation11_spill]] %s3306_s26  ;;  %s573_s1 = sadd.s32 1, %s3113_s6 }
  0x1b   : > { %s570_s8 = ssub.s32 %s3117_s30, %s3306_s26  ;;  %p583_p0 = scmp.ne.s32.totalorder %s3113_s6, %s3109_s2 }
  0x1c   : > { %p571_p1 = scmp.eq.s32.totalorder %s570_s8, 0  ;;  %p584_p2 = scmp.eq.s32.totalorder %s3302_s7, 1 }
  0x1d   : > { %p589_p3 = scmp.ne.s32.totalorder %s3109_s2, %s3105_s29  ;;  %p590_p4 = scmp.eq.s32.totalorder %s2588_s3, 1 }
  0x1e   : > { %s3317_s27 = scalar_select %p571_p1, %s3113_s6, %s573_s1  }
  0x1f   : > { %p3319_p5 = por %p584_p2, %p583_p0  ;;  %p3323_p6 = por %p590_p4, %p589_p3 }
  0x20   : > { %3868 = sst [smem:[#allocation12_spill]] %s3317_s27  ;;  %p2591_p7 = scmp.ge.s32.totalorder %s3117_s30, 1 }
  0x21   : > { %s3870_s28 = scalar_select %p3323_p6, 1, 0 }
  0x22   : > { %p717_p8 = scmp.lt.s32.totalorder %s3117_s30, 3 }
  0x23   : > { %3871 = sst [smem:[#allocation13_spill]] %s3870_s28 }
  0x24   : > { %p718_p9 = pnand %p2591_p7, %p717_p8 }
  0x25   : > { %p804_p10 = scmp.lt.s32.totalorder (!%p718_p9), %s3302_s7, 1  ;;  %s3872_s1 = sld [smem:[#allocation15_spill]] (!%p718_p9) }
  0x26   : > { %721 = sbr.rel (%p718_p9) target bundleno = 4123 (0x101b), region = 112  ;;  %s3874_s0 = sld [smem:[#allocation18_spill]] (!%p718_p9) }
  0x27   : > { %s3876_s28 = sld [smem:[#allocation17_spill]] (!%p718_p9)  ;;  %s3119_s29 = smov (!%p718_p9), 96  }
  0x28   : > { %s3877_s6 = sld [smem:[#allocation19_spill]] (!%p718_p9)  ;;  %s3121_s30 = smov (!%p718_p9), 32  }
  0x29   : > { %s3879_s15 = sld [smem:[#allocation29_spill]] (!%p718_p9)  ;;  %s3122_s26 = smov (!%p718_p9), 80  }
  0x2a   : > { %s3127_s23 = smov (!%p718_p9), 60   ;;  %s3884_s10 = sld [smem:[#allocation24_spill]] (!%p718_p9) }
  0x2b   : > { %s3331_s9 = scalar_select %p804_p10, %s3302_s7, 1  ;;  %vm1052_vm8 = vcmask 261120  }
  0x2c   : > { %v2831_v30 = vld [vmem:[%s3874_s0 + $0x8] sm:$0xff]  ;;  %v2830_v39 = vld [vmem:[%s3874_s0] sm:$0xff]  ;;  %s3881_s0 = sld [smem:[#allocation21_spill]] }
  0x2d   : > { %s2810_s5 = sshll.u32 %s3331_s9, 7  ;;  %s2809_s27 = sshll.u32 %s3331_s9, 3  ;;  %v2829_v52 = vld [vmem:[%s3876_s28 + $0x8] sm:$0xff]  ;;  %v2828_v53 = vld [vmem:[%s3876_s28] sm:$0xff] }
  0x2e   : > { %s3337_s8 = scalar_lea.vmem %s3872_s1, %s2810_s5  ;;  %s3873_s5 = sld [smem:[#allocation14_spill]] }
  0x2f   : > { %v2819_v0 = vld [vmem:[%s3337_s8 + $0x38] sm:$0xff]  ;;  %v2818_v2 = vld [vmem:[%s3337_s8 + $0x30] sm:$0xff]  ;;  %v2817_v5 = vld [vmem:[%s3337_s8 + $0x28] sm:$0xff]  ;;  %s3878_s1 = smov %s3877_s6  ;;  %s3128_s28 = smov 120  }
  0x30   : > { %v2827_v1 = vld [vmem:[%s3337_s8 + $0x78] sm:$0xff]  ;;  %996 = vmatpush.bf16.msra.mxu0 %v2819_v0  ;;  %v2826_v3 = vld [vmem:[%s3337_s8 + $0x70] sm:$0xff]  ;;  %v2825_v6 = vld [vmem:[%s3337_s8 + $0x68] sm:$0xff]  ;;  %s3885_s11 = sld [smem:[#allocation25_spill]] }
  0x31   : > { %1009 = vmatpush.bf16.msra.mxu1 %v2827_v1  ;;  %v2816_v11 = vld [vmem:[%s3337_s8 + $0x20] sm:$0xff]  ;;  %v2815_v13 = vld [vmem:[%s3337_s8 + $0x18] sm:$0xff]  ;;  %v2814_v18 = vld [vmem:[%s3337_s8 + $0x10] sm:$0xff]  ;;  %s3886_s13 = sld [smem:[#allocation27_spill]] }
  0x32   : > { %v2824_v12 = vld [vmem:[%s3337_s8 + $0x60] sm:$0xff]  ;;  %v2823_v14 = vld [vmem:[%s3337_s8 + $0x58] sm:$0xff]  ;;  %v2822_v19 = vld [vmem:[%s3337_s8 + $0x50] sm:$0xff]  ;;  %s3887_s12 = sld [smem:[#allocation26_spill]] }
  0x33   : > { %v2813_v21 = vld [vmem:[%s3337_s8 + $0x8] sm:$0xff]  ;;  %v2812_v25 = vld [vmem:[%s3337_s8] sm:$0xff]  ;;  %s3888_s14 = sld [smem:[#allocation28_spill]] }
  0x34   : > { %s808_s3 = scalar_lea.vmem %s3873_s5, %s2809_s27  ;;  %997 = vmatpush.bf16.msra.mxu0 %v2818_v2  ;;  %v2821_v22 = vld [vmem:[%s3337_s8 + $0x48] sm:$0xff]  ;;  %v2820_v26 = vld [vmem:[%s3337_s8 + $0x40] sm:$0xff]  ;;  %s3875_s5 = sld [smem:[#allocation16_spill]] }
  0x35   : > { %v857_v4 = vld [vmem:[%s808_s3] sm:$0xff]  ;;  %1010 = vmatpush.bf16.msra.mxu1 %v2826_v3 }
  0x36   : > { %v858_v7 = vunpack.c.l.bf16 %v857_v4  ;;  %v859_v8 = vunpack.c.h.bf16 %v857_v4  ;;  %v2930_v0 = vld [vmem:[%s3818_s17] ss:$0 sm:$0xff]  ;;  %v2833_v4 = vld [vmem:[%s3877_s6 + $0x8] sm:$0xff]  ;;  %s3125_s6 = smov 88  }
  0x38   : > { %v2601_v9 = vmul.f32 -1.442695, %v858_v7  ;;  %v2602_v10 = vmul.f32 -1.442695, %v859_v8  ;;  %998 = vmatpush.bf16.msra.mxu0 %v2817_v5  ;;  %v2832_v5 = vld [vmem:[%s3878_s1] sm:$0xff]  ;;  %s3664_s1 = sand.u32 1, %s3109_s2  }
  0x39   : > { %1011 = vmatpush.bf16.msra.mxu1 %v2825_v6  ;;  %v2931_v6 = vld [vmem:[%s3817_s16] ss:$0 sm:$0xff] }
  0x3a   : > { %2937 = vpow2.f32 %v2601_v9  ;;  %s817_s3 = scalar_lea.vmem %s3875_s5, %s2809_s27  ;;  %s3880_s5 = sld [smem:[#allocation20_spill]] }
  0x3b   : > { %2939 = vpow2.f32 %v2602_v10  ;;  %v856_v50 = vld [vmem:[%s817_s3] sm:$0xff]  ;;  %s3123_s27 = smov 92   ;;  %s3126_s3 = smov 124  }
  0x3c   : > { %999 = vmatpush.bf16.msra.mxu0 %v2816_v11  ;;  %v1070_v51 = vpack.c.bf16 %v856_v50, %v856_v50 }
  0x3d   : > { %1012 = vmatpush.bf16.msra.mxu1 %v2824_v12 }
  0x40   : > { %v2938_v15 = vpop.eup %2937  ;;  %1000 = vmatpush.bf16.msra.mxu0 %v2815_v13 }
  0x41   : > { %v2940_v16 = vpop.eup %2939  ;;  %v866_v17 = vadd.f32 1.0, %v2938_v15  ;;  %1013 = vmatpush.bf16.msra.mxu1 %v2823_v14  ;;  %v3120_v14 = vmov 32.0  }
  0x42   : > { %v867_v20 = vadd.f32 1.0, %v2940_v16 }
  0x43   : > { %2941 = vrcp.f32 %v866_v17  ;;  %vm873_vm0 = vweird.f32 %v866_v17  ;;  %v879_v28 = vand.u32 2147483648, %v866_v17  ;;  %v877_v32 = vand.u32 2147483647, %v866_v17 }
  0x44   : > { %2943 = vrcp.f32 %v867_v20  ;;  %1001 = vmatpush.bf16.msra.mxu0 %v2814_v18  ;;  %v894_v33 = vand.u32 2147483648, %v867_v20  ;;  %vm888_vm2 = vweird.f32 %v867_v20  ;;  %v892_v35 = vand.u32 2147483647, %v867_v20 }
  0x45   : > { %1014 = vmatpush.bf16.msra.mxu1 %v2822_v19  ;;  %v880_v37 = vor.u32 1.1754944e-38, %v879_v28  ;;  %vm878_vm5 = vcmp.eq.f32.partialorder %v877_v32, 8.507059e+37  ;;  %v3410_v32 = vld [vmem:[%s3879_s15] sm:$0xff] }
  0x46   : > { %v895_v41 = vor.u32 1.1754944e-38, %v894_v33  ;;  %vm893_vm7 = vcmp.eq.f32.partialorder %v892_v35, 8.507059e+37  ;;  %v1329_v33 = vperm.slane %v3410_v32, 6 }
  0x48   : > { %1002 = vmatpush.bf16.msra.mxu0 %v2813_v21 }
  0x49   : > { %v2942_v23 = vpop.eup %2941  ;;  %1015 = vmatpush.bf16.msra.mxu1 %v2821_v22 }
  0x4a   : > { %v2944_v24 = vpop.eup %2943  ;;  %v869_v27 = vmul.f32 %v2942_v23, %v866_v17  ;;  %vm874_vm1 = vweird.f32 %v2942_v23 }
  0x4b   : > { %v884_v29 = vmul.f32 %v2944_v24, %v867_v20  ;;  %vm889_vm3 = vweird.f32 %v2944_v24  ;;  %vm875_vm4 = vmor %vm873_vm0, %vm874_vm1 }
  0x4c   : > { %v870_v31 = vsub.f32 1.0, %v869_v27  ;;  %1003 = vmatpush.bf16.msra.mxu0 %v2812_v25  ;;  %vm890_vm6 = vmor %vm888_vm2, %vm889_vm3  ;;  %v2932_v25 = vld [vmem:[%s3819_s18] ss:$0 sm:$0xff] }
  0x4d   : > { %v885_v34 = vsub.f32 1.0, %v884_v29  ;;  %1016 = vmatpush.bf16.msra.mxu1 %v2820_v26 }
  0x4e   : > { %v871_v36 = vmul.f32 %v2942_v23, %v870_v31 }
  0x4f   : > { %v886_v38 = vmul.f32 %v2944_v24, %v885_v34 }
  0x50   : > { %v872_v40 = vadd.f32 %v2942_v23, %v871_v36  ;;  %1062 = vmatpush.bf16.msrb.mxu0 %v2829_v52 }
  0x51   : > { %1099 = vmatpush.bf16.msrb.mxu1 %v2831_v30  ;;  %v887_v42 = vadd.f32 %v2944_v24, %v886_v38 }
  0x52   : > { %v876_v43 = vsel %vm875_vm4, %v2942_v23, %v872_v40 }
  0x53   : > { %v881_v44 = vsel %vm878_vm5, %v880_v37, %v876_v43  ;;  %v891_v45 = vsel %vm890_vm6, %v2944_v24, %v887_v42  ;;  %v1335_v43 = vperm.slane %v3410_v32, 7 }
  0x54   : > { %v898_v46 = vpack.c.bf16 %v881_v44, %v881_v44  ;;  %v896_v47 = vsel %vm893_vm7, %v895_v41, %v891_v45  ;;  %1063 = vmatpush.bf16.msrb.mxu0 %v2828_v53 }
  0x55   : > { %1100 = vmatpush.bf16.msrb.mxu1 %v2830_v39  ;;  %v899_v48 = vpack.c.bf16 %v896_v47, %v896_v47  ;;  %v1022_v49 = vadd.f32 %v896_v47, %v881_v44 }
  0x56   : > { %1004 = vmatmul.bf16.vlgmr.msra.gmra.mxu0 %v898_v46 }
  0x57   : > { %1017 = vmatmul.bf16.vlgmr.msra.gmra.mxu1 %v899_v48  ;;  %1023 = vadd.xlane.f32.xlu0 %v1022_v49 }
  0x58   : > { %1137 = vmatpush.bf16.msra.mxu0 %v2833_v4 }
  0x5c   : > { %1138 = vmatpush.bf16.msra.mxu0 %v2832_v5  ;;  %v1232_v5 = vperm.slane %v3410_v32, 3 }
  0x67   : > { %2684 = vmatmul.msk.bf16.vlgmr.msrb.gmra.mxu1 %vm1052_vm8, %v1070_v51 }
  0xca   : > { %v1024_v54 = vpop.xlane.xlu0 %1023 }
  0xcb   : > { %v1025_v55 = vadd.f32 1e-08, %v1024_v54 }
  0xcd   : > { %2945 = vrcp.f32 %v1025_v55 }
  0xce   : > { %2947 = vrcp.f32 %v3120_v14 }
  0xd3   : > { %v1005_v56 = vpop.f32.mrf.mxu0  ;;  %v2946_v57 = vpop.eup %2945 }
  0xd4   : > { %v1018_v58 = vpop.f32.mrf.mxu1  ;;  %v2948_v15 = vpop.eup %2947 }
  0xd5   : > { %v1019_v59 = vadd.f32 %v1018_v58, %v1005_v56  ;;  %v1148_v16 = vmul.f32 32.0, %v2948_v15  ;;  %vm1152_vm9 = vweird.f32 %v2948_v15 }
  0xd7   : > { %v1027_v60 = vmul.f32 %v2946_v57, %v1019_v59  ;;  %v1149_v17 = vsub.f32 1.0, %v1148_v16  ;;  %v1226_v57 = vperm.slane %v3410_v32, 2 }
  0xd9   : > { %v1032_v61 = vpack.c.bf16 %v1027_v60, %v1027_v60  ;;  %v1150_v18 = vmul.f32 %v2948_v15, %v1149_v17 }
  0xdb   : > { %2675 = vmatmul.msk.bf16.vlgmr.msrb.gmra.mxu0 %vm1052_vm8, %v1032_v61  ;;  %v1007_v62 = vpop.f32.mrf.mxu0  ;;  %v1151_v19 = vadd.f32 %v2948_v15, %v1150_v18 }
  0xdc   : > { %v1020_v63 = vpop.f32.mrf.mxu1 }
  0xdd   : > { %v3397_v20 = vsel %vm1152_vm9, %v2948_v15, %v1151_v19 }
  0xe4   : > { %v1102_v1 = vpop.f32.mrf.mxu1 }
  0xe5   : > { %v1103_v2 = vadd.f32 %v2930_v0, %v1102_v1 }
  0xe7   : > { %1300 = vrot.lane.b32.xlu0 %v1103_v2, %s3119_s29 }
  0xec   : > { %v1104_v3 = vpop.f32.mrf.mxu1 }
 0x158   : > { %v1065_v7 = vpop.f32.mrf.mxu0 }
 0x159   : > { %v1066_v8 = vadd.f32 %v2931_v6, %v1065_v7  ;;  %v1301_v9 = vpop.permute.xlu0 %1300 }
 0x15a   : > { %v1303_v10 = vsel %vm1052_vm8, %v1301_v9, 0.0  ;;  %v1293_v9 = vperm.slane %v3410_v32, 5 }
 0x15b   : > { %v1106_v11 = vmul.f32 %v1103_v2, %v1066_v8  ;;  %1304 = vadd.xlane.f32.xlu1 %v1303_v10  ;;  %1258 = vrot.lane.b32.xlu2 %v1066_v8, %s3119_s29 }
 0x15d   : > { %v1108_v12 = vpack.c.bf16 %v1106_v11, %v1106_v11 }
 0x15f   : > { %2693 = vmatmul.msk.bf16.vlgmr.msra.gmra.mxu0 %vm1052_vm8, %v1108_v12 }
 0x160   : > { %v1067_v13 = vpop.f32.mrf.mxu0 }
 0x1b5   : > { %v1259_v30 = vpop.permute.xlu2 %1258 }
 0x1b6   : > { %v1261_v31 = vsel %vm1052_vm8, %v1259_v30, 0.0 }
 0x1ce   : > { %v1305_v21 = vpop.xlane.xlu1 %1304 }
 0x1cf   : > { %v1306_v22 = vmul.f32 %v1305_v21, %v3397_v20 }
 0x1d1   : > { %v1307_v23 = vsub.f32 %v1103_v2, %v1306_v22  ;;  %v1173_v22 = vperm.slane %v3410_v32, 0 }
 0x1d3   : > { %v1308_v24 = vmul.f32 %v1307_v23, %v1307_v23 }
 0x1d5   : > { %1310 = vrot.lane.b32.xlu2 %v1308_v24, %s3119_s29  ;;  %v1175_v24 = vperm.slane %v3410_v32, 1 }
 0x1dc   : > { %v1140_v26 = vpop.f32.mrf.mxu0 }
 0x1dd   : > { %v1141_v27 = vadd.f32 %v2932_v25, %v1140_v26 }
 0x1df   : > { %1197 = vrot.lane.b32.xlu1 %v1141_v27, %s3119_s29  ;;  %v1144_v29 = vsel %vm1052_vm8, %v1141_v27, 0.0 }
 0x1e4   : > { %v1142_v28 = vpop.f32.mrf.mxu0 }
 0x1fe   : > { %1145 = vadd.xlane.f32.xlu2 %v1144_v29 }
 0x209   : > { %1262 = vadd.xlane.f32.xlu1 %v1261_v31 }
 0x222   : > { %1331 = vrot.lane.b32.xlu1 %v1329_v33, %s3121_s30 }
 0x22a   : > { %1228 = vrot.lane.b32.xlu1 %v1226_v57, %s3121_s30 }
 0x22f   : > { %v1311_v34 = vpop.permute.xlu2 %1310 }
 0x230   : > { %v1313_v35 = vsel %vm1052_vm8, %v1311_v34, 0.0 }
 0x231   : > { %1314 = vadd.xlane.f32.xlu2 %v1313_v35 }
 0x251   : > { %v1198_v36 = vpop.permute.xlu1 %1197 }
 0x252   : > { %v1200_v37 = vsel %vm1052_vm8, %v1198_v36, 0.0 }
 0x253   : > { %1201 = vadd.xlane.f32.xlu0 %v1200_v37 }
 0x271   : > { %v1146_v38 = vpop.xlane.xlu2 %1145 }
 0x272   : > { %v1154_v39 = vmul.f32 %v3397_v20, %v1146_v38 }
 0x274   : > { %v3417_v40 = vsub.f32 %v1141_v27, %v1154_v39 }
 0x276   : > { %v1156_v41 = vmul.f32 %v3417_v40, %v3417_v40 }
 0x278   : > { %v1157_v42 = vsel %vm1052_vm8, %v1156_v41, 0.0 }
 0x279   : > { %1158 = vadd.xlane.f32.xlu0 %v1157_v42 }
 0x27c   : > { %v1263_v46 = vpop.xlane.xlu1 %1262 }
 0x27d   : > { %v1264_v48 = vmul.f32 %v1263_v46, %v3397_v20 }
 0x27f   : > { %v3431_v50 = vsub.f32 %v1066_v8, %v1264_v48  ;;  %v1287_v8 = vperm.slane %v3410_v32, 4 }
 0x281   : > { %v1266_v53 = vmul.f32 %v3431_v50, %v3431_v50 }
 0x28d   : > { %1337 = vrot.lane.b32.xlu0 %v1335_v43, %s3121_s30 }
 0x294   : > { %v1332_v1 = vpop.permute.xlu1 %1331 }
 0x29c   : > { %v1229_v48 = vpop.permute.xlu1 %1228 }
 0x2a4   : > { %v1315_v51 = vpop.xlane.xlu2 %1314 }
 0x2a5   : > { %v1316_v52 = vmul.f32 %v1315_v51, %v3397_v20 }
 0x2a7   : > { %v1317_v54 = vadd.f32 1e-05, %v1316_v52 }
 0x2a9   : > { %2949 = vrsqrt.f32 %v1317_v54  ;;  %vm1324_vm11 = vweird.f32 %v1317_v54 }
 0x2af   : > { %v2950_v55 = vpop.eup %2949 }
 0x2b0   : > { %v1319_v56 = vmul.f32 %v2950_v55, %v1317_v54  ;;  %vm1325_vm10 = vweird.f32 %v2950_v55 }
 0x2b1   : > { %vm1326_vm12 = vmor %vm1324_vm11, %vm1325_vm10 }
 0x2b2   : > { %v1320_v58 = vmul.f32 %v2950_v55, %v1319_v56 }
 0x2b4   : > { %v1321_v59 = vmul.f32 0.5, %v1320_v58 }
 0x2b6   : > { %v1322_v60 = vsub.f32 1.5, %v1321_v59 }
 0x2b8   : > { %v1323_v61 = vmul.f32 %v2950_v55, %v1322_v60 }
 0x2ba   : > { %v1327_v62 = vsel %vm1326_vm12, %v2950_v55, %v1323_v61 }
 0x2bb   : > { %v1328_v0 = vmul.f32 %v1327_v62, %v1307_v23 }
 0x2bd   : > { %v1334_v2 = vmul.f32 %v1332_v1, %v1328_v0 }
 0x2c6   : > { %v1202_v44 = vpop.xlane.xlu0 %1201 }
 0x2c7   : > { %v1203_v45 = vmul.f32 %v1202_v44, %v3397_v20 }
 0x2c9   : > { %v3425_v47 = vsub.f32 %v1141_v27, %v1203_v45 }
 0x2cb   : > { %v1205_v49 = vmul.f32 %v3425_v47, %v3425_v47 }
 0x2cd   : > { %1207 = vrot.lane.b32.xlu2 %v1205_v49, %s3119_s29 }
 0x2d5   : > { %1268 = vrot.lane.b32.xlu2 %v1266_v53, %s3119_s29 }
 0x2ec   : > { %v1159_v63 = vpop.xlane.xlu0 %1158 }
 0x2ed   : > { %v1160_v6 = vmul.f32 %v1159_v63, %v3397_v20 }
 0x2ef   : > { %v1161_v7 = vadd.f32 1e-05, %v1160_v6  ;;  %v2834_v6 = vld [vmem:[%s3880_s5] sm:$0xff] }
 0x2f1   : > { %2951 = vrsqrt.f32 %v1161_v7  ;;  %vm1168_vm14 = vweird.f32 %v1161_v7 }
 0x2f7   : > { %v2952_v10 = vpop.eup %2951 }
 0x2f8   : > { %v1163_v11 = vmul.f32 %v2952_v10, %v1161_v7  ;;  %vm1169_vm13 = vweird.f32 %v2952_v10 }
 0x2f9   : > { %vm1170_vm15 = vmor %vm1168_vm14, %vm1169_vm13 }
 0x2fa   : > { %v1164_v13 = vmul.f32 %v2952_v10, %v1163_v11 }
 0x2fc   : > { %v1165_v15 = vmul.f32 0.5, %v1164_v13 }
 0x2fe   : > { %v1166_v17 = vsub.f32 1.5, %v1165_v15 }
 0x2ff   : > { %v1338_v3 = vpop.permute.xlu0 %1337 }
 0x300   : > { %v1340_v4 = vadd.f32 %v1338_v3, %v1334_v2  ;;  %v1167_v19 = vmul.f32 %v2952_v10, %v1166_v17 }
 0x302   : > { %1343 = vrot.lane.b32.xlu0 %v1340_v4, %s3119_s29  ;;  %v1171_v21 = vsel %vm1170_vm15, %v2952_v10, %v1167_v19  ;;  %v2835_v4 = vld [vmem:[%s3880_s5 + $0x8] sm:$0xff] }
 0x303   : > { %v1172_v23 = vmul.f32 %v1171_v21, %v3417_v40  ;;  %1382 = vmatpush.bf16.msra.mxu1 %v2835_v4 }
 0x305   : > { %v1174_v25 = vmul.f32 %v1173_v22, %v1172_v23 }
 0x307   : > { %v1176_v26 = vadd.f32 %v1175_v24, %v1174_v25  ;;  %1383 = vmatpush.bf16.msra.mxu1 %v2834_v6 }
 0x309   : > { %v2694_v27 = vmul.f32 -1.442695, %v1176_v26 }
 0x30a   : > { %1234 = vrot.lane.b32.xlu0 %v1232_v5, %s3121_s30 }
 0x30b   : > { %2953 = vpow2.f32 %v2694_v27 }
 0x311   : > { %v2954_v28 = vpop.eup %2953 }
 0x312   : > { %1289 = vrot.lane.b32.xlu0 %v1287_v8, %s3121_s30  ;;  %v1180_v29 = vadd.f32 1.0, %v2954_v28 }
 0x314   : > { %2955 = vrcp.f32 %v1180_v29  ;;  %v1192_v36 = vand.u32 2147483648, %v1180_v29  ;;  %vm1186_vm1 = vweird.f32 %v1180_v29  ;;  %v1190_v37 = vand.u32 2147483647, %v1180_v29 }
 0x316   : > { %v1193_v39 = vor.u32 1.1754944e-38, %v1192_v36  ;;  %vm1191_vm3 = vcmp.eq.f32.partialorder %v1190_v37, 8.507059e+37 }
 0x31a   : > { %1295 = vrot.lane.b32.xlu0 %v1293_v9, %s3121_s30  ;;  %v2956_v30 = vpop.eup %2955 }
 0x31b   : > { %v1182_v31 = vmul.f32 %v2956_v30, %v1180_v29  ;;  %vm1187_vm0 = vweird.f32 %v2956_v30  ;;  %v3468_v29 = vld [vmem:[%s3879_s15 + $0x8] sm:$0xff] }
 0x31c   : > { %vm1188_vm2 = vmor %vm1186_vm1, %vm1187_vm0 }
 0x31d   : > { %v1183_v33 = vsub.f32 1.0, %v1182_v31 }
 0x31f   : > { %v1184_v34 = vmul.f32 %v2956_v30, %v1183_v33 }
 0x321   : > { %v1185_v35 = vadd.f32 %v2956_v30, %v1184_v34 }
 0x323   : > { %v1189_v38 = vsel %vm1188_vm2, %v2956_v30, %v1185_v35  ;;  %v1357_v30 = vperm.slane %v3468_v29, 0  ;;  %vm1457_vm2 = vcmask 31744  }
 0x324   : > { %v1194_v32 = vsel %vm1191_vm3, %v1193_v39, %v1189_v38  ;;  %vm1496_vm3 = vcmask 1043456  }
 0x327   : > { %v1208_v12 = vpop.permute.xlu2 %1207 }
 0x328   : > { %v1210_v14 = vsel %vm1052_vm8, %v1208_v12, 0.0 }
 0x329   : > { %1211 = vadd.xlane.f32.xlu2 %v1210_v14 }
 0x32f   : > { %v1269_v16 = vpop.permute.xlu2 %1268 }
 0x330   : > { %v1271_v18 = vsel %vm1052_vm8, %v1269_v16, 0.0 }
 0x331   : > { %1272 = vadd.xlane.f32.xlu1 %v1271_v18 }
 0x374   : > { %v1344_v40 = vpop.permute.xlu0 %1343 }
 0x375   : > { %v1346_v41 = vmul.f32 %v1344_v40, %v1194_v32  ;;  %v2837_v40 = vld [vmem:[%s3881_s0 + $0x8] sm:$0xff] }
 0x376   : > { %1446 = vmatpush.bf16.msra.mxu2 %v2837_v40 }
 0x377   : > { %1348 = vrot.lane.b32.xlu0 %v1346_v41, %s3121_s30  ;;  %v2836_v41 = vld [vmem:[%s3881_s0] sm:$0xff]  ;;  %s3124_s30 = smov 104   ;;  %s3844_s0 = sshll.u32 %s3664_s1, 3 }
 0x37a   : > { %1447 = vmatpush.bf16.msra.mxu2 %v2836_v41 }
 0x37c   : > { %v1235_v59 = vpop.permute.xlu0 %1234 }
 0x384   : > { %v1290_v10 = vpop.permute.xlu0 %1289 }
 0x38c   : > { %v1296_v18 = vpop.permute.xlu0 %1295 }
 0x39c   : > { %v1212_v42 = vpop.xlane.xlu2 %1211 }
 0x39d   : > { %v1213_v43 = vmul.f32 %v1212_v42, %v3397_v20 }
 0x39f   : > { %v1214_v44 = vadd.f32 1e-05, %v1213_v43 }
 0x3a1   : > { %2957 = vrsqrt.f32 %v1214_v44  ;;  %vm1221_vm5 = vweird.f32 %v1214_v44 }
 0x3a4   : > { %v1273_v55 = vpop.xlane.xlu1 %1272 }
 0x3a5   : > { %v1274_v58 = vmul.f32 %v1273_v55, %v3397_v20 }
 0x3a7   : > { %v2958_v45 = vpop.eup %2957  ;;  %v1275_v62 = vadd.f32 1e-05, %v1274_v58 }
 0x3a8   : > { %v1216_v46 = vmul.f32 %v2958_v45, %v1214_v44  ;;  %vm1222_vm4 = vweird.f32 %v2958_v45 }
 0x3a9   : > { %vm1223_vm6 = vmor %vm1221_vm5, %vm1222_vm4  ;;  %vm1282_vm9 = vweird.f32 %v1275_v62  ;;  %vm1478_vm4 = vcmask 64512   ;;  %vm1942_vm5 = vcmask 97280  }
 0x3aa   : > { %v1217_v49 = vmul.f32 %v2958_v45, %v1216_v46 }
 0x3ac   : > { %v1218_v51 = vmul.f32 0.5, %v1217_v49 }
 0x3ae   : > { %v1219_v52 = vsub.f32 1.5, %v1218_v51 }
 0x3b0   : > { %v1220_v53 = vmul.f32 %v2958_v45, %v1219_v52 }
 0x3b2   : > { %v1224_v54 = vsel %vm1223_vm6, %v2958_v45, %v1220_v53  ;;  %v1411_v53 = vperm.slane %v3468_v29, 1  ;;  %vm1944_vm6 = vcmask 130048  }
 0x3b3   : > { %v1225_v56 = vmul.f32 %v1224_v54, %v3425_v47 }
 0x3b5   : > { %v1231_v57 = vmul.f32 %v1229_v48, %v1225_v56  ;;  %v1413_v56 = vperm.slane %v3468_v29, 2 }
 0x3b7   : > { %v1237_v60 = vadd.f32 %v1235_v59, %v1231_v57 }
 0x3b9   : > { %v2695_v61 = vmul.f32 -1.442695, %v1237_v60 }
 0x3bb   : > { %2959 = vpow2.f32 %v2695_v61  ;;  %v2933_v61 = vld [vmem:[%s3820_s19] ss:$0 sm:$0xff] }
 0x3bc   : > { %2961 = vrsqrt.f32 %v1275_v62 }
 0x3c1   : > { %v2960_v63 = vpop.eup %2959 }
 0x3c2   : > { %v2962_v0 = vpop.eup %2961  ;;  %v1241_v1 = vadd.f32 1.0, %v2960_v63 }
 0x3c3   : > { %v1277_v2 = vmul.f32 %v2962_v0, %v1275_v62  ;;  %vm1283_vm7 = vweird.f32 %v2962_v0 }
 0x3c4   : > { %2963 = vrcp.f32 %v1241_v1  ;;  %vm1284_vm10 = vmor %vm1282_vm9, %vm1283_vm7  ;;  %v1253_v16 = vand.u32 2147483648, %v1241_v1  ;;  %vm1247_vm12 = vweird.f32 %v1241_v1  ;;  %v1251_v17 = vand.u32 2147483647, %v1241_v1 }
 0x3c5   : > { %v1278_v3 = vmul.f32 %v2962_v0, %v1277_v2  ;;  %vm1946_vm7 = vcmask 162816   ;;  %vm1948_vm9 = vcmask 195584  }
 0x3c6   : > { %v1254_v22 = vor.u32 1.1754944e-38, %v1253_v16  ;;  %vm1252_vm14 = vcmp.eq.f32.partialorder %v1251_v17, 8.507059e+37 }
 0x3c7   : > { %v1279_v5 = vmul.f32 0.5, %v1278_v3 }
 0x3c9   : > { %v1280_v8 = vsub.f32 1.5, %v1279_v5 }
 0x3ca   : > { %v2964_v47 = vpop.eup %2963 }
 0x3cb   : > { %v1243_v7 = vmul.f32 %v2964_v47, %v1241_v1  ;;  %v1281_v11 = vmul.f32 %v2962_v0, %v1280_v8  ;;  %vm1248_vm11 = vweird.f32 %v2964_v47 }
 0x3cc   : > { %vm1249_vm13 = vmor %vm1247_vm12, %vm1248_vm11 }
 0x3cd   : > { %v1244_v9 = vsub.f32 1.0, %v1243_v7  ;;  %v1285_v13 = vsel %vm1284_vm10, %v2962_v0, %v1281_v11  ;;  %vm1950_vm10 = vcmask 228352  }
 0x3ce   : > { %v1286_v14 = vmul.f32 %v1285_v13, %v3431_v50 }
 0x3cf   : > { %v1245_v12 = vmul.f32 %v2964_v47, %v1244_v9 }
 0x3d0   : > { %v1292_v19 = vmul.f32 %v1290_v10, %v1286_v14 }
 0x3d1   : > { %v1246_v15 = vadd.f32 %v2964_v47, %v1245_v12 }
 0x3d2   : > { %v1298_v24 = vadd.f32 %v1296_v18, %v1292_v19 }
 0x3d3   : > { %v1250_v21 = vsel %vm1249_vm13, %v2964_v47, %v1246_v15 }
 0x3d4   : > { %v1255_v23 = vsel %vm1252_vm14, %v1254_v22, %v1250_v21  ;;  %vm2085_vm14 = vcmask 523264  }
 0x3d5   : > { %v1341_v25 = vmul.f32 %v1298_v24, %v1255_v23 }
 0x3e9   : > { %v1349_v26 = vpop.permute.xlu0 %1348 }
 0x3ea   : > { %v1351_v27 = vadd.f32 %v1349_v26, %v1341_v25 }
 0x3ec   : > { %v1352_v28 = vpack.c.bf16 %v1351_v27, %v1351_v27 }
 0x3ee   : > { %1359 = vrot.lane.b32.xlu0 %v1352_v28, %s3119_s29 }
 0x460   : > { %v1360_v50 = vpop.permute.xlu0 %1359 }
 0x461   : > { %2704 = vmatmul.msk.bf16.vlgmr.msra.gmra.mxu1 %vm1052_vm8, %v1360_v50 }
 0x4de   : > { %v1385_v31 = vpop.f32.mrf.mxu1 }
 0x4df   : > { %v1386_v33 = vadd.f32 %v1385_v31, %v1357_v30 }
 0x4e1   : > { %v1389_v34 = vsel %vm1052_vm8, %v1386_v33, 0.0 }
 0x4e2   : > { %1390 = vadd.xlane.f32.xlu2 %v1389_v34 }
 0x4e6   : > { %v1387_v35 = vpop.f32.mrf.mxu1 }
 0x555   : > { %v1391_v36 = vpop.xlane.xlu2 %1390 }
 0x556   : > { %v1392_v37 = vmul.f32 %v1391_v36, %v3397_v20 }
 0x558   : > { %v1393_v38 = vsub.f32 %v1386_v33, %v1392_v37 }
 0x55a   : > { %v1394_v39 = vmul.f32 %v1393_v38, %v1393_v38 }
 0x55c   : > { %v1395_v32 = vsel %vm1052_vm8, %v1394_v39, 0.0 }
 0x55d   : > { %1396 = vadd.xlane.f32.xlu0 %v1395_v32 }
 0x5d0   : > { %v1397_v42 = vpop.xlane.xlu0 %1396 }
 0x5d1   : > { %v1398_v43 = vmul.f32 %v1397_v42, %v3397_v20 }
 0x5d3   : > { %v1399_v44 = vadd.f32 1e-05, %v1398_v43 }
 0x5d5   : > { %2965 = vrsqrt.f32 %v1399_v44  ;;  %vm1406_vm0 = vweird.f32 %v1399_v44 }
 0x5db   : > { %v2966_v45 = vpop.eup %2965 }
 0x5dc   : > { %v1401_v46 = vmul.f32 %v2966_v45, %v1399_v44  ;;  %vm1407_vm15 = vweird.f32 %v2966_v45 }
 0x5dd   : > { %vm1408_vm1 = vmor %vm1406_vm0, %vm1407_vm15 }
 0x5de   : > { %v1402_v48 = vmul.f32 %v2966_v45, %v1401_v46 }
 0x5e0   : > { %v1403_v49 = vmul.f32 0.5, %v1402_v48 }
 0x5e2   : > { %v1404_v51 = vsub.f32 1.5, %v1403_v49 }
 0x5e4   : > { %v1405_v52 = vmul.f32 %v2966_v45, %v1404_v51 }
 0x5e6   : > { %v1409_v54 = vsel %vm1408_vm1, %v2966_v45, %v1405_v52 }
 0x5e7   : > { %v1410_v55 = vmul.f32 %v1409_v54, %v1393_v38 }
 0x5e9   : > { %v1412_v57 = vmul.f32 %v1411_v53, %v1410_v55 }
 0x5eb   : > { %v1414_v58 = vadd.f32 %v1413_v56, %v1412_v57 }
 0x5ed   : > { %v3483_v59 = vmax.f32 %v1414_v58, 0.0 }
 0x5ef   : > { %v1417_v60 = vpack.c.bf16 %v3483_v59, %v3483_v59 }
 0x5f1   : > { %2713 = vmatmul.msk.bf16.vlgmr.msra.gmra.mxu2 %vm1052_vm8, %v1417_v60 }
 0x674   : > { %v1449_v62 = vpop.f32.mrf.mxu2 }
 0x675   : > { %v1450_v63 = vadd.f32 %v2933_v61, %v1449_v62 }
 0x677   : > { %v3491_v0 = vpack.c.bf16 %v1450_v63, %v1450_v63 }
 0x679   : > { %1686 = vrot.lane.b32.xlu0 %v3491_v0, %s3122_s26  ;;  %1515 = vrot.lane.b32.xlu1 %v3491_v0, %s3123_s27  ;;  %s3129_s26 = smov 84   ;;  %s3131_s27 = smov 116  }
 0x67a   : > { %1455 = vrot.lane.b32.xlu2 %v3491_v0, %s3119_s29  ;;  %s3130_s29 = smov 76  }
 0x67c   : > { %v1451_v1 = vpop.f32.mrf.mxu2 }
 0x681   : > { %1798 = vrot.lane.b32.xlu0 %v3491_v0, %s3124_s30  ;;  %1572 = vrot.lane.b32.xlu1 %v3491_v0, %s3125_s6  ;;  %s3132_s30 = smov 108   ;;  %s3133_s6 = smov 112  }
 0x682   : > { %1513 = vrot.lane.b32.xlu2 %v3491_v0, %s3126_s3  ;;  %s3134_s3 = smov 68  }
 0x689   : > { %1549 = vrot.lane.b32.xlu0 %v3491_v0, %s3127_s23  ;;  %1570 = vrot.lane.b32.xlu1 %v3491_v0, %s3128_s28  ;;  %s3135_s23 = smov 72   ;;  %s3136_s28 = smov 100  }
 0x68a   : > { %1629 = vrot.lane.b32.xlu2 %v3491_v0, %s3129_s26  ;;  %s3137_s26 = smov 64  }
 0x691   : > { %1743 = vrot.lane.b32.xlu1 %v3491_v0, %s3130_s29  ;;  %s3138_s29 = smov 56  }
 0x692   : > { %1627 = vrot.lane.b32.xlu2 %v3491_v0, %s3131_s27  ;;  %s3139_s27 = smov 44  }
 0x699   : > { %1741 = vrot.lane.b32.xlu1 %v3491_v0, %s3132_s30  ;;  %s3140_s30 = smov 52  }
 0x69a   : > { %1684 = vrot.lane.b32.xlu2 %v3491_v0, %s3133_s6  ;;  %s3141_s6 = smov 48  }
 0x6a1   : > { %1857 = vrot.lane.b32.xlu1 %v3491_v0, %s3134_s3  ;;  %s3142_s3 = smov 40  }
 0x6a2   : > { %1800 = vrot.lane.b32.xlu2 %v3491_v0, %s3135_s23  ;;  %s3143_s23 = smov 36  }
 0x6aa   : > { %1855 = vrot.lane.b32.xlu2 %v3491_v0, %s3136_s28  ;;  %s3144_s28 = smov 4  }
 0x6d4   : > { %v1456_v2 = vpop.permute.xlu2 %1455 }
 0x6d5   : > { %v1462_v3 = vsel %vm1457_vm2, %v1456_v2, 0 }
 0x6d6   : > { %1471 = vmatpush.bf16.xpose.msra.mxu3 %v1462_v3 }
 0x6dc   : > { %v1514_v4 = vpop.permute.xlu2 %1513 }
 0x6dd   : > { %2714 = vmatmul.msk.bf16.vlgmr.msra.gmra.mxu3 %vm1457_vm2, %v3491_v0 }
 0x6e4   : > { %v1630_v47 = vpop.permute.xlu2 %1629 }
 0x6e5   : > { %v1635_v9 = vsel %vm1457_vm2, %v1630_v47, 0 }
 0x6eb   : > { %v1687_v5 = vpop.permute.xlu0 %1686  ;;  %v1516_v6 = vpop.permute.xlu1 %1515 }
 0x6ec   : > { %v1521_v7 = vsel %vm1457_vm2, %v1516_v6, 0  ;;  %v1628_v8 = vpop.permute.xlu2 %1627  ;;  %v1692_v14 = vsel %vm1457_vm2, %v1687_v5, 0 }
 0x6ed   : > { %1530 = vmatpush.bf16.xpose.msrb.mxu1 %v1521_v7 }
 0x6f3   : > { %v1799_v10 = vpop.permute.xlu0 %1798  ;;  %v1573_v11 = vpop.permute.xlu1 %1572 }
 0x6f4   : > { %v1685_v12 = vpop.permute.xlu2 %1684  ;;  %2716 = vmatmul.msk.bf16.vlgmr.msrb.gmra.mxu1 %vm1457_vm2, %v1514_v4  ;;  %v1578_v13 = vsel %vm1457_vm2, %v1573_v11, 0 }
 0x6f5   : > { %1644 = vmatpush.bf16.xpose.msra.mxu1 %v1635_v9  ;;  %1587 = vmatpush.bf16.xpose.msrb.mxu3 %v1578_v13 }
 0x6fb   : > { %v1550_v15 = vpop.permute.xlu0 %1549  ;;  %v1571_v16 = vpop.permute.xlu1 %1570 }
 0x6fc   : > { %v1801_v17 = vpop.permute.xlu2 %1800  ;;  %2718 = vmatmul.msk.bf16.vlgmr.msrb.gmra.mxu3 %vm1457_vm2, %v1571_v16  ;;  %v1555_v18 = vsel %vm1496_vm3, %v1550_v15, 0 }
 0x6fd   : > { %1701 = vmatpush.bf16.xpose.msra.mxu3 %v1692_v14  ;;  %v1806_v19 = vsel %vm1457_vm2, %v1801_v17, 0  ;;  %1564 = vmatpush.bf16.msrb.mxu2 %v1555_v18 }
 0x703   : > { %v1744_v21 = vpop.permute.xlu1 %1743 }
 0x704   : > { %v1749_v22 = vsel %vm1457_vm2, %v1744_v21, 0  ;;  %2720 = vmatmul.msk.bf16.vlgmr.msra.gmra.mxu1 %vm1457_vm2, %v1628_v8  ;;  %v1856_v26 = vpop.permute.xlu2 %1855 }
 0x705   : > { %1815 = vmatpush.bf16.xpose.msrb.mxu3 %v1806_v19  ;;  %1758 = vmatpush.bf16.xpose.msrb.mxu1 %v1749_v22 }
 0x70b   : > { %v1742_v23 = vpop.permute.xlu1 %1741 }
 0x70c   : > { %2722 = vmatmul.msk.bf16.vlgmr.msra.gmra.mxu3 %vm1457_vm2, %v1685_v12 }
 0x713   : > { %v1858_v24 = vpop.permute.xlu1 %1857 }
 0x714   : > { %v1863_v25 = vsel %vm1457_vm2, %v1858_v24, 0  ;;  %2724 = vmatmul.msk.bf16.vlgmr.msrb.gmra.mxu1 %vm1457_vm2, %v1742_v23 }
 0x715   : > { %1872 = vmatpush.bf16.xpose.msra.mxu1 %v1863_v25 }
 0x71c   : > { %2726 = vmatmul.msk.bf16.vlgmr.msrb.gmra.mxu3 %vm1457_vm2, %v1799_v10 }
 0x724   : > { %2728 = vmatmul.msk.bf16.vlgmr.msra.gmra.mxu1 %vm1457_vm2, %v1856_v26 }
 0x760   : > { %v1473_v27 = vpop.f32.mrf.mxu3 }
 0x761   : > { %v1477_v28 = vmul.f32 0.5, %v1473_v27 }
 0x763   : > { %v1479_v50 = vsel %vm1478_vm4, %v1477_v28, -inf }
 0x764   : > { %1480 = vmax.xlane.f32.xlu0 %v1479_v50 }
 0x768   : > { %v1475_v30 = vpop.f32.mrf.mxu3 }
 0x771   : > { %v1532_v31 = vpop.f32.mrf.mxu1 }
 0x772   : > { %v1536_v33 = vmul.f32 0.5, %v1532_v31 }
 0x774   : > { %v1537_v34 = vsel %vm1478_vm4, %v1536_v33, -inf }
 0x775   : > { %1538 = vmax.xlane.f32.xlu1 %v1537_v34 }
 0x779   : > { %v1534_v35 = vpop.f32.mrf.mxu1 }
 0x77f   : > { %v1589_v36 = vpop.f32.mrf.mxu3 }
 0x780   : > { %v1593_v37 = vmul.f32 0.5, %v1589_v36 }
 0x781   : > { %v1646_v38 = vpop.f32.mrf.mxu1 }
 0x782   : > { %v1650_v39 = vmul.f32 0.5, %v1646_v38  ;;  %v1594_v32 = vsel %vm1478_vm4, %v1593_v37, -inf }
 0x783   : > { %1595 = vmax.xlane.f32.xlu1 %v1594_v32 }
 0x784   : > { %v1651_v40 = vsel %vm1478_vm4, %v1650_v39, -inf }
 0x785   : > { %1652 = vmax.xlane.f32.xlu2 %v1651_v40 }
 0x787   : > { %v1591_v41 = vpop.f32.mrf.mxu3 }
 0x789   : > { %v1648_v42 = vpop.f32.mrf.mxu1 }
 0x78f   : > { %v1703_v43 = vpop.f32.mrf.mxu3 }
 0x790   : > { %v3532_v44 = vmul.f32 0.5, %v1703_v43 }
 0x791   : > { %v1760_v45 = vpop.f32.mrf.mxu1 }
 0x792   : > { %v1764_v46 = vmul.f32 0.5, %v1760_v45  ;;  %v1708_v48 = vsel %vm1478_vm4, %v3532_v44, -inf }
 0x793   : > { %1709 = vmax.xlane.f32.xlu2 %v1708_v48 }
 0x794   : > { %v1765_v49 = vsel %vm1478_vm4, %v1764_v46, -inf }
 0x795   : > { %1766 = vmax.xlane.f32.xlu0 %v1765_v49 }
 0x797   : > { %v1705_v51 = vpop.f32.mrf.mxu3 }
 0x799   : > { %v1762_v52 = vpop.f32.mrf.mxu1 }
 0x79f   : > { %v1817_v53 = vpop.f32.mrf.mxu3 }
 0x7a0   : > { %v1821_v54 = vmul.f32 0.5, %v1817_v53 }
 0x7a1   : > { %v1874_v55 = vpop.f32.mrf.mxu1 }
 0x7a2   : > { %v3537_v56 = vmul.f32 0.5, %v1874_v55  ;;  %v1822_v57 = vsel %vm1478_vm4, %v1821_v54, -inf }
 0x7a3   : > { %1823 = vmax.xlane.f32.xlu2 %v1822_v57 }
 0x7a4   : > { %v1879_v58 = vsel %vm1478_vm4, %v3537_v56, -inf }
 0x7a5   : > { %1880 = vmax.xlane.f32.xlu1 %v1879_v58 }
 0x7a7   : > { %v1819_v60 = vpop.f32.mrf.mxu3 }
 0x7a9   : > { %v1876_v61 = vpop.f32.mrf.mxu1 }
 0x7bb   : > { %1491 = vrot.lane.b32.xlu2 %v3491_v0, %s3137_s26  ;;  %s3145_s26 = smov 12  }
 0x7be   : > { %1606 = vrot.lane.b32.xlu1 %v3491_v0, %s3138_s29  ;;  %s3146_s29 = smov 8  }
 0x7c6   : > { %1777 = vrot.lane.b32.xlu1 %v3491_v0, %s3139_s27  ;;  %s3147_s27 = smov 20  }
 0x7d7   : > { %v1481_v62 = vpop.xlane.xlu0 %1480 }
 0x7d8   : > { %v1482_v63 = vsub.f32 %v1477_v28, %v1481_v62 }
 0x7da   : > { %v1483_v1 = vmul.f32 1.442695, %v1482_v63 }
 0x7dc   : > { %2967 = vpow2.f32 %v1483_v1 }
 0x7e2   : > { %v3545_v47 = vpop.eup %2967 }
 0x7e3   : > { %v1485_v5 = vsel %vm1478_vm4, %v3545_v47, 0.0 }
 0x7e8   : > { %v1539_v2 = vpop.xlane.xlu1 %1538 }
 0x7e9   : > { %v1540_v3 = vsub.f32 %v1536_v33, %v1539_v2 }
 0x7eb   : > { %v1541_v4 = vmul.f32 1.442695, %v1540_v3 }
 0x7ed   : > { %2969 = vpow2.f32 %v1541_v4 }
 0x7f0   : > { %1486 = vadd.xlane.f32.xlu1 %v1485_v5 }
 0x7f3   : > { %v3549_v6 = vpop.eup %2969 }
 0x7f4   : > { %v1543_v7 = vsel %vm1478_vm4, %v3549_v6, 0.0 }
 0x7f5   : > { %1544 = vadd.xlane.f32.xlu0 %v1543_v7 }
 0x7f6   : > { %v1596_v8 = vpop.xlane.xlu1 %1595 }
 0x7f7   : > { %v1597_v11 = vsub.f32 %v1593_v37, %v1596_v8 }
 0x7f8   : > { %v1653_v9 = vpop.xlane.xlu2 %1652 }
 0x7f9   : > { %v1654_v10 = vsub.f32 %v1650_v39, %v1653_v9  ;;  %v1598_v13 = vmul.f32 1.442695, %v1597_v11 }
 0x7fb   : > { %v1655_v12 = vmul.f32 1.442695, %v1654_v10 }
 0x7fd   : > { %2971 = vpow2.f32 %v1655_v12 }
 0x7fe   : > { %2973 = vpow2.f32 %v1598_v13 }
 0x803   : > { %v3553_v14 = vpop.eup %2971 }
 0x804   : > { %v1657_v15 = vsel %vm1478_vm4, %v3553_v14, 0.0  ;;  %v3557_v17 = vpop.eup %2973 }
 0x805   : > { %1658 = vadd.xlane.f32.xlu1 %v1657_v15  ;;  %v1600_v21 = vsel %vm1478_vm4, %v3557_v17, 0.0 }
 0x806   : > { %v1710_v22 = vpop.xlane.xlu2 %1709 }
 0x807   : > { %v1711_v31 = vsub.f32 %v3532_v44, %v1710_v22 }
 0x808   : > { %v1767_v16 = vpop.xlane.xlu0 %1766 }
 0x809   : > { %v1768_v18 = vsub.f32 %v1764_v46, %v1767_v16  ;;  %1663 = vrot.lane.b32.xlu0 %v3491_v0, %s3140_s30  ;;  %v1712_v34 = vmul.f32 1.442695, %v1711_v31  ;;  %s3148_s30 = smov 16  }
 0x80b   : > { %v1769_v19 = vmul.f32 1.442695, %v1768_v18 }
 0x80d   : > { %2975 = vpow2.f32 %v1769_v19  ;;  %1601 = vadd.xlane.f32.xlu1 %v1600_v21 }
 0x813   : > { %v3562_v23 = vpop.eup %2975 }
 0x814   : > { %v1771_v24 = vsel %vm1478_vm4, %v3562_v23, 0.0 }
 0x815   : > { %1772 = vadd.xlane.f32.xlu2 %v1771_v24 }
 0x816   : > { %v1824_v25 = vpop.xlane.xlu2 %1823 }
 0x817   : > { %v1825_v26 = vsub.f32 %v1821_v54, %v1824_v25 }
 0x818   : > { %v1881_v35 = vpop.xlane.xlu1 %1880 }
 0x819   : > { %v1826_v27 = vmul.f32 1.442695, %v1825_v26  ;;  %v1882_v32 = vsub.f32 %v3537_v56, %v1881_v35 }
 0x81b   : > { %2977 = vpow2.f32 %v1826_v27  ;;  %v1883_v40 = vmul.f32 1.442695, %v1882_v32 }
 0x81c   : > { %2979 = vpow2.f32 %v1712_v34 }
 0x81d   : > { %2981 = vpow2.f32 %v1883_v40 }
 0x81e   : > { %v1492_v28 = vpop.permute.xlu2 %1491 }
 0x81f   : > { %v1498_v50 = vsel %vm1496_vm3, %v1492_v28, 0 }
 0x820   : > { %1507 = vmatpush.bf16.msrb.mxu0 %v1498_v50 }
 0x821   : > { %v3567_v30 = vpop.eup %2977 }
 0x822   : > { %v1828_v33 = vsel %vm1478_vm4, %v3567_v30, 0.0  ;;  %v2980_v36 = vpop.eup %2979 }
 0x823   : > { %1829 = vadd.xlane.f32.xlu2 %v1828_v33  ;;  %v1714_v39 = vsel %vm1478_vm4, %v2980_v36, 0.0  ;;  %v3578_v41 = vpop.eup %2981 }
 0x824   : > { %v1885_v42 = vsel %vm1478_vm4, %v3578_v41, 0.0 }
 0x826   : > { %1720 = vrot.lane.b32.xlu1 %v3491_v0, %s3141_s6  ;;  %s3149_s6 = smov 24  }
 0x830   : > { %v1607_v37 = vpop.permute.xlu1 %1606 }
 0x831   : > { %v1612_v38 = vsel %vm1496_vm3, %v1607_v37, 0 }
 0x832   : > { %1621 = vmatpush.bf16.msra.mxu0 %v1612_v38 }
 0x833   : > { %1715 = vadd.xlane.f32.xlu0 %v1714_v39 }
 0x838   : > { %v1778_v43 = vpop.permute.xlu1 %1777 }
 0x839   : > { %v1783_v56 = vsel %vm1496_vm3, %v1778_v43, 0 }
 0x83b   : > { %1834 = vrot.lane.b32.xlu2 %v3491_v0, %s3142_s3  ;;  %s3150_s3 = smov 28  }
 0x847   : > { %1891 = vrot.lane.b32.xlu0 %v3491_v0, %s3143_s23 }
 0x850   : > { %1886 = vadd.xlane.f32.xlu1 %v1885_v42 }
 0x863   : > { %v1487_v44 = vpop.xlane.xlu1 %1486 }
 0x864   : > { %2983 = vrcp.f32 %v1487_v44 }
 0x868   : > { %v1545_v45 = vpop.xlane.xlu0 %1544 }
 0x869   : > { %2985 = vrcp.f32 %v1545_v45 }
 0x86a   : > { %v2984_v46 = vpop.eup %2983 }
 0x86b   : > { %v1489_v48 = vmul.f32 %v2984_v46, %v3545_v47 }
 0x86d   : > { %v1490_v49 = vpack.c.bf16 %v1489_v48, %v1489_v48 }
 0x86f   : > { %v2986_v51 = vpop.eup %2985  ;;  %2715 = vmatmul.msk.bf16.vlgmr.msrb.gmra.mxu0 %vm1478_vm4, %v1490_v49 }
 0x870   : > { %v1547_v0 = vmul.f32 %v2986_v51, %v3549_v6 }
 0x872   : > { %v1548_v52 = vpack.c.bf16 %v1547_v0, %v1547_v0 }
 0x874   : > { %2717 = vmatmul.msk.bf16.vlgmr.msrb.gmra.mxu2 %vm1478_vm4, %v1548_v52 }
 0x878   : > { %v1659_v53 = vpop.xlane.xlu1 %1658 }
 0x879   : > { %2987 = vrcp.f32 %v1659_v53 }
 0x87b   : > { %v1664_v54 = vpop.permute.xlu0 %1663 }
 0x87c   : > { %v1669_v55 = vsel %vm1496_vm3, %v1664_v54, 0 }
 0x87d   : > { %1678 = vmatpush.bf16.msra.mxu2 %v1669_v55 }
 0x87f   : > { %v2988_v57 = vpop.eup %2987 }
 0x880   : > { %v1661_v58 = vmul.f32 %v2988_v57, %v3553_v14  ;;  %v1602_v60 = vpop.xlane.xlu1 %1601 }
 0x881   : > { %1792 = vmatpush.bf16.msrb.mxu2 %v1783_v56  ;;  %2989 = vrcp.f32 %v1602_v60 }
 0x882   : > { %v1662_v61 = vpack.c.bf16 %v1661_v58, %v1661_v58  ;;  %v1957_v58 = vperm.slane %v3468_v29, 3 }
 0x884   : > { %2721 = vmatmul.msk.bf16.vlgmr.msra.gmra.mxu2 %vm1478_vm4, %v1662_v61 }
 0x887   : > { %v2990_v62 = vpop.eup %2989 }
 0x888   : > { %v1604_v63 = vmul.f32 %v2990_v62, %v3557_v17  ;;  %v1773_v1 = vpop.xlane.xlu2 %1772 }
 0x889   : > { %2991 = vrcp.f32 %v1773_v1 }
 0x88a   : > { %v1605_v2 = vpack.c.bf16 %v1604_v63, %v1604_v63 }
 0x88c   : > { %2719 = vmatmul.msk.bf16.vlgmr.msra.gmra.mxu0 %vm1478_vm4, %v1605_v2 }
 0x88f   : > { %v2992_v3 = vpop.eup %2991 }
 0x890   : > { %v1775_v4 = vmul.f32 %v2992_v3, %v3562_v23 }
 0x892   : > { %v1776_v47 = vpack.c.bf16 %v1775_v4, %v1775_v4 }
 0x894   : > { %2725 = vmatmul.msk.bf16.vlgmr.msrb.gmra.mxu2 %vm1478_vm4, %v1776_v47 }
 0x896   : > { %v1830_v5 = vpop.xlane.xlu2 %1829 }
 0x898   : > { %v1721_v6 = vpop.permute.xlu1 %1720 }
 0x899   : > { %v1726_v7 = vsel %vm1496_vm3, %v1721_v6, 0 }
 0x89a   : > { %1735 = vmatpush.bf16.msrb.mxu0 %v1726_v7  ;;  %v2845_v7 = vld [vmem:[%s3884_s10 + $0x18] sm:$0xff] }
 0x89b   : > { %2093 = vmatpush.bf16.msrb.mxu1 %v2845_v7 }
 0x89e   : > { %v1835_v8 = vpop.permute.xlu2 %1834 }
 0x89f   : > { %v1840_v9 = vsel %vm1496_vm3, %v1835_v8, 0 }
 0x8a0   : > { %1849 = vmatpush.bf16.msra.mxu0 %v1840_v9 }
 0x8a6   : > { %v1716_v10 = vpop.xlane.xlu0 %1715 }
 0x8a7   : > { %2993 = vrcp.f32 %v1716_v10  ;;  %v2844_v10 = vld [vmem:[%s3884_s10 + $0x10] sm:$0xff] }
 0x8a8   : > { %2995 = vrcp.f32 %v1830_v5  ;;  %2094 = vmatpush.bf16.msrb.mxu1 %v2844_v10 }
 0x8ad   : > { %v2994_v11 = vpop.eup %2993 }
 0x8ae   : > { %v1718_v12 = vmul.f32 %v2994_v11, %v2980_v36  ;;  %v2996_v14 = vpop.eup %2995 }
 0x8af   : > { %v1832_v17 = vmul.f32 %v2996_v14, %v3567_v30 }
 0x8b0   : > { %v1719_v13 = vpack.c.bf16 %v1718_v12, %v1718_v12 }
 0x8b1   : > { %v1833_v18 = vpack.c.bf16 %v1832_v17, %v1832_v17 }
 0x8b2   : > { %2723 = vmatmul.msk.bf16.vlgmr.msrb.gmra.mxu0 %vm1478_vm4, %v1719_v13 }
 0x8b9   : > { %v1892_v15 = vpop.permute.xlu0 %1891 }
 0x8ba   : > { %v1897_v16 = vsel %vm1496_vm3, %v1892_v15, 0 }
 0x8bb   : > { %1906 = vmatpush.bf16.msra.mxu2 %v1897_v16 }
 0x8c2   : > { %2727 = vmatmul.msk.bf16.vlgmr.msra.gmra.mxu0 %vm1478_vm4, %v1833_v18  ;;  %v2009_v18 = vperm.slane %v3468_v29, 4 }
 0x8c3   : > { %v1887_v19 = vpop.xlane.xlu1 %1886 }
 0x8c4   : > { %2997 = vrcp.f32 %v1887_v19 }
 0x8ca   : > { %v2998_v21 = vpop.eup %2997 }
 0x8cb   : > { %v1889_v22 = vmul.f32 %v2998_v21, %v3578_v41  ;;  %v2011_v21 = vperm.slane %v3468_v29, 5 }
 0x8cd   : > { %v1890_v23 = vpack.c.bf16 %v1889_v22, %v1889_v22 }
 0x8cf   : > { %2729 = vmatmul.msk.bf16.vlgmr.msra.gmra.mxu2 %vm1478_vm4, %v1890_v23 }
 0x8ec   : > { %v1509_v24 = vpop.f32.mrf.mxu0 }
 0x8f4   : > { %v1511_v25 = vpop.f32.mrf.mxu0 }
 0x8f7   : > { %v1566_v26 = vpop.f32.mrf.mxu2 }
 0x8f8   : > { %1913 = vrot.lane.b32.xlu0 %v1566_v26, %s3144_s28  ;;  %v2843_v26 = vld [vmem:[%s3884_s10 + $0x8] sm:$0xff]  ;;  %s2805_s28 = sshll.u32 %s3302_s7, 3 }
 0x8f9   : > { %2095 = vmatpush.bf16.msrb.mxu1 %v2843_v26  ;;  %s2425_s5 = scalar_lea.hbm %s3825_s24, %s2805_s28 }
 0x8ff   : > { %v1568_v27 = vpop.f32.mrf.mxu2 }
 0x900   : > { %v2842_v27 = vld [vmem:[%s3884_s10] sm:$0xff] }
 0x901   : > { %2096 = vmatpush.bf16.msrb.mxu1 %v2842_v27 }
 0x907   : > { %v1680_v28 = vpop.f32.mrf.mxu2 }
 0x908   : > { %1921 = vrot.lane.b32.xlu2 %v1680_v28, %s3145_s26  ;;  %s3882_s26 = sld [smem:[#allocation22_spill]]  ;;  %v2934_v28 = vld [vmem:[%s3821_s20] ss:$0 sm:$0xff] }
 0x909   : > { %v1623_v50 = vpop.f32.mrf.mxu0 }
 0x90a   : > { %1917 = vrot.lane.b32.xlu0 %v1623_v50, %s3146_s29  ;;  %s3043_s29 = scalar_lea.hbm %s3825_s24, 16 }
 0x90e   : > { %v2839_v40 = vld [vmem:[%s3882_s26 + $0x8] sm:$0xff]  ;;  %v2838_v41 = vld [vmem:[%s3882_s26] sm:$0xff] }
 0x90f   : > { %v1682_v30 = vpop.f32.mrf.mxu2  ;;  %1979 = vmatpush.bf16.msra.mxu3 %v2839_v40 }
 0x911   : > { %v1625_v31 = vpop.f32.mrf.mxu0 }
 0x913   : > { %1980 = vmatpush.bf16.msra.mxu3 %v2838_v41 }
 0x917   : > { %v1794_v33 = vpop.f32.mrf.mxu2 }
 0x918   : > { %1929 = vrot.lane.b32.xlu1 %v1794_v33, %s3147_s27 }
 0x91f   : > { %v1796_v34 = vpop.f32.mrf.mxu2 }
 0x92f   : > { %v1737_v35 = vpop.f32.mrf.mxu0 }
 0x930   : > { %1925 = vrot.lane.b32.xlu0 %v1737_v35, %s3148_s30  ;;  %v2060_v35 = vperm.slane %v3468_v29, 6  ;;  %s3671_s30 = scalar_lea.vmem [#allocation4], %s3844_s0 }
 0x937   : > { %v1739_v36 = vpop.f32.mrf.mxu0 }
 0x93f   : > { %v1851_v37 = vpop.f32.mrf.mxu0 }
 0x940   : > { %1933 = vrot.lane.b32.xlu2 %v1851_v37, %s3149_s6  ;;  %s2439_s6 = scalar_lea.hbm %s3826_s25, %s2805_s28 }
 0x947   : > { %v1853_v38 = vpop.f32.mrf.mxu0 }
 0x952   : > { %v1908_v39 = vpop.f32.mrf.mxu2 }
 0x953   : > { %1937 = vrot.lane.b32.xlu0 %v1908_v39, %s3150_s3  ;;  %s3883_s3 = sld [smem:[#allocation23_spill]] }
 0x959   : > { %v2841_v6 = vld [vmem:[%s3883_s3 + $0x8] sm:$0xff] }
 0x95a   : > { %v1910_v32 = vpop.f32.mrf.mxu2  ;;  %2043 = vmatpush.bf16.msrb.mxu0 %v2841_v6 }
 0x962   : > { %v1922_v46 = vpop.permute.xlu2 %1921 }
 0x96a   : > { %v1914_v42 = vpop.permute.xlu0 %1913 }
 0x96b   : > { %v1940_v44 = vsel %vm1457_vm2, %v1509_v24, %v1914_v42 }
 0x97c   : > { %v1918_v43 = vpop.permute.xlu0 %1917 }
 0x97d   : > { %v1941_v45 = vsel %vm1478_vm4, %v1940_v44, %v1918_v43 }
 0x97e   : > { %v1943_v49 = vsel %vm1942_vm5, %v1941_v45, %v1922_v46  ;;  %v2847_v45 = vld [vmem:[%s3885_s11 + $0x8] sm:$0xff] }
 0x97f   : > { %v2851_v46 = vld [vmem:[%s3886_s13 + $0x8] sm:$0xff]  ;;  %2155 = vmatpush.bf16.msrb.mxu2 %v2847_v45 }
 0x98a   : > { %v1930_v0 = vpop.permute.xlu1 %1929 }
 0x99a   : > { %v1934_v53 = vpop.permute.xlu2 %1933 }
 0x9a2   : > { %v1926_v48 = vpop.permute.xlu0 %1925 }
 0x9a3   : > { %v1945_v51 = vsel %vm1944_vm6, %v1943_v49, %v1926_v48  ;;  %v2846_v48 = vld [vmem:[%s3885_s11] sm:$0xff]  ;;  %s2429_s11 = sshll.u32 %s2425_s5, 4  ;;  %s2430_s11 = int_to_ptr.hbm [resolvable:$true] %s2429_s11 }
 0x9a4   : > { %v1947_v52 = vsel %vm1946_vm7, %v1945_v51, %v1930_v0  ;;  %v2850_v49 = vld [vmem:[%s3886_s13] sm:$0xff]  ;;  %2156 = vmatpush.bf16.msrb.mxu2 %v2846_v48 }
 0x9a5   : > { %v1949_v55 = vsel %vm1948_vm9, %v1947_v52, %v1934_v53 }
 0x9c5   : > { %v1938_v54 = vpop.permute.xlu0 %1937 }
 0x9c6   : > { %v1951_v56 = vsel %vm1950_vm10, %v1949_v55, %v1938_v54 }
 0x9c7   : > { %v1952_v57 = vpack.c.bf16 %v1951_v56, %v1951_v56 }
 0x9c9   : > { %2738 = vmatmul.msk.bf16.vlgmr.msra.gmra.mxu3 %vm1052_vm8, %v1952_v57 }
 0xa4c   : > { %v1982_v60 = vpop.f32.mrf.mxu3 }
 0xa4d   : > { %v1983_v61 = vadd.f32 %v1982_v60, %v1957_v58  ;;  %v3661_v58 = vld [vmem:[%s3879_s15 + $0x10] sm:$0x1f] }
 0xa4f   : > { %v1986_v62 = vadd.f32 %v1983_v61, %v3483_v59  ;;  %v2840_v59 = vld [vmem:[%s3883_s3] sm:$0xff]  ;;  %v2125_v61 = vperm.slane %v3468_v29, 7 }
 0xa50   : > { %2044 = vmatpush.bf16.msrb.mxu0 %v2840_v59 }
 0xa51   : > { %v1987_v63 = vsel %vm1052_vm8, %v1986_v62, 0.0 }
 0xa52   : > { %1988 = vadd.xlane.f32.xlu2 %v1987_v63  ;;  %v2127_v63 = vperm.slane %v3661_v58, 0 }
 0xa54   : > { %v1984_v1 = vpop.f32.mrf.mxu3  ;;  %2248 = vmatpush.bf16.msra.mxu0 %v2851_v46 }
 0xa58   : > { %2249 = vmatpush.bf16.msra.mxu0 %v2850_v49  ;;  %v2186_v49 = vperm.slane %v3661_v58, 2 }
 0xac5   : > { %v1989_v2 = vpop.xlane.xlu2 %1988 }
 0xac6   : > { %v1990_v3 = vmul.f32 %v1989_v2, %v3397_v20 }
 0xac8   : > { %v1991_v4 = vsub.f32 %v1986_v62, %v1990_v3 }
 0xaca   : > { %v1992_v47 = vmul.f32 %v1991_v4, %v1991_v4 }
 0xacc   : > { %v1993_v5 = vsel %vm1052_vm8, %v1992_v47, 0.0 }
 0xacd   : > { %1994 = vadd.xlane.f32.xlu0 %v1993_v5 }
 0xb40   : > { %v1995_v8 = vpop.xlane.xlu0 %1994 }
 0xb41   : > { %v1996_v9 = vmul.f32 %v1995_v8, %v3397_v20 }
 0xb43   : > { %v1997_v11 = vadd.f32 1e-05, %v1996_v9 }
 0xb45   : > { %2999 = vrsqrt.f32 %v1997_v11  ;;  %vm2004_vm12 = vweird.f32 %v1997_v11 }
 0xb4b   : > { %v3000_v12 = vpop.eup %2999 }
 0xb4c   : > { %v1999_v13 = vmul.f32 %v3000_v12, %v1997_v11  ;;  %vm2005_vm11 = vweird.f32 %v3000_v12 }
 0xb4d   : > { %vm2006_vm13 = vmor %vm2004_vm12, %vm2005_vm11 }
 0xb4e   : > { %v2000_v14 = vmul.f32 %v3000_v12, %v1999_v13 }
 0xb50   : > { %v2001_v15 = vmul.f32 0.5, %v2000_v14 }
 0xb52   : > { %v2002_v16 = vsub.f32 1.5, %v2001_v15 }
 0xb54   : > { %v2003_v17 = vmul.f32 %v3000_v12, %v2002_v16 }
 0xb56   : > { %v2007_v19 = vsel %vm2006_vm13, %v3000_v12, %v2003_v17 }
 0xb57   : > { %v2008_v22 = vmul.f32 %v2007_v19, %v1991_v4  ;;  %v2848_v19 = vld [vmem:[%s3887_s12] sm:$0xff] }
 0xb59   : > { %v2010_v23 = vmul.f32 %v2009_v18, %v2008_v22  ;;  %v2849_v18 = vld [vmem:[%s3887_s12 + $0x8] sm:$0xff]  ;;  %s3037_s12 = sshra.s32 %s2430_s11, 4  ;;  %s3038_s12 = int_to_ptr.hbm [resolvable:$true] %s3037_s12 }
 0xb5a   : > { %2219 = vmatpush.bf16.msrb.mxu3 %v2849_v18  ;;  %v3020_v18 = vld [vmem:[%s3337_s8 + $0x48] sm:$0xff]  ;;  %s3039_s13 = scalar_lea.hbm %s3038_s12, 8  ;;  %p3044_p0 = scmp.lt.s32.totalorder %s3038_s12, %s3825_s24 }
 0xb5b   : > { %v2012_v24 = vadd.f32 %v2011_v21, %v2010_v23  ;;  %v2853_v23 = vld [vmem:[%s3888_s14 + $0x8] sm:$0xff]  ;;  %p3040_p11 = scmp.ne.s32.totalorder %s3038_s12, %s3039_s13  ;;  %p3045_p1 = scmp.lt.s32.totalorder %s3043_s29, %s3039_s13 }
 0xb5c   : > { %2312 = vmatpush.bf16.msra.mxu1 %v2853_v23  ;;  %v3022_v23 = vld [vmem:[%s3337_s8 + $0x40] sm:$0xff] }
 0xb5d   : > { %v2014_v25 = vpack.c.bf16 %v2012_v24, %v2012_v24  ;;  %p3041_p12 = pnand %p3040_p11, %p3319_p5  ;;  %p3046_p2 = por %p3045_p1, %p3044_p0 }
 0xb5e   : > { %2220 = vmatpush.bf16.msrb.mxu3 %v2848_v19  ;;  %v2351_v19 = vsel %vm1052_vm8, %v3020_v18, 0 }
 0xb5f   : > { %2747 = vmatmul.msk.bf16.vlgmr.msrb.gmra.mxu0 %vm1052_vm8, %v2014_v25  ;;  %v2852_v25 = vld [vmem:[%s3888_s14] sm:$0xff]  ;;  %p3042_p13 = pneg %p3041_p12 }
 0xb60   : > { %2313 = vmatpush.bf16.msra.mxu1 %v2852_v25  ;;  %v2935_v25 = vld [vmem:[%s3822_s21] ss:$0 sm:$0xff] }
 0xb61   : > { %p3047_p3 = pnand %p3046_p2, %p3042_p13 }
 0xbdc   : > { %v2046_v50 = vpop.f32.mrf.mxu0 }
 0xbdd   : > { %v2047_v30 = vadd.f32 %v2934_v28, %v2046_v50  ;;  %v3007_v28 = vld [vmem:[%s3337_s8 + $0x38] sm:$0xff] }
 0xbde   : > { %v2345_v50 = vsel %vm1052_vm8, %v3007_v28, 0 }
 0xbdf   : > { %v2050_v31 = vmax.f32 %v2047_v30, 0.0  ;;  %v3008_v30 = vld [vmem:[%s3337_s8 + $0x78] sm:$0xff]  ;;  %2371 = vmatpush.bf16.xpose.msra.mxu2 %v2345_v50 }
 0xbe1   : > { %v2051_v33 = vpack.c.bf16 %v2050_v31, %v2050_v31  ;;  %v2369_v31 = vsel %vm1052_vm8, %v3008_v30, 0 }
 0xbe2   : > { %2384 = vmatpush.bf16.xpose.msra.mxu3 %v2369_v31 }
 0xbe3   : > { %2764 = vmatmul.msk.bf16.vlgmr.msrb.gmra.mxu1 %vm2085_vm14, %v2051_v33 }
 0xbe4   : > { %v2048_v34 = vpop.f32.mrf.mxu0 }
 0xc60   : > { %v2098_v36 = vpop.f32.mrf.mxu1 }
 0xc61   : > { %v2099_v37 = vadd.f32 %v2098_v36, %v2060_v35 }
 0xc63   : > { %v2102_v38 = vadd.f32 %v2099_v37, %v2012_v24  ;;  %v3009_v37 = vld [vmem:[%s3337_s8 + $0x30] sm:$0xff] }
 0xc65   : > { %v2103_v39 = vsel %vm1052_vm8, %v2102_v38, 0.0 }
 0xc66   : > { %2104 = vadd.xlane.f32.xlu1 %v2103_v39  ;;  %v3010_v39 = vld [vmem:[%s3337_s8 + $0x70] sm:$0xff] }
 0xc68   : > { %v2100_v32 = vpop.f32.mrf.mxu1 }
 0xc69   : > { %v2366_v32 = vsel %vm1052_vm8, %v3010_v39, 0 }
 0xc6a   : > { %2385 = vmatpush.bf16.xpose.msra.mxu3 %v2366_v32 }
 0xcd9   : > { %v2105_v40 = vpop.xlane.xlu1 %2104 }
 0xcda   : > { %v2106_v41 = vmul.f32 %v2105_v40, %v3397_v20 }
 0xcdc   : > { %v2107_v42 = vsub.f32 %v2102_v38, %v2106_v41  ;;  %v2342_v38 = vsel %vm1052_vm8, %v3009_v37, 0 }
 0xcdd   : > { %2372 = vmatpush.bf16.xpose.msra.mxu2 %v2342_v38 }
 0xcde   : > { %v2108_v43 = vmul.f32 %v2107_v42, %v2107_v42 }
 0xce0   : > { %v2109_v44 = vsel %vm1052_vm8, %v2108_v43, 0.0 }
 0xce1   : > { %2110 = vadd.xlane.f32.xlu2 %v2109_v44  ;;  %v2184_v44 = vperm.slane %v3661_v58, 1 }
 0xd54   : > { %v2111_v51 = vpop.xlane.xlu2 %2110 }
 0xd55   : > { %v2112_v0 = vmul.f32 %v2111_v51, %v3397_v20  ;;  %v3011_v51 = vld [vmem:[%s3337_s8 + $0x28] sm:$0xff] }
 0xd57   : > { %v2113_v52 = vadd.f32 1e-05, %v2112_v0  ;;  %v2339_v0 = vsel %vm1052_vm8, %v3011_v51, 0 }
 0xd58   : > { %2373 = vmatpush.bf16.xpose.msra.mxu2 %v2339_v0 }
 0xd59   : > { %3001 = vrsqrt.f32 %v2113_v52  ;;  %vm2120_vm0 = vweird.f32 %v2113_v52 }
 0xd5f   : > { %v3002_v53 = vpop.eup %3001 }
 0xd60   : > { %v2115_v54 = vmul.f32 %v3002_v53, %v2113_v52  ;;  %vm2121_vm15 = vweird.f32 %v3002_v53  ;;  %v3012_v52 = vld [vmem:[%s3337_s8 + $0x68] sm:$0xff] }
 0xd61   : > { %vm2122_vm1 = vmor %vm2120_vm0, %vm2121_vm15 }
 0xd62   : > { %v2116_v55 = vmul.f32 %v3002_v53, %v2115_v54 }
 0xd64   : > { %v2117_v56 = vmul.f32 0.5, %v2116_v55 }
 0xd66   : > { %v2118_v57 = vsub.f32 1.5, %v2117_v56 }
 0xd68   : > { %v2119_v60 = vmul.f32 %v3002_v53, %v2118_v57 }
 0xd6a   : > { %v2123_v62 = vsel %vm2122_vm1, %v3002_v53, %v2119_v60  ;;  %v2363_v53 = vsel %vm1052_vm8, %v3012_v52, 0 }
 0xd6b   : > { %v2124_v1 = vmul.f32 %v2123_v62, %v2107_v42  ;;  %2386 = vmatpush.bf16.xpose.msra.mxu3 %v2363_v53 }
 0xd6d   : > { %v2126_v2 = vmul.f32 %v2125_v61, %v2124_v1  ;;  %v2277_v61 = vperm.slane %v3661_v58, 3  ;;  %v2279_v1 = vperm.slane %v3661_v58, 4 }
 0xd6f   : > { %v2128_v3 = vadd.f32 %v2127_v63, %v2126_v2 }
 0xd71   : > { %v2129_v4 = vpack.c.bf16 %v2128_v3, %v2128_v3  ;;  %2400 = vst.msk [vmem:[%s3671_s30] sm:$0xff] %vm1052_vm8, %v2128_v3 }
 0xd73   : > { %2773 = vmatmul.msk.bf16.vlgmr.msrb.gmra.mxu2 %vm1052_vm8, %v2129_v4  ;;  %2791 = vmatmul.msk.bf16.vlgmr.msra.gmra.mxu0 %vm1052_vm8, %v2129_v4  ;;  %v3013_v4 = vld [vmem:[%s3337_s8 + $0x20] sm:$0xff] }
 0xdf0   : > { %v2251_v29 = vpop.f32.mrf.mxu0 }
 0xdf1   : > { %v2255_v7 = vsel %vm1052_vm8, %v2251_v29, 0.0 }
 0xdf6   : > { %v2158_v47 = vpop.f32.mrf.mxu2 }
 0xdf7   : > { %v2162_v5 = vsel %vm1052_vm8, %v2158_v47, 0.0 }
 0xdf8   : > { %v2253_v6 = vpop.f32.mrf.mxu0  ;;  %2163 = vadd.xlane.f32.xlu2 %v2162_v5 }
 0xdfe   : > { %v2160_v59 = vpop.f32.mrf.mxu2 }
 0xe00   : > { %2256 = vadd.xlane.f32.xlu2 %v2255_v7 }
 0xe6b   : > { %v2164_v8 = vpop.xlane.xlu2 %2163 }
 0xe6c   : > { %v2165_v9 = vmul.f32 %v2164_v8, %v3397_v20  ;;  %v3015_v8 = vld [vmem:[%s3337_s8 + $0x18] sm:$0xff] }
 0xe6e   : > { %v2166_v10 = vsub.f32 %v2158_v47, %v2165_v9  ;;  %v3014_v47 = vld [vmem:[%s3337_s8 + $0x60] sm:$0xff]  ;;  %v2333_v9 = vsel %vm1052_vm8, %v3015_v8, 0 }
 0xe6f   : > { %v2360_v5 = vsel %vm1052_vm8, %v3014_v47, 0 }
 0xe70   : > { %v2167_v11 = vmul.f32 %v2166_v10, %v2166_v10  ;;  %2387 = vmatpush.bf16.xpose.msra.mxu3 %v2360_v5 }
 0xe72   : > { %v2168_v12 = vsel %vm1052_vm8, %v2167_v11, 0.0 }
 0xe73   : > { %2169 = vadd.xlane.f32.xlu0 %v2168_v12  ;;  %v2257_v13 = vpop.xlane.xlu2 %2256  ;;  %v3017_v12 = vld [vmem:[%s3337_s8 + $0x10] sm:$0xff] }
 0xe74   : > { %v2258_v14 = vmul.f32 %v2257_v13, %v3397_v20  ;;  %v2330_v13 = vsel %vm1052_vm8, %v3017_v12, 0 }
 0xe76   : > { %v3682_v15 = vsub.f32 %v2251_v29, %v2258_v14  ;;  %v2336_v29 = vsel %vm1052_vm8, %v3013_v4, 0  ;;  %v3018_v14 = vld [vmem:[%s3337_s8 + $0x50] sm:$0xff] }
 0xe77   : > { %2374 = vmatpush.bf16.xpose.msra.mxu2 %v2336_v29 }
 0xe78   : > { %v2260_v16 = vmul.f32 %v3682_v15, %v3682_v15 }
 0xe7a   : > { %v2261_v17 = vsel %vm1052_vm8, %v2260_v16, 0.0  ;;  %v3019_v16 = vld [vmem:[%s3337_s8 + $0x8] sm:$0xff] }
 0xe7b   : > { %2262 = vadd.xlane.f32.xlu0 %v2261_v17  ;;  %v2327_v17 = vsel %vm1052_vm8, %v3019_v16, 0 }
 0xe7f   : > { %2375 = vmatpush.bf16.xpose.msra.mxu2 %v2333_v9 }
 0xe87   : > { %2376 = vmatpush.bf16.xpose.msra.mxu2 %v2330_v13 }
 0xe8f   : > { %2377 = vmatpush.bf16.xpose.msra.mxu2 %v2327_v17 }
 0xee6   : > { %v2170_v21 = vpop.xlane.xlu0 %2169 }
 0xee7   : > { %v2171_v22 = vmul.f32 %v2170_v21, %v3397_v20  ;;  %v3021_v21 = vld [vmem:[%s3337_s8] sm:$0xff] }
 0xee9   : > { %v2172_v24 = vadd.f32 1e-05, %v2171_v22  ;;  %v2324_v22 = vsel %vm1052_vm8, %v3021_v21, 0 }
 0xeea   : > { %2378 = vmatpush.bf16.xpose.msra.mxu2 %v2324_v22 }
 0xeeb   : > { %3003 = vrsqrt.f32 %v2172_v24  ;;  %vm2179_vm3 = vweird.f32 %v2172_v24 }
 0xeee   : > { %v2263_v26 = vpop.xlane.xlu0 %2262 }
 0xeef   : > { %v2264_v27 = vmul.f32 %v2263_v26, %v3397_v20  ;;  %v2936_v26 = vld [vmem:[%s3823_s22] ss:$0 sm:$0xff] }
 0xef1   : > { %v3004_v33 = vpop.eup %3003  ;;  %v2265_v34 = vadd.f32 1e-05, %v2264_v27 }
 0xef2   : > { %v2174_v35 = vmul.f32 %v3004_v33, %v2172_v24  ;;  %vm2180_vm2 = vweird.f32 %v3004_v33  ;;  %v2348_v24 = vsel %vm1052_vm8, %v3022_v23, 0 }
 0xef3   : > { %3005 = vrsqrt.f32 %v2265_v34  ;;  %vm2181_vm4 = vmor %vm2179_vm3, %vm2180_vm2  ;;  %vm2272_vm6 = vweird.f32 %v2265_v34 }
 0xef4   : > { %v2175_v36 = vmul.f32 %v3004_v33, %v2174_v35 }
 0xef6   : > { %v2176_v20 = vmul.f32 0.5, %v2175_v36 }
 0xef8   : > { %v2177_v40 = vsub.f32 1.5, %v2176_v20 }
 0xef9   : > { %v3006_v41 = vpop.eup %3005 }
 0xefa   : > { %v2178_v42 = vmul.f32 %v3004_v33, %v2177_v40  ;;  %v2267_v43 = vmul.f32 %v3006_v41, %v2265_v34  ;;  %vm2273_vm5 = vweird.f32 %v3006_v41 }
 0xefb   : > { %vm2274_vm7 = vmor %vm2272_vm6, %vm2273_vm5 }
 0xefc   : > { %v2182_v45 = vsel %vm2181_vm4, %v3004_v33, %v2178_v42  ;;  %v2268_v46 = vmul.f32 %v3006_v41, %v2267_v43 }
 0xefd   : > { %v2183_v48 = vmul.f32 %v2182_v45, %v2166_v10  ;;  %v3016_v10 = vld [vmem:[%s3337_s8 + $0x58] sm:$0xff]  ;;  %s3889_s8 = sshll.u32 %s3664_s1, 3 }
 0xefe   : > { %v2269_v54 = vmul.f32 0.5, %v2268_v46  ;;  %v2357_v11 = vsel %vm1052_vm8, %v3016_v10, 0  ;;  %s796_s23 = scalar_lea.vmem [#allocation2], %s3889_s8  ;;  %s2407_s8 = scalar_lea.sflag [#allocation3], %s3664_s1 }
 0xeff   : > { %v2185_v55 = vmul.f32 %v2184_v44, %v2183_v48  ;;  %2388 = vmatpush.bf16.xpose.msra.mxu3 %v2357_v11  ;;  %s2427_s10 = sshll.u32 %s796_s23, 4  ;;  %s2428_s10 = int_to_ptr.vmem [resolvable:$true] %s2427_s10 }
 0xf00   : > { %v2270_v56 = vsub.f32 1.5, %v2269_v54 }
 0xf01   : > { %v2187_v57 = vadd.f32 %v2186_v49, %v2185_v55 }
 0xf02   : > { %v2271_v60 = vmul.f32 %v3006_v41, %v2270_v56 }
 0xf03   : > { %v2188_v62 = vmax.f32 %v2187_v57, 0.0 }
 0xf04   : > { %v2275_v63 = vsel %vm2274_vm7, %v3006_v41, %v2271_v60 }
 0xf05   : > { %v2276_v2 = vmul.f32 %v2275_v63, %v3682_v15  ;;  %v2190_v3 = vpack.c.bf16 %v2188_v62, %v2188_v62  ;;  %v2354_v15 = vsel %vm1052_vm8, %v3018_v14, 0 }
 0xf07   : > { %v2278_v6 = vmul.f32 %v2277_v61, %v2276_v2  ;;  %2782 = vmatmul.msk.bf16.vlgmr.msrb.gmra.mxu3 %vm1052_vm8, %v2190_v3 }
 0xf08   : > { %2389 = vmatpush.bf16.xpose.msra.mxu3 %v2354_v15 }
 0xf09   : > { %v2280_v59 = vadd.f32 %v2279_v1, %v2278_v6 }
 0xf0b   : > { %v2281_v58 = vmax.f32 %v2280_v59, 0.0 }
 0xf0d   : > { %v2283_v7 = vpack.c.bf16 %v2281_v58, %v2281_v58 }
 0xf0f   : > { %2800 = vmatmul.msk.bf16.vlgmr.msra.gmra.mxu1 %vm1052_vm8, %v2283_v7 }
 0xf10   : > { %2390 = vmatpush.bf16.xpose.msra.mxu3 %v2351_v19 }
 0xf18   : > { %2391 = vmatpush.bf16.xpose.msra.mxu3 %v2348_v24 }
 0xf8a   : > { %v2222_v27 = vpop.f32.mrf.mxu3 }
 0xf8b   : > { %v2223_v28 = vadd.f32 %v2935_v25, %v2222_v27 }
 0xf8c   : > { %v2315_v50 = vpop.f32.mrf.mxu1 }
 0xf8d   : > { %v2319_v30 = vpack.c.bf16 %v2223_v28, %v2223_v28  ;;  %v2316_v31 = vadd.f32 %v2936_v26, %v2315_v50 }
 0xf8f   : > { %2399 = vst [vmem:[%s796_s23] sm:$0xff] %v2316_v31  ;;  %2801 = vmatmul.msk.bf16.vlgmr.msra.gmra.mxu2 %vm1052_vm8, %v2319_v30  ;;  %2802 = vmatmul.msk.bf16.vlgmr.msra.gmra.mxu3 %vm1052_vm8, %v2319_v30 }
 0xf92   : > { %v2224_v33 = vpop.f32.mrf.mxu3 }
 0xf94   : > { %v2317_v34 = vpop.f32.mrf.mxu1 }
 0xf95   : > { %3050 = shalt.err (!%p3047_p3)
}
 0xf96   : > { %2854 = dma.vmem_to_hbm [thread:$0]  (%p3319_p5), %s2428_s10, 128, %s2430_s11, %s2407_s8  }
 0xf97   : > { %s2441_s23 = sshll.u32 %s3671_s30, 4  ;;  %s2443_s28 = sshll.u32 %s2439_s6, 4  ;;  %s2442_s23 = int_to_ptr.vmem [resolvable:$true] %s2441_s23  ;;  %s2444_s28 = int_to_ptr.hbm [resolvable:$true] %s2443_s28 }
 0xf98   : > { %s2412_s14 = scalar_lea.sflag [#allocation5], %s3664_s1  ;;  %s3065_s5 = sshra.s32 %s2444_s28, 4  ;;  %s3066_s5 = int_to_ptr.hbm [resolvable:$true] %s3065_s5 }
 0xf99   : > { %s3067_s3 = scalar_lea.hbm %s3066_s5, 8  ;;  %s3071_s15 = scalar_lea.hbm %s3826_s25, 16 }
 0xf9a   : > { %p3068_p4 = scmp.ne.s32.totalorder %s3066_s5, %s3067_s3  ;;  %p3072_p9 = scmp.lt.s32.totalorder %s3066_s5, %s3826_s25 }
 0xf9b   : > { %p3073_p10 = scmp.lt.s32.totalorder %s3071_s15, %s3067_s3 }
 0xf9c   : > { %p3069_p7 = pnand %p3068_p4, %p3319_p5 }
 0xf9d   : > { %p3074_p11 = por %p3073_p10, %p3072_p9 }
 0xf9e   : > { %p3070_p8 = pneg %p3069_p7 }
 0xfa0   : > { %p3075_p12 = pnand %p3074_p11, %p3070_p8 }
 0xfa2   : > { %3078 = shalt.err (!%p3075_p12)
}
 0xfa3   : > { %2855 = dma.vmem_to_hbm [thread:$0]  (%p3319_p5), %s2442_s23, 128, %s2444_s28, %s2412_s14  }
 0xfa4   : > { %s2811_s10 = sshll.u32 %s3331_s9, 4  ;;  %s3890_s30 = sld [smem:[#allocation30_spill]] }
 0xfaa   : > { %s822_s6 = scalar_lea.vmem %s3890_s30, %s2811_s10 }
0x1012   : > { %v2380_v35 = vpop.f32.mrf.mxu2  ;;  %v2393_v36 = vpop.f32.mrf.mxu3 }
0x1013   : > { %2397 = vst [vmem:[%s822_s6] sm:$0xff] %v2380_v35 }
0x1014   : > { %2398 = vst [vmem:[%s822_s6 + $0x8] sm:$0xff] %v2393_v36 }
0x101a   : > { %v2382_v37 = vpop.f32.mrf.mxu2  ;;  %v2395_v38 = vpop.f32.mrf.mxu3 }
0x101b PF: > { %s3891_s8 = sld [smem:[#allocation10_spill]] }
0x101c   : > { %s3892_s29 = sld [smem:[#allocation8_spill]] }
0x1021   : > { %p2865_p13 = scmp.ge.s32.totalorder %s3891_s8, 2 }
0x1022   : > { %s2463_s5 = sand.u32 1, %s3892_s29  }
0x1023   : > { %p2859_p0 = pnand %p2865_p13, %p3323_p6  ;;  %s2464_s4 = scalar_lea.sflag [#allocation3], %s2463_s5 }
0x1025   : > { %p2860_p5 = pneg %p2859_p0 }
0x1027   : > { %3096 = dma.done.wait (%p2860_p5), %s2464_s4, 128  }
0x1028   : > { %3098 = vsyncadd (%p2860_p5), %s2464_s4, 4294967168  ;;  %s2474_s9 = scalar_lea.sflag [#allocation5], %s2463_s5 }
0x1029   : > { %3100 = dma.done.wait (%p2860_p5), %s2474_s9, 128  }
0x102a   : > { %3102 = vsyncadd (%p2860_p5), %s2474_s9, 4294967168  ;;  %s3894_s30 = sld [smem:[#allocation11_spill]]  ;;  %s3897_s29 = smov %s3109_s2 }
0x102b   : > { %s3895_s23 = sld [smem:[#allocation9_spill]] }
0x102c   : > { %s3896_s6 = sld [smem:[#allocation12_spill]] }
0x1030   : > { %p39_p1 = scmp.ge.s32.totalorder %s3894_s30, 4  }
0x1031   : > { %s3898_s2 = smov %s3895_s23 }
0x1032   :  { %41 = sbr.rel (!%p39_p1) target bundleno = 23 (0x17), region = 182 }
0x1037   :  { %2480 = vsyncpa [#allocation3], 1 }
0x1038   :  { %2482 = vsyncpa [#allocation3 + $0x1], 1 }
0x1039   :  { %2483 = vsyncpa [#allocation5], 1 }
0x103a   :  { %2485 = vsyncpa [#allocation5 + $0x1], 1 }

</bundles_post_ra>
